<compile_context>
chip_gen: v5e
topology: v5e:2x2
jax: 0.10.0
libtpu: 0.0.40
codegen_flags: <defaults>
</compile_context>

<pallas_src>
import math

import jax
import jax.numpy as jnp
from jax.experimental import pallas as pl
from jax.experimental.pallas import tpu as pltpu  # noqa: F401  (kept for future layer-streaming/tiled variant)

# ----------------------------- config (small, deterministic) -----------------
B = 2                       # batch
IMG = 16                    # config.img_size
PATCH = 8                   # config.patches['size']
N_PATCHES = (IMG // PATCH) * (IMG // PATCH)     # 4
SEQ = N_PATCHES + 1                             # 5  (n_patches + 1, as in Encoder)
HIDDEN = 32                 # config.hidden_size
NUM_HEADS = 4               # config.transformer['num_heads']
HEAD_DIM = HIDDEN // NUM_HEADS
MLP_DIM = 64                # config.transformer['mlp_dim']
NUM_LAYERS = 2              # config.transformer['num_layers']
NUM_LEVELS = 2              # config.transformer['num_levels']
LN_EPS = 1e-6
BS = B * SEQ                # flattened token count

MXU_DTYPE = jnp.bfloat16          # bf16 MXU operands, f32 accumulation
APPROX_SOFTMAX_RECIP = True       # EUP approximate reciprocal in softmax denom


# ----------------------------- in-kernel helpers ------------------------------
def _ln_norm(x):
    """LayerNorm without gamma/beta (those are folded into the next projection).

    sum(x) and sum(x*x) are two independent cross-lane reductions that can
    co-issue in the XLU slots; var = E[x^2] - mu^2.
    """
    inv_n = 1.0 / x.shape[-1]
    s1 = jnp.sum(x, axis=-1, keepdims=True)
    s2 = jnp.sum(x * x, axis=-1, keepdims=True)
    mu = s1 * inv_n
    var = s2 * inv_n - mu * mu
    return (x - mu) * jax.lax.rsqrt(var + LN_EPS)


def _gelu_exact(x):
    # matches torch.nn.functional.gelu default (erf form)
    return 0.5 * x * (1.0 + jax.lax.erf(x * (1.0 / math.sqrt(2.0))))


# ----------------------------- the Pallas kernel ------------------------------
def encoder_kernel(x_ref, lev_ref, amask_ref,
                   wqkv_ref, bqkv_ref, wo_ref, bo_ref,
                   f1w_ref, f1b_ref, f2w_ref, f2b_ref,
                   fng_ref, fnb_ref,
                   out_ref):
    x = x_ref[...]                       # (B*S, H) f32 running state (SSA-carried)
    amask = amask_ref[...]               # (NH*BS, NH*BS) additive head/batch block mask
    levs = [lev_ref[lv] for lv in range(NUM_LEVELS)]   # hoist level-table reads

    for l in range(NUM_LAYERS):          # static unroll: weights read once per layer
        wqkv = wqkv_ref[l]               # (H, 3H) bf16, LN1-gamma + qk-scale folded
        bqkv = bqkv_ref[l]               # (BS, 3H) f32, LN1-beta folded, pre-broadcast
        wo = wo_ref[l]                   # (H, H)  bf16
        bo = bo_ref[l]                   # (BS, H) f32 pre-broadcast
        f1w = f1w_ref[l]                 # (H, MLP) bf16, LN2-gamma folded
        f1b = f1b_ref[l]                 # (BS, MLP) f32, LN2-beta folded
        f2w = f2w_ref[l]                 # (MLP, H) bf16
        f2b = f2b_ref[l]                 # (BS, H) f32

        for lv in range(NUM_LEVELS):     # static unroll over levels
            x = x + levs[lv]

            # ----- attention sub-block (LN1 folded into wqkv/bqkv) -----
            h = x
            xn = _ln_norm(x)
            qkv = jnp.dot(xn.astype(MXU_DTYPE), wqkv,
                          preferred_element_type=jnp.float32) + bqkv        # (BS, 3H) f32

            # head-batched layout: rows are head-major (head*BS + token), cols = head_dim
            q = jnp.concatenate(
                [qkv[:, hh * HEAD_DIM:(hh + 1) * HEAD_DIM]
                 for hh in range(NUM_HEADS)], axis=0).astype(MXU_DTYPE)     # (NH*BS, d)
            k = jnp.concatenate(
                [qkv[:, HIDDEN + hh * HEAD_DIM: HIDDEN + (hh + 1) * HEAD_DIM]
                 for hh in range(NUM_HEADS)], axis=0).astype(MXU_DTYPE)
            v = jnp.concatenate(
                [qkv[:, 2 * HIDDEN + hh * HEAD_DIM: 2 * HIDDEN + (hh + 1) * HEAD_DIM]
                 for hh in range(NUM_HEADS)], axis=0).astype(MXU_DTYPE)

            # ONE score matmul for all heads/batches; invalid (cross-head /
            # cross-batch) pairs are masked out additively.
            s = jax.lax.dot_general(q, k, (((1,), (1,)), ((), ())),
                                    preferred_element_type=jnp.float32)     # (NH*BS, NH*BS)
            s = s + amask
            s = s - jnp.max(s, axis=-1, keepdims=True)
            p = jnp.exp(s)
            denom = jnp.sum(p, axis=-1, keepdims=True)
            if APPROX_SOFTMAX_RECIP:
                p = p * pl.reciprocal(denom, approx=True)
            else:
                p = p / denom

            # ONE context matmul, then restitch heads back onto lanes.
            ctx = jnp.dot(p.astype(MXU_DTYPE), v,
                          preferred_element_type=jnp.float32)               # (NH*BS, d)
            ctx = jnp.concatenate(
                [ctx[hh * BS:(hh + 1) * BS, :] for hh in range(NUM_HEADS)],
                axis=1)                                                     # (BS, H)

            x = jnp.dot(ctx.astype(MXU_DTYPE), wo,
                        preferred_element_type=jnp.float32) + bo + h

            # ----- MLP sub-block (LN2 folded into f1w/f1b) -----
            h = x
            xn = _ln_norm(x)
            y = jnp.dot(xn.astype(MXU_DTYPE), f1w,
                        preferred_element_type=jnp.float32) + f1b
            y = _gelu_exact(y)
            x = jnp.dot(y.astype(MXU_DTYPE), f2w,
                        preferred_element_type=jnp.float32) + f2b + h

    # final encoder LayerNorm keeps its own gamma/beta
    out_ref[...] = _ln_norm(x) * fng_ref[...] + fnb_ref[...]


# ----------------------------- wrapper ----------------------------------------
def encoder_forward(hidden_states, lev_embed, p):
    scale = 1.0 / math.sqrt(HEAD_DIM)

    # fuse Q/K/V weights (1/sqrt(d) folded into Q) -> one (H, 3H) matmul per step
    wqkv = jnp.concatenate([p['qw'] * scale, p['kw'], p['vw']], axis=-1)     # (L, H, 3H)
    bqkv = jnp.concatenate([p['qb'] * scale, p['kb'], p['vb']], axis=-1)     # (L, 1, 3H)

    # fold LN1 gamma/beta into the fused QKV projection:
    #   LN1(x) @ W + b  ==  norm(x) @ (g ⊙rows W) + (beta @ W + b)
    wqkv_f = p['ln1g'][:, 0, :, None] * wqkv                                 # (L, H, 3H)
    bqkv_f = jnp.einsum('loh,lhk->lok', p['ln1b'], wqkv) + bqkv              # (L, 1, 3H)

    # fold LN2 gamma/beta into FC1
    f1w_f = p['ln2g'][:, 0, :, None] * p['f1w']                              # (L, H, MLP)
    f1b_f = jnp.einsum('loh,lhm->lom', p['ln2b'], p['f1w']) + p['f1b']       # (L, 1, MLP)

    # pre-broadcast biases to (L, BS, .) so the unrolled kernel does not
    # re-emit broadcast_in_dim on every (layer, level) step
    bqkv_b = jnp.broadcast_to(bqkv_f, (NUM_LAYERS, BS, 3 * HIDDEN))
    bo_b = jnp.broadcast_to(p['ob'], (NUM_LAYERS, BS, HIDDEN))
    f1b_b = jnp.broadcast_to(f1b_f, (NUM_LAYERS, BS, MLP_DIM))
    f2b_b = jnp.broadcast_to(p['f2b'], (NUM_LAYERS, BS, HIDDEN))

    # MXU operand weights in bf16 (f32 accumulation inside the kernel)
    wqkv_c = wqkv_f.astype(MXU_DTYPE)
    wo_c = p['ow'].astype(MXU_DTYPE)
    f1w_c = f1w_f.astype(MXU_DTYPE)
    f2w_c = p['f2w'].astype(MXU_DTYPE)

    # level table broadcast over batch in the flattened (B*S, H) token order
    lev2 = jnp.tile(lev_embed, (1, B, 1))                                    # (NL, B*S, H)

    # additive block-diagonal mask for head-batched attention (head ⊗ batch):
    # row/col index t = head*BS + token ; token's batch = (t % BS) // SEQ
    t = jnp.arange(NUM_HEADS * BS)
    head = t // BS
    batch = (t % BS) // SEQ
    same = (head[:, None] == head[None, :]) & (batch[:, None] == batch[None, :])
    amask = jnp.where(same, 0.0, -1e30).astype(jnp.float32)                  # (NH*BS, NH*BS)

    x2 = hidden_states.reshape(BS, HIDDEN).astype(jnp.float32)

    out2 = pl.pallas_call(
        encoder_kernel,
        out_shape=jax.ShapeDtypeStruct((BS, HIDDEN), jnp.float32),
        # state input 0 aliases output 0: no separate HBM output allocation
        input_output_aliases={0: 0},
        # gridless call: every operand is a whole-array VMEM-resident block
        # (total footprint ~0.2 MiB; see TODO at top for real-size scaling)
    )(x2, lev2, amask,
      wqkv_c, bqkv_b, wo_c, bo_b,
      f1w_c, f1b_b, f2w_c, f2b_b,
      p['fng'], p['fnb'])
    return out2.reshape(B, SEQ, HIDDEN)


# ----------------------------- parameters / level table -----------------------
def make_level_embed(num_levels, seq, hidden):
    # 'static' LevelEncoding sinusoidal table (exact formula from the module)
    i = jnp.arange(1, seq + 1, dtype=jnp.float32)[:, None]       # patch index
    k = jnp.arange(1, hidden + 1, dtype=jnp.float32)[None, :]    # channel index
    div = jnp.power(10000.0, 2.0 * k / hidden)
    k_even = (jnp.arange(1, hidden + 1) % 2 == 0)[None, :]
    tables = []
    for j in range(1, num_levels + 1):
        even = jnp.sin(i / div) + jnp.sin(float(j) / div)
        odd = jnp.cos(i / div) + jnp.cos(float(j) / div)
        tables.append(jnp.where(k_even, even, odd))
    return jnp.stack(tables, axis=0)                             # (num_levels, S, H)


def make_params(key):
    ks = jax.random.split(key, 18)
    n = lambda k, shape, s: (jax.random.normal(k, shape, jnp.float32) * s)
    # non-trivial LayerNorm gamma/beta so the wrapper-side folding is actually exercised
    p = {
        'ln1g': 1.0 + n(ks[12], (NUM_LAYERS, 1, HIDDEN), 0.1),
        'ln1b': n(ks[13], (NUM_LAYERS, 1, HIDDEN), 0.05),
        'qw': n(ks[0], (NUM_LAYERS, HIDDEN, HIDDEN), 0.05),
        'qb': n(ks[1], (NUM_LAYERS, 1, HIDDEN), 0.01),
        'kw': n(ks[2], (NUM_LAYERS, HIDDEN, HIDDEN), 0.05),
        'kb': n(ks[3], (NUM_LAYERS, 1, HIDDEN), 0.01),
        'vw': n(ks[4], (NUM_LAYERS, HIDDEN, HIDDEN), 0.05),
        'vb': n(ks[5], (NUM_LAYERS, 1, HIDDEN), 0.01),
        'ow': n(ks[6], (NUM_LAYERS, HIDDEN, HIDDEN), 0.05),
        'ob': n(ks[7], (NUM_LAYERS, 1, HIDDEN), 0.01),
        'ln2g': 1.0 + n(ks[14], (NUM_LAYERS, 1, HIDDEN), 0.1),
        'ln2b': n(ks[15], (NUM_LAYERS, 1, HIDDEN), 0.05),
        'f1w': n(ks[8], (NUM_LAYERS, HIDDEN, MLP_DIM), 0.05),
        'f1b': n(ks[9], (NUM_LAYERS, 1, MLP_DIM), 1e-3),
        'f2w': n(ks[10], (NUM_LAYERS, MLP_DIM, HIDDEN), 0.05),
        'f2b': n(ks[11], (NUM_LAYERS, 1, HIDDEN), 1e-3),
        'fng': 1.0 + n(ks[16], (1, HIDDEN), 0.1),
        'fnb': n(ks[17], (1, HIDDEN), 0.05),
    }
    return p


# ----------------------------- pure-JAX reference (for verification) ----------
def reference_encoder(x, lev_embed, p):
    def ln(v, g, b):
        mu = v.mean(-1, keepdims=True)
        var = ((v - mu) ** 2).mean(-1, keepdims=True)
        return (v - mu) / jnp.sqrt(var + LN_EPS) * g + b

    out = x
    for l in range(NUM_LAYERS):
        for lv in range(NUM_LEVELS):
            out = out + lev_embed[lv]
            # attention block
            h = out
            xn = ln(out, p['ln1g'][l, 0], p['ln1b'][l, 0])
            q = xn @ p['qw'][l] + p['qb'][l, 0]
            k = xn @ p['kw'][l] + p['kb'][l, 0]
            v = xn @ p['vw'][l] + p['vb'][l, 0]
            qh = q.reshape(B, SEQ, NUM_HEADS, HEAD_DIM).transpose(0, 2, 1, 3)
            kh = k.reshape(B, SEQ, NUM_HEADS, HEAD_DIM).transpose(0, 2, 1, 3)
            vh = v.reshape(B, SEQ, NUM_HEADS, HEAD_DIM).transpose(0, 2, 1, 3)
            s = jnp.einsum('bhqd,bhkd->bhqk', qh, kh) / math.sqrt(HEAD_DIM)
            pattn = jax.nn.softmax(s, axis=-1)
            ctx = jnp.einsum('bhqk,bhkd->bhqd', pattn, vh)
            ctx = ctx.transpose(0, 2, 1, 3).reshape(B, SEQ, HIDDEN)
            attn_out = ctx @ p['ow'][l] + p['ob'][l, 0]
            out = attn_out + h
            # mlp block
            h = out
            xn = ln(out, p['ln2g'][l, 0], p['ln2b'][l, 0])
            y = xn @ p['f1w'][l] + p['f1b'][l, 0]
            y = 0.5 * y * (1.0 + jax.lax.erf(y / math.sqrt(2.0)))
            z = y @ p['f2w'][l] + p['f2b'][l, 0]
            out = z + h
    return ln(out, p['fng'][0], p['fnb'][0])


# ----------------------------- main --------------------------------------------
if __name__ == "__main__":
    key = jax.random.PRNGKey(0)
    k_in, k_par = jax.random.split(key)
    hidden_states = jax.random.normal(k_in, (B, SEQ, HIDDEN), jnp.float32)
    lev_embed = make_level_embed(NUM_LEVELS, SEQ, HIDDEN)
    params = make_params(k_par)

    encoded = jax.jit(encoder_forward)(hidden_states, lev_embed, params)
    encoded = jax.block_until_ready(encoded)

    ref = reference_encoder(hidden_states, lev_embed, params)
    assert encoded.shape == (B, SEQ, HIDDEN)
    max_diff = float(jnp.max(jnp.abs(encoded - ref)))
    # bf16 MXU operands (+ approx softmax reciprocal) => slightly relaxed check;
    # set MXU_DTYPE = jnp.float32 / APPROX_SOFTMAX_RECIP = False for 2e-3.
    tol = 2e-3 if (MXU_DTYPE == jnp.float32 and not APPROX_SOFTMAX_RECIP) else 2e-2
    assert jnp.allclose(encoded, ref, atol=tol, rtol=tol), f"max abs diff {max_diff}"

    print("KERNEL_OK")
</pallas_src>

<mosaic_0001>
module attributes {stable_mosaic.version = 11 : i64} {
  func.func @encoder_kernel(%arg0: memref<10x32xf32, #tpu.memory_space<vmem>>, %arg1: memref<2x10x32xf32, #tpu.memory_space<vmem>>, %arg2: memref<40x40xf32, #tpu.memory_space<vmem>>, %arg3: memref<2x32x96xbf16, #tpu.memory_space<vmem>>, %arg4: memref<2x10x96xf32, #tpu.memory_space<vmem>>, %arg5: memref<2x32x32xbf16, #tpu.memory_space<vmem>>, %arg6: memref<2x10x32xf32, #tpu.memory_space<vmem>>, %arg7: memref<2x32x64xbf16, #tpu.memory_space<vmem>>, %arg8: memref<2x10x64xf32, #tpu.memory_space<vmem>>, %arg9: memref<2x64x32xbf16, #tpu.memory_space<vmem>>, %arg10: memref<2x10x32xf32, #tpu.memory_space<vmem>>, %arg11: memref<1x32xf32, #tpu.memory_space<vmem>>, %arg12: memref<1x32xf32, #tpu.memory_space<vmem>>, %arg13: memref<10x32xf32, #tpu.memory_space<vmem>>) attributes {dimension_semantics = [], scalar_prefetch = 0 : i64, scratch_operands = 0 : i64, tpu.core_type = #tpu.core_type<tc>} {
    %c0 = arith.constant 0 : index
    %c0_0 = arith.constant 0 : index
    %0 = vector.load %arg0[%c0, %c0_0] : memref<10x32xf32, #tpu.memory_space<vmem>>, vector<10x32xf32>
    %c0_1 = arith.constant 0 : index
    %c0_2 = arith.constant 0 : index
    %1 = vector.load %arg2[%c0_1, %c0_2] : memref<40x40xf32, #tpu.memory_space<vmem>>, vector<40x40xf32>
    %c0_3 = arith.constant 0 : index
    %c0_4 = arith.constant 0 : index
    %c0_5 = arith.constant 0 : index
    %2 = vector.load %arg1[%c0_3, %c0_4, %c0_5] : memref<2x10x32xf32, #tpu.memory_space<vmem>>, vector<1x10x32xf32>
    %3 = vector.shape_cast %2 : vector<1x10x32xf32> to vector<10x32xf32>
    %c1 = arith.constant 1 : index
    %c0_6 = arith.constant 0 : index
    %c0_7 = arith.constant 0 : index
    %4 = vector.load %arg1[%c1, %c0_6, %c0_7] : memref<2x10x32xf32, #tpu.memory_space<vmem>>, vector<1x10x32xf32>
    %5 = vector.shape_cast %4 : vector<1x10x32xf32> to vector<10x32xf32>
    %c0_8 = arith.constant 0 : index
    %c0_9 = arith.constant 0 : index
    %c0_10 = arith.constant 0 : index
    %6 = vector.load %arg3[%c0_8, %c0_9, %c0_10] : memref<2x32x96xbf16, #tpu.memory_space<vmem>>, vector<1x32x96xbf16>
    %7 = vector.shape_cast %6 : vector<1x32x96xbf16> to vector<32x96xbf16>
    %c0_11 = arith.constant 0 : index
    %c0_12 = arith.constant 0 : index
    %c0_13 = arith.constant 0 : index
    %8 = vector.load %arg4[%c0_11, %c0_12, %c0_13] : memref<2x10x96xf32, #tpu.memory_space<vmem>>, vector<1x10x96xf32>
    %9 = vector.shape_cast %8 : vector<1x10x96xf32> to vector<10x96xf32>
    %c0_14 = arith.constant 0 : index
    %c0_15 = arith.constant 0 : index
    %c0_16 = arith.constant 0 : index
    %10 = vector.load %arg5[%c0_14, %c0_15, %c0_16] : memref<2x32x32xbf16, #tpu.memory_space<vmem>>, vector<1x32x32xbf16>
    %11 = vector.shape_cast %10 : vector<1x32x32xbf16> to vector<32x32xbf16>
    %c0_17 = arith.constant 0 : index
    %c0_18 = arith.constant 0 : index
    %c0_19 = arith.constant 0 : index
    %12 = vector.load %arg6[%c0_17, %c0_18, %c0_19] : memref<2x10x32xf32, #tpu.memory_space<vmem>>, vector<1x10x32xf32>
    %13 = vector.shape_cast %12 : vector<1x10x32xf32> to vector<10x32xf32>
    %c0_20 = arith.constant 0 : index
    %c0_21 = arith.constant 0 : index
    %c0_22 = arith.constant 0 : index
    %14 = vector.load %arg7[%c0_20, %c0_21, %c0_22] : memref<2x32x64xbf16, #tpu.memory_space<vmem>>, vector<1x32x64xbf16>
    %15 = vector.shape_cast %14 : vector<1x32x64xbf16> to vector<32x64xbf16>
    %c0_23 = arith.constant 0 : index
    %c0_24 = arith.constant 0 : index
    %c0_25 = arith.constant 0 : index
    %16 = vector.load %arg8[%c0_23, %c0_24, %c0_25] : memref<2x10x64xf32, #tpu.memory_space<vmem>>, vector<1x10x64xf32>
    %17 = vector.shape_cast %16 : vector<1x10x64xf32> to vector<10x64xf32>
    %c0_26 = arith.constant 0 : index
    %c0_27 = arith.constant 0 : index
    %c0_28 = arith.constant 0 : index
    %18 = vector.load %arg9[%c0_26, %c0_27, %c0_28] : memref<2x64x32xbf16, #tpu.memory_space<vmem>>, vector<1x64x32xbf16>
    %19 = vector.shape_cast %18 : vector<1x64x32xbf16> to vector<64x32xbf16>
    %c0_29 = arith.constant 0 : index
    %c0_30 = arith.constant 0 : index
    %c0_31 = arith.constant 0 : index
    %20 = vector.load %arg10[%c0_29, %c0_30, %c0_31] : memref<2x10x32xf32, #tpu.memory_space<vmem>>, vector<1x10x32xf32>
    %21 = vector.shape_cast %20 : vector<1x10x32xf32> to vector<10x32xf32>
    %22 = arith.addf %0, %3 : vector<10x32xf32>
    %cst = arith.constant dense<0.000000e+00> : vector<10xf32>
    %23 = vector.multi_reduction <add>, %22, %cst [1] : vector<10x32xf32> to vector<10xf32>
    %24 = vector.shape_cast %23 : vector<10xf32> to vector<10x1xf32>
    %25 = arith.mulf %22, %22 : vector<10x32xf32>
    %cst_32 = arith.constant dense<0.000000e+00> : vector<10xf32>
    %26 = vector.multi_reduction <add>, %25, %cst_32 [1] : vector<10x32xf32> to vector<10xf32>
    %27 = vector.shape_cast %26 : vector<10xf32> to vector<10x1xf32>
    %cst_33 = arith.constant 3.125000e-02 : f32
    %28 = vector.broadcast %cst_33 : f32 to vector<10x1xf32>
    %29 = arith.mulf %24, %28 : vector<10x1xf32>
    %cst_34 = arith.constant 3.125000e-02 : f32
    %30 = vector.broadcast %cst_34 : f32 to vector<10x1xf32>
    %31 = arith.mulf %27, %30 : vector<10x1xf32>
    %32 = arith.mulf %29, %29 : vector<10x1xf32>
    %33 = arith.subf %31, %32 : vector<10x1xf32>
    %34 = vector.broadcast %29 : vector<10x1xf32> to vector<10x32xf32>
    %35 = arith.subf %22, %34 : vector<10x32xf32>
    %cst_35 = arith.constant 9.99999997E-7 : f32
    %36 = vector.broadcast %cst_35 : f32 to vector<10x1xf32>
    %37 = arith.addf %33, %36 : vector<10x1xf32>
    %38 = math.rsqrt %37 : vector<10x1xf32>
    %39 = vector.broadcast %38 : vector<10x1xf32> to vector<10x32xf32>
    %40 = arith.mulf %35, %39 : vector<10x32xf32>
    %41 = arith.truncf %40 : vector<10x32xf32> to vector<10x32xbf16>
    %cst_36 = arith.constant dense<0.000000e+00> : vector<10x96xf32>
    %42 = tpu.matmul %41, %7, %cst_36 {dimension_numbers = #tpu.dot_dimension_numbers<[1], [0], [0], [1], [0, 0, 1, 1], [], []>} : vector<10x32xbf16>, vector<32x96xbf16>, vector<10x96xf32> -> vector<10x96xf32>
    %43 = arith.addf %42, %9 : vector<10x96xf32>
    %44 = vector.extract_strided_slice %43 {offsets = [0, 0], sizes = [10, 8], strides = [1, 1]} : vector<10x96xf32> to vector<10x8xf32>
    %45 = vector.extract_strided_slice %43 {offsets = [0, 8], sizes = [10, 8], strides = [1, 1]} : vector<10x96xf32> to vector<10x8xf32>
    %46 = vector.extract_strided_slice %43 {offsets = [0, 16], sizes = [10, 8], strides = [1, 1]} : vector<10x96xf32> to vector<10x8xf32>
    %47 = vector.extract_strided_slice %43 {offsets = [0, 24], sizes = [10, 8], strides = [1, 1]} : vector<10x96xf32> to vector<10x8xf32>
    %48 = tpu.concatenate %44, %45, %46, %47 in 0 : vector<10x8xf32>, vector<10x8xf32>, vector<10x8xf32>, vector<10x8xf32> -> vector<40x8xf32>
    %49 = arith.truncf %48 : vector<40x8xf32> to vector<40x8xbf16>
    %50 = vector.extract_strided_slice %43 {offsets = [0, 32], sizes = [10, 8], strides = [1, 1]} : vector<10x96xf32> to vector<10x8xf32>
    %51 = vector.extract_strided_slice %43 {offsets = [0, 40], sizes = [10, 8], strides = [1, 1]} : vector<10x96xf32> to vector<10x8xf32>
    %52 = vector.extract_strided_slice %43 {offsets = [0, 48], sizes = [10, 8], strides = [1, 1]} : vector<10x96xf32> to vector<10x8xf32>
    %53 = vector.extract_strided_slice %43 {offsets = [0, 56], sizes = [10, 8], strides = [1, 1]} : vector<10x96xf32> to vector<10x8xf32>
    %54 = tpu.concatenate %50, %51, %52, %53 in 0 : vector<10x8xf32>, vector<10x8xf32>, vector<10x8xf32>, vector<10x8xf32> -> vector<40x8xf32>
    %55 = arith.truncf %54 : vector<40x8xf32> to vector<40x8xbf16>
    %56 = vector.extract_strided_slice %43 {offsets = [0, 64], sizes = [10, 8], strides = [1, 1]} : vector<10x96xf32> to vector<10x8xf32>
    %57 = vector.extract_strided_slice %43 {offsets = [0, 72], sizes = [10, 8], strides = [1, 1]} : vector<10x96xf32> to vector<10x8xf32>
    %58 = vector.extract_strided_slice %43 {offsets = [0, 80], sizes = [10, 8], strides = [1, 1]} : vector<10x96xf32> to vector<10x8xf32>
    %59 = vector.extract_strided_slice %43 {offsets = [0, 88], sizes = [10, 8], strides = [1, 1]} : vector<10x96xf32> to vector<10x8xf32>
    %60 = tpu.concatenate %56, %57, %58, %59 in 0 : vector<10x8xf32>, vector<10x8xf32>, vector<10x8xf32>, vector<10x8xf32> -> vector<40x8xf32>
    %61 = arith.truncf %60 : vector<40x8xf32> to vector<40x8xbf16>
    %cst_37 = arith.constant dense<0.000000e+00> : vector<40x40xf32>
    %62 = tpu.matmul %49, %55, %cst_37 {dimension_numbers = #tpu.dot_dimension_numbers<[1], [1], [0], [0], [0, 0, 1, 0], [], []>} : vector<40x8xbf16>, vector<40x8xbf16>, vector<40x40xf32> -> vector<40x40xf32>
    %63 = arith.addf %62, %1 : vector<40x40xf32>
    %cst_38 = arith.constant dense<0xFF800000> : vector<40xf32>
    %64 = vector.multi_reduction <maximumf>, %63, %cst_38 [1] : vector<40x40xf32> to vector<40xf32>
    %65 = vector.shape_cast %64 : vector<40xf32> to vector<40x1xf32>
    %66 = vector.broadcast %65 : vector<40x1xf32> to vector<40x40xf32>
    %67 = arith.subf %63, %66 : vector<40x40xf32>
    %68 = math.exp %67 : vector<40x40xf32>
    %cst_39 = arith.constant dense<0.000000e+00> : vector<40xf32>
    %69 = vector.multi_reduction <add>, %68, %cst_39 [1] : vector<40x40xf32> to vector<40xf32>
    %70 = vector.shape_cast %69 : vector<40xf32> to vector<40x1xf32>
    %71 = tpu.reciprocal %70 {approx = true} : vector<40x1xf32> -> vector<40x1xf32>
    %72 = vector.broadcast %71 : vector<40x1xf32> to vector<40x40xf32>
    %73 = arith.mulf %68, %72 : vector<40x40xf32>
    %74 = arith.truncf %73 : vector<40x40xf32> to vector<40x40xbf16>
    %cst_40 = arith.constant dense<0.000000e+00> : vector<40x8xf32>
    %75 = tpu.matmul %74, %61, %cst_40 {dimension_numbers = #tpu.dot_dimension_numbers<[1], [0], [0], [1], [0, 0, 1, 1], [], []>} : vector<40x40xbf16>, vector<40x8xbf16>, vector<40x8xf32> -> vector<40x8xf32>
    %76 = vector.extract_strided_slice %75 {offsets = [0, 0], sizes = [10, 8], strides = [1, 1]} : vector<40x8xf32> to vector<10x8xf32>
    %77 = vector.extract_strided_slice %75 {offsets = [10, 0], sizes = [10, 8], strides = [1, 1]} : vector<40x8xf32> to vector<10x8xf32>
    %78 = vector.extract_strided_slice %75 {offsets = [20, 0], sizes = [10, 8], strides = [1, 1]} : vector<40x8xf32> to vector<10x8xf32>
    %79 = vector.extract_strided_slice %75 {offsets = [30, 0], sizes = [10, 8], strides = [1, 1]} : vector<40x8xf32> to vector<10x8xf32>
    %80 = tpu.concatenate %76, %77, %78, %79 in 1 : vector<10x8xf32>, vector<10x8xf32>, vector<10x8xf32>, vector<10x8xf32> -> vector<10x32xf32>
    %81 = arith.truncf %80 : vector<10x32xf32> to vector<10x32xbf16>
    %cst_41 = arith.constant dense<0.000000e+00> : vector<10x32xf32>
    %82 = tpu.matmul %81, %11, %cst_41 {dimension_numbers = #tpu.dot_dimension_numbers<[1], [0], [0], [1], [0, 0, 1, 1], [], []>} : vector<10x32xbf16>, vector<32x32xbf16>, vector<10x32xf32> -> vector<10x32xf32>
    %83 = arith.addf %82, %13 : vector<10x32xf32>
    %84 = arith.addf %83, %22 : vector<10x32xf32>
    %cst_42 = arith.constant dense<0.000000e+00> : vector<10xf32>
    %85 = vector.multi_reduction <add>, %84, %cst_42 [1] : vector<10x32xf32> to vector<10xf32>
    %86 = vector.shape_cast %85 : vector<10xf32> to vector<10x1xf32>
    %87 = arith.mulf %84, %84 : vector<10x32xf32>
    %cst_43 = arith.constant dense<0.000000e+00> : vector<10xf32>
    %88 = vector.multi_reduction <add>, %87, %cst_43 [1] : vector<10x32xf32> to vector<10xf32>
    %89 = vector.shape_cast %88 : vector<10xf32> to vector<10x1xf32>
    %cst_44 = arith.constant 3.125000e-02 : f32
    %90 = vector.broadcast %cst_44 : f32 to vector<10x1xf32>
    %91 = arith.mulf %86, %90 : vector<10x1xf32>
    %cst_45 = arith.constant 3.125000e-02 : f32
    %92 = vector.broadcast %cst_45 : f32 to vector<10x1xf32>
    %93 = arith.mulf %89, %92 : vector<10x1xf32>
    %94 = arith.mulf %91, %91 : vector<10x1xf32>
    %95 = arith.subf %93, %94 : vector<10x1xf32>
    %96 = vector.broadcast %91 : vector<10x1xf32> to vector<10x32xf32>
    %97 = arith.subf %84, %96 : vector<10x32xf32>
    %cst_46 = arith.constant 9.99999997E-7 : f32
    %98 = vector.broadcast %cst_46 : f32 to vector<10x1xf32>
    %99 = arith.addf %95, %98 : vector<10x1xf32>
    %100 = math.rsqrt %99 : vector<10x1xf32>
    %101 = vector.broadcast %100 : vector<10x1xf32> to vector<10x32xf32>
    %102 = arith.mulf %97, %101 : vector<10x32xf32>
    %103 = arith.truncf %102 : vector<10x32xf32> to vector<10x32xbf16>
    %cst_47 = arith.constant dense<0.000000e+00> : vector<10x64xf32>
    %104 = tpu.matmul %103, %15, %cst_47 {dimension_numbers = #tpu.dot_dimension_numbers<[1], [0], [0], [1], [0, 0, 1, 1], [], []>} : vector<10x32xbf16>, vector<32x64xbf16>, vector<10x64xf32> -> vector<10x64xf32>
    %105 = arith.addf %104, %17 : vector<10x64xf32>
    %cst_48 = arith.constant 5.000000e-01 : f32
    %106 = vector.broadcast %cst_48 : f32 to vector<10x64xf32>
    %107 = arith.mulf %106, %105 : vector<10x64xf32>
    %cst_49 = arith.constant 0.707106769 : f32
    %108 = vector.broadcast %cst_49 : f32 to vector<10x64xf32>
    %109 = arith.mulf %105, %108 : vector<10x64xf32>
    %110 = math.erf %109 : vector<10x64xf32>
    %cst_50 = arith.constant 1.000000e+00 : f32
    %111 = vector.broadcast %cst_50 : f32 to vector<10x64xf32>
    %112 = arith.addf %111, %110 : vector<10x64xf32>
    %113 = arith.mulf %107, %112 : vector<10x64xf32>
    %114 = arith.truncf %113 : vector<10x64xf32> to vector<10x64xbf16>
    %cst_51 = arith.constant dense<0.000000e+00> : vector<10x32xf32>
    %115 = tpu.matmul %114, %19, %cst_51 {dimension_numbers = #tpu.dot_dimension_numbers<[1], [0], [0], [1], [0, 0, 1, 1], [], []>} : vector<10x64xbf16>, vector<64x32xbf16>, vector<10x32xf32> -> vector<10x32xf32>
    %116 = arith.addf %115, %21 : vector<10x32xf32>
    %117 = arith.addf %116, %84 : vector<10x32xf32>
    %118 = arith.addf %117, %5 : vector<10x32xf32>
    %cst_52 = arith.constant dense<0.000000e+00> : vector<10xf32>
    %119 = vector.multi_reduction <add>, %118, %cst_52 [1] : vector<10x32xf32> to vector<10xf32>
    %120 = vector.shape_cast %119 : vector<10xf32> to vector<10x1xf32>
    %121 = arith.mulf %118, %118 : vector<10x32xf32>
    %cst_53 = arith.constant dense<0.000000e+00> : vector<10xf32>
    %122 = vector.multi_reduction <add>, %121, %cst_53 [1] : vector<10x32xf32> to vector<10xf32>
    %123 = vector.shape_cast %122 : vector<10xf32> to vector<10x1xf32>
    %cst_54 = arith.constant 3.125000e-02 : f32
    %124 = vector.broadcast %cst_54 : f32 to vector<10x1xf32>
    %125 = arith.mulf %120, %124 : vector<10x1xf32>
    %cst_55 = arith.constant 3.125000e-02 : f32
    %126 = vector.broadcast %cst_55 : f32 to vector<10x1xf32>
    %127 = arith.mulf %123, %126 : vector<10x1xf32>
    %128 = arith.mulf %125, %125 : vector<10x1xf32>
    %129 = arith.subf %127, %128 : vector<10x1xf32>
    %130 = vector.broadcast %125 : vector<10x1xf32> to vector<10x32xf32>
    %131 = arith.subf %118, %130 : vector<10x32xf32>
    %cst_56 = arith.constant 9.99999997E-7 : f32
    %132 = vector.broadcast %cst_56 : f32 to vector<10x1xf32>
    %133 = arith.addf %129, %132 : vector<10x1xf32>
    %134 = math.rsqrt %133 : vector<10x1xf32>
    %135 = vector.broadcast %134 : vector<10x1xf32> to vector<10x32xf32>
    %136 = arith.mulf %131, %135 : vector<10x32xf32>
    %137 = arith.truncf %136 : vector<10x32xf32> to vector<10x32xbf16>
    %cst_57 = arith.constant dense<0.000000e+00> : vector<10x96xf32>
    %138 = tpu.matmul %137, %7, %cst_57 {dimension_numbers = #tpu.dot_dimension_numbers<[1], [0], [0], [1], [0, 0, 1, 1], [], []>} : vector<10x32xbf16>, vector<32x96xbf16>, vector<10x96xf32> -> vector<10x96xf32>
    %139 = arith.addf %138, %9 : vector<10x96xf32>
    %140 = vector.extract_strided_slice %139 {offsets = [0, 0], sizes = [10, 8], strides = [1, 1]} : vector<10x96xf32> to vector<10x8xf32>
    %141 = vector.extract_strided_slice %139 {offsets = [0, 8], sizes = [10, 8], strides = [1, 1]} : vector<10x96xf32> to vector<10x8xf32>
    %142 = vector.extract_strided_slice %139 {offsets = [0, 16], sizes = [10, 8], strides = [1, 1]} : vector<10x96xf32> to vector<10x8xf32>
    %143 = vector.extract_strided_slice %139 {offsets = [0, 24], sizes = [10, 8], strides = [1, 1]} : vector<10x96xf32> to vector<10x8xf32>
    %144 = tpu.concatenate %140, %141, %142, %143 in 0 : vector<10x8xf32>, vector<10x8xf32>, vector<10x8xf32>, vector<10x8xf32> -> vector<40x8xf32>
    %145 = arith.truncf %144 : vector<40x8xf32> to vector<40x8xbf16>
    %146 = vector.extract_strided_slice %139 {offsets = [0, 32], sizes = [10, 8], strides = [1, 1]} : vector<10x96xf32> to vector<10x8xf32>
    %147 = vector.extract_strided_slice %139 {offsets = [0, 40], sizes = [10, 8], strides = [1, 1]} : vector<10x96xf32> to vector<10x8xf32>
    %148 = vector.extract_strided_slice %139 {offsets = [0, 48], sizes = [10, 8], strides = [1, 1]} : vector<10x96xf32> to vector<10x8xf32>
    %149 = vector.extract_strided_slice %139 {offsets = [0, 56], sizes = [10, 8], strides = [1, 1]} : vector<10x96xf32> to vector<10x8xf32>
    %150 = tpu.concatenate %146, %147, %148, %149 in 0 : vector<10x8xf32>, vector<10x8xf32>, vector<10x8xf32>, vector<10x8xf32> -> vector<40x8xf32>
    %151 = arith.truncf %150 : vector<40x8xf32> to vector<40x8xbf16>
    %152 = vector.extract_strided_slice %139 {offsets = [0, 64], sizes = [10, 8], strides = [1, 1]} : vector<10x96xf32> to vector<10x8xf32>
    %153 = vector.extract_strided_slice %139 {offsets = [0, 72], sizes = [10, 8], strides = [1, 1]} : vector<10x96xf32> to vector<10x8xf32>
    %154 = vector.extract_strided_slice %139 {offsets = [0, 80], sizes = [10, 8], strides = [1, 1]} : vector<10x96xf32> to vector<10x8xf32>
    %155 = vector.extract_strided_slice %139 {offsets = [0, 88], sizes = [10, 8], strides = [1, 1]} : vector<10x96xf32> to vector<10x8xf32>
    %156 = tpu.concatenate %152, %153, %154, %155 in 0 : vector<10x8xf32>, vector<10x8xf32>, vector<10x8xf32>, vector<10x8xf32> -> vector<40x8xf32>
    %157 = arith.truncf %156 : vector<40x8xf32> to vector<40x8xbf16>
    %cst_58 = arith.constant dense<0.000000e+00> : vector<40x40xf32>
    %158 = tpu.matmul %145, %151, %cst_58 {dimension_numbers = #tpu.dot_dimension_numbers<[1], [1], [0], [0], [0, 0, 1, 0], [], []>} : vector<40x8xbf16>, vector<40x8xbf16>, vector<40x40xf32> -> vector<40x40xf32>
    %159 = arith.addf %158, %1 : vector<40x40xf32>
    %cst_59 = arith.constant dense<0xFF800000> : vector<40xf32>
    %160 = vector.multi_reduction <maximumf>, %159, %cst_59 [1] : vector<40x40xf32> to vector<40xf32>
    %161 = vector.shape_cast %160 : vector<40xf32> to vector<40x1xf32>
    %162 = vector.broadcast %161 : vector<40x1xf32> to vector<40x40xf32>
    %163 = arith.subf %159, %162 : vector<40x40xf32>
    %164 = math.exp %163 : vector<40x40xf32>
    %cst_60 = arith.constant dense<0.000000e+00> : vector<40xf32>
    %165 = vector.multi_reduction <add>, %164, %cst_60 [1] : vector<40x40xf32> to vector<40xf32>
    %166 = vector.shape_cast %165 : vector<40xf32> to vector<40x1xf32>
    %167 = tpu.reciprocal %166 {approx = true} : vector<40x1xf32> -> vector<40x1xf32>
    %168 = vector.broadcast %167 : vector<40x1xf32> to vector<40x40xf32>
    %169 = arith.mulf %164, %168 : vector<40x40xf32>
    %170 = arith.truncf %169 : vector<40x40xf32> to vector<40x40xbf16>
    %cst_61 = arith.constant dense<0.000000e+00> : vector<40x8xf32>
    %171 = tpu.matmul %170, %157, %cst_61 {dimension_numbers = #tpu.dot_dimension_numbers<[1], [0], [0], [1], [0, 0, 1, 1], [], []>} : vector<40x40xbf16>, vector<40x8xbf16>, vector<40x8xf32> -> vector<40x8xf32>
    %172 = vector.extract_strided_slice %171 {offsets = [0, 0], sizes = [10, 8], strides = [1, 1]} : vector<40x8xf32> to vector<10x8xf32>
    %173 = vector.extract_strided_slice %171 {offsets = [10, 0], sizes = [10, 8], strides = [1, 1]} : vector<40x8xf32> to vector<10x8xf32>
    %174 = vector.extract_strided_slice %171 {offsets = [20, 0], sizes = [10, 8], strides = [1, 1]} : vector<40x8xf32> to vector<10x8xf32>
    %175 = vector.extract_strided_slice %171 {offsets = [30, 0], sizes = [10, 8], strides = [1, 1]} : vector<40x8xf32> to vector<10x8xf32>
    %176 = tpu.concatenate %172, %173, %174, %175 in 1 : vector<10x8xf32>, vector<10x8xf32>, vector<10x8xf32>, vector<10x8xf32> -> vector<10x32xf32>
    %177 = arith.truncf %176 : vector<10x32xf32> to vector<10x32xbf16>
    %cst_62 = arith.constant dense<0.000000e+00> : vector<10x32xf32>
    %178 = tpu.matmul %177, %11, %cst_62 {dimension_numbers = #tpu.dot_dimension_numbers<[1], [0], [0], [1], [0, 0, 1, 1], [], []>} : vector<10x32xbf16>, vector<32x32xbf16>, vector<10x32xf32> -> vector<10x32xf32>
    %179 = arith.addf %178, %13 : vector<10x32xf32>
    %180 = arith.addf %179, %118 : vector<10x32xf32>
    %cst_63 = arith.constant dense<0.000000e+00> : vector<10xf32>
    %181 = vector.multi_reduction <add>, %180, %cst_63 [1] : vector<10x32xf32> to vector<10xf32>
    %182 = vector.shape_cast %181 : vector<10xf32> to vector<10x1xf32>
    %183 = arith.mulf %180, %180 : vector<10x32xf32>
    %cst_64 = arith.constant dense<0.000000e+00> : vector<10xf32>
    %184 = vector.multi_reduction <add>, %183, %cst_64 [1] : vector<10x32xf32> to vector<10xf32>
    %185 = vector.shape_cast %184 : vector<10xf32> to vector<10x1xf32>
    %cst_65 = arith.constant 3.125000e-02 : f32
    %186 = vector.broadcast %cst_65 : f32 to vector<10x1xf32>
    %187 = arith.mulf %182, %186 : vector<10x1xf32>
    %cst_66 = arith.constant 3.125000e-02 : f32
    %188 = vector.broadcast %cst_66 : f32 to vector<10x1xf32>
    %189 = arith.mulf %185, %188 : vector<10x1xf32>
    %190 = arith.mulf %187, %187 : vector<10x1xf32>
    %191 = arith.subf %189, %190 : vector<10x1xf32>
    %192 = vector.broadcast %187 : vector<10x1xf32> to vector<10x32xf32>
    %193 = arith.subf %180, %192 : vector<10x32xf32>
    %cst_67 = arith.constant 9.99999997E-7 : f32
    %194 = vector.broadcast %cst_67 : f32 to vector<10x1xf32>
    %195 = arith.addf %191, %194 : vector<10x1xf32>
    %196 = math.rsqrt %195 : vector<10x1xf32>
    %197 = vector.broadcast %196 : vector<10x1xf32> to vector<10x32xf32>
    %198 = arith.mulf %193, %197 : vector<10x32xf32>
    %199 = arith.truncf %198 : vector<10x32xf32> to vector<10x32xbf16>
    %cst_68 = arith.constant dense<0.000000e+00> : vector<10x64xf32>
    %200 = tpu.matmul %199, %15, %cst_68 {dimension_numbers = #tpu.dot_dimension_numbers<[1], [0], [0], [1], [0, 0, 1, 1], [], []>} : vector<10x32xbf16>, vector<32x64xbf16>, vector<10x64xf32> -> vector<10x64xf32>
    %201 = arith.addf %200, %17 : vector<10x64xf32>
    %cst_69 = arith.constant 5.000000e-01 : f32
    %202 = vector.broadcast %cst_69 : f32 to vector<10x64xf32>
    %203 = arith.mulf %202, %201 : vector<10x64xf32>
    %cst_70 = arith.constant 0.707106769 : f32
    %204 = vector.broadcast %cst_70 : f32 to vector<10x64xf32>
    %205 = arith.mulf %201, %204 : vector<10x64xf32>
    %206 = math.erf %205 : vector<10x64xf32>
    %cst_71 = arith.constant 1.000000e+00 : f32
    %207 = vector.broadcast %cst_71 : f32 to vector<10x64xf32>
    %208 = arith.addf %207, %206 : vector<10x64xf32>
    %209 = arith.mulf %203, %208 : vector<10x64xf32>
    %210 = arith.truncf %209 : vector<10x64xf32> to vector<10x64xbf16>
    %cst_72 = arith.constant dense<0.000000e+00> : vector<10x32xf32>
    %211 = tpu.matmul %210, %19, %cst_72 {dimension_numbers = #tpu.dot_dimension_numbers<[1], [0], [0], [1], [0, 0, 1, 1], [], []>} : vector<10x64xbf16>, vector<64x32xbf16>, vector<10x32xf32> -> vector<10x32xf32>
    %212 = arith.addf %211, %21 : vector<10x32xf32>
    %213 = arith.addf %212, %180 : vector<10x32xf32>
    %c1_73 = arith.constant 1 : index
    %c0_74 = arith.constant 0 : index
    %c0_75 = arith.constant 0 : index
    %214 = vector.load %arg3[%c1_73, %c0_74, %c0_75] : memref<2x32x96xbf16, #tpu.memory_space<vmem>>, vector<1x32x96xbf16>
    %215 = vector.shape_cast %214 : vector<1x32x96xbf16> to vector<32x96xbf16>
    %c1_76 = arith.constant 1 : index
    %c0_77 = arith.constant 0 : index
    %c0_78 = arith.constant 0 : index
    %216 = vector.load %arg4[%c1_76, %c0_77, %c0_78] : memref<2x10x96xf32, #tpu.memory_space<vmem>>, vector<1x10x96xf32>
    %217 = vector.shape_cast %216 : vector<1x10x96xf32> to vector<10x96xf32>
    %c1_79 = arith.constant 1 : index
    %c0_80 = arith.constant 0 : index
    %c0_81 = arith.constant 0 : index
    %218 = vector.load %arg5[%c1_79, %c0_80, %c0_81] : memref<2x32x32xbf16, #tpu.memory_space<vmem>>, vector<1x32x32xbf16>
    %219 = vector.shape_cast %218 : vector<1x32x32xbf16> to vector<32x32xbf16>
    %c1_82 = arith.constant 1 : index
    %c0_83 = arith.constant 0 : index
    %c0_84 = arith.constant 0 : index
    %220 = vector.load %arg6[%c1_82, %c0_83, %c0_84] : memref<2x10x32xf32, #tpu.memory_space<vmem>>, vector<1x10x32xf32>
    %221 = vector.shape_cast %220 : vector<1x10x32xf32> to vector<10x32xf32>
    %c1_85 = arith.constant 1 : index
    %c0_86 = arith.constant 0 : index
    %c0_87 = arith.constant 0 : index
    %222 = vector.load %arg7[%c1_85, %c0_86, %c0_87] : memref<2x32x64xbf16, #tpu.memory_space<vmem>>, vector<1x32x64xbf16>
    %223 = vector.shape_cast %222 : vector<1x32x64xbf16> to vector<32x64xbf16>
    %c1_88 = arith.constant 1 : index
    %c0_89 = arith.constant 0 : index
    %c0_90 = arith.constant 0 : index
    %224 = vector.load %arg8[%c1_88, %c0_89, %c0_90] : memref<2x10x64xf32, #tpu.memory_space<vmem>>, vector<1x10x64xf32>
    %225 = vector.shape_cast %224 : vector<1x10x64xf32> to vector<10x64xf32>
    %c1_91 = arith.constant 1 : index
    %c0_92 = arith.constant 0 : index
    %c0_93 = arith.constant 0 : index
    %226 = vector.load %arg9[%c1_91, %c0_92, %c0_93] : memref<2x64x32xbf16, #tpu.memory_space<vmem>>, vector<1x64x32xbf16>
    %227 = vector.shape_cast %226 : vector<1x64x32xbf16> to vector<64x32xbf16>
    %c1_94 = arith.constant 1 : index
    %c0_95 = arith.constant 0 : index
    %c0_96 = arith.constant 0 : index
    %228 = vector.load %arg10[%c1_94, %c0_95, %c0_96] : memref<2x10x32xf32, #tpu.memory_space<vmem>>, vector<1x10x32xf32>
    %229 = vector.shape_cast %228 : vector<1x10x32xf32> to vector<10x32xf32>
    %230 = arith.addf %213, %3 : vector<10x32xf32>
    %cst_97 = arith.constant dense<0.000000e+00> : vector<10xf32>
    %231 = vector.multi_reduction <add>, %230, %cst_97 [1] : vector<10x32xf32> to vector<10xf32>
    %232 = vector.shape_cast %231 : vector<10xf32> to vector<10x1xf32>
    %233 = arith.mulf %230, %230 : vector<10x32xf32>
    %cst_98 = arith.constant dense<0.000000e+00> : vector<10xf32>
    %234 = vector.multi_reduction <add>, %233, %cst_98 [1] : vector<10x32xf32> to vector<10xf32>
    %235 = vector.shape_cast %234 : vector<10xf32> to vector<10x1xf32>
    %cst_99 = arith.constant 3.125000e-02 : f32
    %236 = vector.broadcast %cst_99 : f32 to vector<10x1xf32>
    %237 = arith.mulf %232, %236 : vector<10x1xf32>
    %cst_100 = arith.constant 3.125000e-02 : f32
    %238 = vector.broadcast %cst_100 : f32 to vector<10x1xf32>
    %239 = arith.mulf %235, %238 : vector<10x1xf32>
    %240 = arith.mulf %237, %237 : vector<10x1xf32>
    %241 = arith.subf %239, %240 : vector<10x1xf32>
    %242 = vector.broadcast %237 : vector<10x1xf32> to vector<10x32xf32>
    %243 = arith.subf %230, %242 : vector<10x32xf32>
    %cst_101 = arith.constant 9.99999997E-7 : f32
    %244 = vector.broadcast %cst_101 : f32 to vector<10x1xf32>
    %245 = arith.addf %241, %244 : vector<10x1xf32>
    %246 = math.rsqrt %245 : vector<10x1xf32>
    %247 = vector.broadcast %246 : vector<10x1xf32> to vector<10x32xf32>
    %248 = arith.mulf %243, %247 : vector<10x32xf32>
    %249 = arith.truncf %248 : vector<10x32xf32> to vector<10x32xbf16>
    %cst_102 = arith.constant dense<0.000000e+00> : vector<10x96xf32>
    %250 = tpu.matmul %249, %215, %cst_102 {dimension_numbers = #tpu.dot_dimension_numbers<[1], [0], [0], [1], [0, 0, 1, 1], [], []>} : vector<10x32xbf16>, vector<32x96xbf16>, vector<10x96xf32> -> vector<10x96xf32>
    %251 = arith.addf %250, %217 : vector<10x96xf32>
    %252 = vector.extract_strided_slice %251 {offsets = [0, 0], sizes = [10, 8], strides = [1, 1]} : vector<10x96xf32> to vector<10x8xf32>
    %253 = vector.extract_strided_slice %251 {offsets = [0, 8], sizes = [10, 8], strides = [1, 1]} : vector<10x96xf32> to vector<10x8xf32>
    %254 = vector.extract_strided_slice %251 {offsets = [0, 16], sizes = [10, 8], strides = [1, 1]} : vector<10x96xf32> to vector<10x8xf32>
    %255 = vector.extract_strided_slice %251 {offsets = [0, 24], sizes = [10, 8], strides = [1, 1]} : vector<10x96xf32> to vector<10x8xf32>
    %256 = tpu.concatenate %252, %253, %254, %255 in 0 : vector<10x8xf32>, vector<10x8xf32>, vector<10x8xf32>, vector<10x8xf32> -> vector<40x8xf32>
    %257 = arith.truncf %256 : vector<40x8xf32> to vector<40x8xbf16>
    %258 = vector.extract_strided_slice %251 {offsets = [0, 32], sizes = [10, 8], strides = [1, 1]} : vector<10x96xf32> to vector<10x8xf32>
    %259 = vector.extract_strided_slice %251 {offsets = [0, 40], sizes = [10, 8], strides = [1, 1]} : vector<10x96xf32> to vector<10x8xf32>
    %260 = vector.extract_strided_slice %251 {offsets = [0, 48], sizes = [10, 8], strides = [1, 1]} : vector<10x96xf32> to vector<10x8xf32>
    %261 = vector.extract_strided_slice %251 {offsets = [0, 56], sizes = [10, 8], strides = [1, 1]} : vector<10x96xf32> to vector<10x8xf32>
    %262 = tpu.concatenate %258, %259, %260, %261 in 0 : vector<10x8xf32>, vector<10x8xf32>, vector<10x8xf32>, vector<10x8xf32> -> vector<40x8xf32>
    %263 = arith.truncf %262 : vector<40x8xf32> to vector<40x8xbf16>
    %264 = vector.extract_strided_slice %251 {offsets = [0, 64], sizes = [10, 8], strides = [1, 1]} : vector<10x96xf32> to vector<10x8xf32>
    %265 = vector.extract_strided_slice %251 {offsets = [0, 72], sizes = [10, 8], strides = [1, 1]} : vector<10x96xf32> to vector<10x8xf32>
    %266 = vector.extract_strided_slice %251 {offsets = [0, 80], sizes = [10, 8], strides = [1, 1]} : vector<10x96xf32> to vector<10x8xf32>
    %267 = vector.extract_strided_slice %251 {offsets = [0, 88], sizes = [10, 8], strides = [1, 1]} : vector<10x96xf32> to vector<10x8xf32>
    %268 = tpu.concatenate %264, %265, %266, %267 in 0 : vector<10x8xf32>, vector<10x8xf32>, vector<10x8xf32>, vector<10x8xf32> -> vector<40x8xf32>
    %269 = arith.truncf %268 : vector<40x8xf32> to vector<40x8xbf16>
    %cst_103 = arith.constant dense<0.000000e+00> : vector<40x40xf32>
    %270 = tpu.matmul %257, %263, %cst_103 {dimension_numbers = #tpu.dot_dimension_numbers<[1], [1], [0], [0], [0, 0, 1, 0], [], []>} : vector<40x8xbf16>, vector<40x8xbf16>, vector<40x40xf32> -> vector<40x40xf32>
    %271 = arith.addf %270, %1 : vector<40x40xf32>
    %cst_104 = arith.constant dense<0xFF800000> : vector<40xf32>
    %272 = vector.multi_reduction <maximumf>, %271, %cst_104 [1] : vector<40x40xf32> to vector<40xf32>
    %273 = vector.shape_cast %272 : vector<40xf32> to vector<40x1xf32>
    %274 = vector.broadcast %273 : vector<40x1xf32> to vector<40x40xf32>
    %275 = arith.subf %271, %274 : vector<40x40xf32>
    %276 = math.exp %275 : vector<40x40xf32>
    %cst_105 = arith.constant dense<0.000000e+00> : vector<40xf32>
    %277 = vector.multi_reduction <add>, %276, %cst_105 [1] : vector<40x40xf32> to vector<40xf32>
    %278 = vector.shape_cast %277 : vector<40xf32> to vector<40x1xf32>
    %279 = tpu.reciprocal %278 {approx = true} : vector<40x1xf32> -> vector<40x1xf32>
    %280 = vector.broadcast %279 : vector<40x1xf32> to vector<40x40xf32>
    %281 = arith.mulf %276, %280 : vector<40x40xf32>
    %282 = arith.truncf %281 : vector<40x40xf32> to vector<40x40xbf16>
    %cst_106 = arith.constant dense<0.000000e+00> : vector<40x8xf32>
    %283 = tpu.matmul %282, %269, %cst_106 {dimension_numbers = #tpu.dot_dimension_numbers<[1], [0], [0], [1], [0, 0, 1, 1], [], []>} : vector<40x40xbf16>, vector<40x8xbf16>, vector<40x8xf32> -> vector<40x8xf32>
    %284 = vector.extract_strided_slice %283 {offsets = [0, 0], sizes = [10, 8], strides = [1, 1]} : vector<40x8xf32> to vector<10x8xf32>
    %285 = vector.extract_strided_slice %283 {offsets = [10, 0], sizes = [10, 8], strides = [1, 1]} : vector<40x8xf32> to vector<10x8xf32>
    %286 = vector.extract_strided_slice %283 {offsets = [20, 0], sizes = [10, 8], strides = [1, 1]} : vector<40x8xf32> to vector<10x8xf32>
    %287 = vector.extract_strided_slice %283 {offsets = [30, 0], sizes = [10, 8], strides = [1, 1]} : vector<40x8xf32> to vector<10x8xf32>
    %288 = tpu.concatenate %284, %285, %286, %287 in 1 : vector<10x8xf32>, vector<10x8xf32>, vector<10x8xf32>, vector<10x8xf32> -> vector<10x32xf32>
    %289 = arith.truncf %288 : vector<10x32xf32> to vector<10x32xbf16>
    %cst_107 = arith.constant dense<0.000000e+00> : vector<10x32xf32>
    %290 = tpu.matmul %289, %219, %cst_107 {dimension_numbers = #tpu.dot_dimension_numbers<[1], [0], [0], [1], [0, 0, 1, 1], [], []>} : vector<10x32xbf16>, vector<32x32xbf16>, vector<10x32xf32> -> vector<10x32xf32>
    %291 = arith.addf %290, %221 : vector<10x32xf32>
    %292 = arith.addf %291, %230 : vector<10x32xf32>
    %cst_108 = arith.constant dense<0.000000e+00> : vector<10xf32>
    %293 = vector.multi_reduction <add>, %292, %cst_108 [1] : vector<10x32xf32> to vector<10xf32>
    %294 = vector.shape_cast %293 : vector<10xf32> to vector<10x1xf32>
    %295 = arith.mulf %292, %292 : vector<10x32xf32>
    %cst_109 = arith.constant dense<0.000000e+00> : vector<10xf32>
    %296 = vector.multi_reduction <add>, %295, %cst_109 [1] : vector<10x32xf32> to vector<10xf32>
    %297 = vector.shape_cast %296 : vector<10xf32> to vector<10x1xf32>
    %cst_110 = arith.constant 3.125000e-02 : f32
    %298 = vector.broadcast %cst_110 : f32 to vector<10x1xf32>
    %299 = arith.mulf %294, %298 : vector<10x1xf32>
    %cst_111 = arith.constant 3.125000e-02 : f32
    %300 = vector.broadcast %cst_111 : f32 to vector<10x1xf32>
    %301 = arith.mulf %297, %300 : vector<10x1xf32>
    %302 = arith.mulf %299, %299 : vector<10x1xf32>
    %303 = arith.subf %301, %302 : vector<10x1xf32>
    %304 = vector.broadcast %299 : vector<10x1xf32> to vector<10x32xf32>
    %305 = arith.subf %292, %304 : vector<10x32xf32>
    %cst_112 = arith.constant 9.99999997E-7 : f32
    %306 = vector.broadcast %cst_112 : f32 to vector<10x1xf32>
    %307 = arith.addf %303, %306 : vector<10x1xf32>
    %308 = math.rsqrt %307 : vector<10x1xf32>
    %309 = vector.broadcast %308 : vector<10x1xf32> to vector<10x32xf32>
    %310 = arith.mulf %305, %309 : vector<10x32xf32>
    %311 = arith.truncf %310 : vector<10x32xf32> to vector<10x32xbf16>
    %cst_113 = arith.constant dense<0.000000e+00> : vector<10x64xf32>
    %312 = tpu.matmul %311, %223, %cst_113 {dimension_numbers = #tpu.dot_dimension_numbers<[1], [0], [0], [1], [0, 0, 1, 1], [], []>} : vector<10x32xbf16>, vector<32x64xbf16>, vector<10x64xf32> -> vector<10x64xf32>
    %313 = arith.addf %312, %225 : vector<10x64xf32>
    %cst_114 = arith.constant 5.000000e-01 : f32
    %314 = vector.broadcast %cst_114 : f32 to vector<10x64xf32>
    %315 = arith.mulf %314, %313 : vector<10x64xf32>
    %cst_115 = arith.constant 0.707106769 : f32
    %316 = vector.broadcast %cst_115 : f32 to vector<10x64xf32>
    %317 = arith.mulf %313, %316 : vector<10x64xf32>
    %318 = math.erf %317 : vector<10x64xf32>
    %cst_116 = arith.constant 1.000000e+00 : f32
    %319 = vector.broadcast %cst_116 : f32 to vector<10x64xf32>
    %320 = arith.addf %319, %318 : vector<10x64xf32>
    %321 = arith.mulf %315, %320 : vector<10x64xf32>
    %322 = arith.truncf %321 : vector<10x64xf32> to vector<10x64xbf16>
    %cst_117 = arith.constant dense<0.000000e+00> : vector<10x32xf32>
    %323 = tpu.matmul %322, %227, %cst_117 {dimension_numbers = #tpu.dot_dimension_numbers<[1], [0], [0], [1], [0, 0, 1, 1], [], []>} : vector<10x64xbf16>, vector<64x32xbf16>, vector<10x32xf32> -> vector<10x32xf32>
    %324 = arith.addf %323, %229 : vector<10x32xf32>
    %325 = arith.addf %324, %292 : vector<10x32xf32>
    %326 = arith.addf %325, %5 : vector<10x32xf32>
    %cst_118 = arith.constant dense<0.000000e+00> : vector<10xf32>
    %327 = vector.multi_reduction <add>, %326, %cst_118 [1] : vector<10x32xf32> to vector<10xf32>
    %328 = vector.shape_cast %327 : vector<10xf32> to vector<10x1xf32>
    %329 = arith.mulf %326, %326 : vector<10x32xf32>
    %cst_119 = arith.constant dense<0.000000e+00> : vector<10xf32>
    %330 = vector.multi_reduction <add>, %329, %cst_119 [1] : vector<10x32xf32> to vector<10xf32>
    %331 = vector.shape_cast %330 : vector<10xf32> to vector<10x1xf32>
    %cst_120 = arith.constant 3.125000e-02 : f32
    %332 = vector.broadcast %cst_120 : f32 to vector<10x1xf32>
    %333 = arith.mulf %328, %332 : vector<10x1xf32>
    %cst_121 = arith.constant 3.125000e-02 : f32
    %334 = vector.broadcast %cst_121 : f32 to vector<10x1xf32>
    %335 = arith.mulf %331, %334 : vector<10x1xf32>
    %336 = arith.mulf %333, %333 : vector<10x1xf32>
    %337 = arith.subf %335, %336 : vector<10x1xf32>
    %338 = vector.broadcast %333 : vector<10x1xf32> to vector<10x32xf32>
    %339 = arith.subf %326, %338 : vector<10x32xf32>
    %cst_122 = arith.constant 9.99999997E-7 : f32
    %340 = vector.broadcast %cst_122 : f32 to vector<10x1xf32>
    %341 = arith.addf %337, %340 : vector<10x1xf32>
    %342 = math.rsqrt %341 : vector<10x1xf32>
    %343 = vector.broadcast %342 : vector<10x1xf32> to vector<10x32xf32>
    %344 = arith.mulf %339, %343 : vector<10x32xf32>
    %345 = arith.truncf %344 : vector<10x32xf32> to vector<10x32xbf16>
    %cst_123 = arith.constant dense<0.000000e+00> : vector<10x96xf32>
    %346 = tpu.matmul %345, %215, %cst_123 {dimension_numbers = #tpu.dot_dimension_numbers<[1], [0], [0], [1], [0, 0, 1, 1], [], []>} : vector<10x32xbf16>, vector<32x96xbf16>, vector<10x96xf32> -> vector<10x96xf32>
    %347 = arith.addf %346, %217 : vector<10x96xf32>
    %348 = vector.extract_strided_slice %347 {offsets = [0, 0], sizes = [10, 8], strides = [1, 1]} : vector<10x96xf32> to vector<10x8xf32>
    %349 = vector.extract_strided_slice %347 {offsets = [0, 8], sizes = [10, 8], strides = [1, 1]} : vector<10x96xf32> to vector<10x8xf32>
    %350 = vector.extract_strided_slice %347 {offsets = [0, 16], sizes = [10, 8], strides = [1, 1]} : vector<10x96xf32> to vector<10x8xf32>
    %351 = vector.extract_strided_slice %347 {offsets = [0, 24], sizes = [10, 8], strides = [1, 1]} : vector<10x96xf32> to vector<10x8xf32>
    %352 = tpu.concatenate %348, %349, %350, %351 in 0 : vector<10x8xf32>, vector<10x8xf32>, vector<10x8xf32>, vector<10x8xf32> -> vector<40x8xf32>
    %353 = arith.truncf %352 : vector<40x8xf32> to vector<40x8xbf16>
    %354 = vector.extract_strided_slice %347 {offsets = [0, 32], sizes = [10, 8], strides = [1, 1]} : vector<10x96xf32> to vector<10x8xf32>
    %355 = vector.extract_strided_slice %347 {offsets = [0, 40], sizes = [10, 8], strides = [1, 1]} : vector<10x96xf32> to vector<10x8xf32>
    %356 = vector.extract_strided_slice %347 {offsets = [0, 48], sizes = [10, 8], strides = [1, 1]} : vector<10x96xf32> to vector<10x8xf32>
    %357 = vector.extract_strided_slice %347 {offsets = [0, 56], sizes = [10, 8], strides = [1, 1]} : vector<10x96xf32> to vector<10x8xf32>
    %358 = tpu.concatenate %354, %355, %356, %357 in 0 : vector<10x8xf32>, vector<10x8xf32>, vector<10x8xf32>, vector<10x8xf32> -> vector<40x8xf32>
    %359 = arith.truncf %358 : vector<40x8xf32> to vector<40x8xbf16>
    %360 = vector.extract_strided_slice %347 {offsets = [0, 64], sizes = [10, 8], strides = [1, 1]} : vector<10x96xf32> to vector<10x8xf32>
    %361 = vector.extract_strided_slice %347 {offsets = [0, 72], sizes = [10, 8], strides = [1, 1]} : vector<10x96xf32> to vector<10x8xf32>
    %362 = vector.extract_strided_slice %347 {offsets = [0, 80], sizes = [10, 8], strides = [1, 1]} : vector<10x96xf32> to vector<10x8xf32>
    %363 = vector.extract_strided_slice %347 {offsets = [0, 88], sizes = [10, 8], strides = [1, 1]} : vector<10x96xf32> to vector<10x8xf32>
    %364 = tpu.concatenate %360, %361, %362, %363 in 0 : vector<10x8xf32>, vector<10x8xf32>, vector<10x8xf32>, vector<10x8xf32> -> vector<40x8xf32>
    %365 = arith.truncf %364 : vector<40x8xf32> to vector<40x8xbf16>
    %cst_124 = arith.constant dense<0.000000e+00> : vector<40x40xf32>
    %366 = tpu.matmul %353, %359, %cst_124 {dimension_numbers = #tpu.dot_dimension_numbers<[1], [1], [0], [0], [0, 0, 1, 0], [], []>} : vector<40x8xbf16>, vector<40x8xbf16>, vector<40x40xf32> -> vector<40x40xf32>
    %367 = arith.addf %366, %1 : vector<40x40xf32>
    %cst_125 = arith.constant dense<0xFF800000> : vector<40xf32>
    %368 = vector.multi_reduction <maximumf>, %367, %cst_125 [1] : vector<40x40xf32> to vector<40xf32>
    %369 = vector.shape_cast %368 : vector<40xf32> to vector<40x1xf32>
    %370 = vector.broadcast %369 : vector<40x1xf32> to vector<40x40xf32>
    %371 = arith.subf %367, %370 : vector<40x40xf32>
    %372 = math.exp %371 : vector<40x40xf32>
    %cst_126 = arith.constant dense<0.000000e+00> : vector<40xf32>
    %373 = vector.multi_reduction <add>, %372, %cst_126 [1] : vector<40x40xf32> to vector<40xf32>
    %374 = vector.shape_cast %373 : vector<40xf32> to vector<40x1xf32>
    %375 = tpu.reciprocal %374 {approx = true} : vector<40x1xf32> -> vector<40x1xf32>
    %376 = vector.broadcast %375 : vector<40x1xf32> to vector<40x40xf32>
    %377 = arith.mulf %372, %376 : vector<40x40xf32>
    %378 = arith.truncf %377 : vector<40x40xf32> to vector<40x40xbf16>
    %cst_127 = arith.constant dense<0.000000e+00> : vector<40x8xf32>
    %379 = tpu.matmul %378, %365, %cst_127 {dimension_numbers = #tpu.dot_dimension_numbers<[1], [0], [0], [1], [0, 0, 1, 1], [], []>} : vector<40x40xbf16>, vector<40x8xbf16>, vector<40x8xf32> -> vector<40x8xf32>
    %380 = vector.extract_strided_slice %379 {offsets = [0, 0], sizes = [10, 8], strides = [1, 1]} : vector<40x8xf32> to vector<10x8xf32>
    %381 = vector.extract_strided_slice %379 {offsets = [10, 0], sizes = [10, 8], strides = [1, 1]} : vector<40x8xf32> to vector<10x8xf32>
    %382 = vector.extract_strided_slice %379 {offsets = [20, 0], sizes = [10, 8], strides = [1, 1]} : vector<40x8xf32> to vector<10x8xf32>
    %383 = vector.extract_strided_slice %379 {offsets = [30, 0], sizes = [10, 8], strides = [1, 1]} : vector<40x8xf32> to vector<10x8xf32>
    %384 = tpu.concatenate %380, %381, %382, %383 in 1 : vector<10x8xf32>, vector<10x8xf32>, vector<10x8xf32>, vector<10x8xf32> -> vector<10x32xf32>
    %385 = arith.truncf %384 : vector<10x32xf32> to vector<10x32xbf16>
    %cst_128 = arith.constant dense<0.000000e+00> : vector<10x32xf32>
    %386 = tpu.matmul %385, %219, %cst_128 {dimension_numbers = #tpu.dot_dimension_numbers<[1], [0], [0], [1], [0, 0, 1, 1], [], []>} : vector<10x32xbf16>, vector<32x32xbf16>, vector<10x32xf32> -> vector<10x32xf32>
    %387 = arith.addf %386, %221 : vector<10x32xf32>
    %388 = arith.addf %387, %326 : vector<10x32xf32>
    %cst_129 = arith.constant dense<0.000000e+00> : vector<10xf32>
    %389 = vector.multi_reduction <add>, %388, %cst_129 [1] : vector<10x32xf32> to vector<10xf32>
    %390 = vector.shape_cast %389 : vector<10xf32> to vector<10x1xf32>
    %391 = arith.mulf %388, %388 : vector<10x32xf32>
    %cst_130 = arith.constant dense<0.000000e+00> : vector<10xf32>
    %392 = vector.multi_reduction <add>, %391, %cst_130 [1] : vector<10x32xf32> to vector<10xf32>
    %393 = vector.shape_cast %392 : vector<10xf32> to vector<10x1xf32>
    %cst_131 = arith.constant 3.125000e-02 : f32
    %394 = vector.broadcast %cst_131 : f32 to vector<10x1xf32>
    %395 = arith.mulf %390, %394 : vector<10x1xf32>
    %cst_132 = arith.constant 3.125000e-02 : f32
    %396 = vector.broadcast %cst_132 : f32 to vector<10x1xf32>
    %397 = arith.mulf %393, %396 : vector<10x1xf32>
    %398 = arith.mulf %395, %395 : vector<10x1xf32>
    %399 = arith.subf %397, %398 : vector<10x1xf32>
    %400 = vector.broadcast %395 : vector<10x1xf32> to vector<10x32xf32>
    %401 = arith.subf %388, %400 : vector<10x32xf32>
    %cst_133 = arith.constant 9.99999997E-7 : f32
    %402 = vector.broadcast %cst_133 : f32 to vector<10x1xf32>
    %403 = arith.addf %399, %402 : vector<10x1xf32>
    %404 = math.rsqrt %403 : vector<10x1xf32>
    %405 = vector.broadcast %404 : vector<10x1xf32> to vector<10x32xf32>
    %406 = arith.mulf %401, %405 : vector<10x32xf32>
    %407 = arith.truncf %406 : vector<10x32xf32> to vector<10x32xbf16>
    %cst_134 = arith.constant dense<0.000000e+00> : vector<10x64xf32>
    %408 = tpu.matmul %407, %223, %cst_134 {dimension_numbers = #tpu.dot_dimension_numbers<[1], [0], [0], [1], [0, 0, 1, 1], [], []>} : vector<10x32xbf16>, vector<32x64xbf16>, vector<10x64xf32> -> vector<10x64xf32>
    %409 = arith.addf %408, %225 : vector<10x64xf32>
    %cst_135 = arith.constant 5.000000e-01 : f32
    %410 = vector.broadcast %cst_135 : f32 to vector<10x64xf32>
    %411 = arith.mulf %410, %409 : vector<10x64xf32>
    %cst_136 = arith.constant 0.707106769 : f32
    %412 = vector.broadcast %cst_136 : f32 to vector<10x64xf32>
    %413 = arith.mulf %409, %412 : vector<10x64xf32>
    %414 = math.erf %413 : vector<10x64xf32>
    %cst_137 = arith.constant 1.000000e+00 : f32
    %415 = vector.broadcast %cst_137 : f32 to vector<10x64xf32>
    %416 = arith.addf %415, %414 : vector<10x64xf32>
    %417 = arith.mulf %411, %416 : vector<10x64xf32>
    %418 = arith.truncf %417 : vector<10x64xf32> to vector<10x64xbf16>
    %cst_138 = arith.constant dense<0.000000e+00> : vector<10x32xf32>
    %419 = tpu.matmul %418, %227, %cst_138 {dimension_numbers = #tpu.dot_dimension_numbers<[1], [0], [0], [1], [0, 0, 1, 1], [], []>} : vector<10x64xbf16>, vector<64x32xbf16>, vector<10x32xf32> -> vector<10x32xf32>
    %420 = arith.addf %419, %229 : vector<10x32xf32>
    %421 = arith.addf %420, %388 : vector<10x32xf32>
    %cst_139 = arith.constant dense<0.000000e+00> : vector<10xf32>
    %422 = vector.multi_reduction <add>, %421, %cst_139 [1] : vector<10x32xf32> to vector<10xf32>
    %423 = vector.shape_cast %422 : vector<10xf32> to vector<10x1xf32>
    %424 = arith.mulf %421, %421 : vector<10x32xf32>
    %cst_140 = arith.constant dense<0.000000e+00> : vector<10xf32>
    %425 = vector.multi_reduction <add>, %424, %cst_140 [1] : vector<10x32xf32> to vector<10xf32>
    %426 = vector.shape_cast %425 : vector<10xf32> to vector<10x1xf32>
    %cst_141 = arith.constant 3.125000e-02 : f32
    %427 = vector.broadcast %cst_141 : f32 to vector<10x1xf32>
    %428 = arith.mulf %423, %427 : vector<10x1xf32>
    %cst_142 = arith.constant 3.125000e-02 : f32
    %429 = vector.broadcast %cst_142 : f32 to vector<10x1xf32>
    %430 = arith.mulf %426, %429 : vector<10x1xf32>
    %431 = arith.mulf %428, %428 : vector<10x1xf32>
    %432 = arith.subf %430, %431 : vector<10x1xf32>
    %433 = vector.broadcast %428 : vector<10x1xf32> to vector<10x32xf32>
    %434 = arith.subf %421, %433 : vector<10x32xf32>
    %cst_143 = arith.constant 9.99999997E-7 : f32
    %435 = vector.broadcast %cst_143 : f32 to vector<10x1xf32>
    %436 = arith.addf %432, %435 : vector<10x1xf32>
    %437 = math.rsqrt %436 : vector<10x1xf32>
    %438 = vector.broadcast %437 : vector<10x1xf32> to vector<10x32xf32>
    %439 = arith.mulf %434, %438 : vector<10x32xf32>
    %c0_144 = arith.constant 0 : index
    %c0_145 = arith.constant 0 : index
    %440 = vector.load %arg11[%c0_144, %c0_145] : memref<1x32xf32, #tpu.memory_space<vmem>>, vector<1x32xf32>
    %441 = vector.broadcast %440 : vector<1x32xf32> to vector<10x32xf32>
    %442 = arith.mulf %439, %441 : vector<10x32xf32>
    %c0_146 = arith.constant 0 : index
    %c0_147 = arith.constant 0 : index
    %443 = vector.load %arg12[%c0_146, %c0_147] : memref<1x32xf32, #tpu.memory_space<vmem>>, vector<1x32xf32>
    %444 = vector.broadcast %443 : vector<1x32xf32> to vector<10x32xf32>
    %445 = arith.addf %442, %444 : vector<10x32xf32>
    %c0_148 = arith.constant 0 : index
    %c0_149 = arith.constant 0 : index
    %446 = vector.load %arg13[%c0_148, %c0_149] : memref<10x32xf32, #tpu.memory_space<vmem>>, vector<10x32xf32>
    tpu.vector_store %arg13[%c0_148, %c0_149], %445 {strides = array<i32>} : memref<10x32xf32, #tpu.memory_space<vmem>>, vector<10x32xf32>,
    return
  }
}

</mosaic_0001>

<bundles_post_ra>
// kernel: encoder_forward.1
= control target key start
LH: loop header
LB: loop body
LE: loop exit
PB: predicated region body
PF: predicated region fallthrough
CT: control target
= control target key end

     0   :  { %vm87_vm0 = vcmask 261120   ;;  %vm91_vm1 = vcmask 254976   ;;  %s2669_s21 = smov 104   ;;  %vm189_vm8 = vcmask 1045504   ;;  %vm179_vm9 = vcmask 1043456   ;;  %s2670_s24 = smov 112   ;;  %s3520_s0 = inlined_call_operand.vmem [shape: f32[10,32], index: 0, kind: input, shape index: {}, may-alias: {0,13}]   ;;  %s3521_s1 = inlined_call_operand.vmem [shape: f32[2,10,32], index: 1, kind: input, shape index: {}]   ;;  %s3522_s3 = inlined_call_operand.vmem [shape: bf16[2,32,96], index: 3, kind: input, shape index: {}]   ;;  %s3523_s4 = inlined_call_operand.vmem [shape: f32[2,10,96], index: 4, kind: input, shape index: {}]   ;;  %s3524_s2 = inlined_call_operand.vmem [shape: f32[40,40], index: 2, kind: input, shape index: {}]   ;;  %s3525_s5 = inlined_call_operand.vmem [shape: bf16[2,32,32], index: 5, kind: input, shape index: {}]   ;;  %s3526_s6 = inlined_call_operand.vmem [shape: f32[2,10,32], index: 6, kind: input, shape index: {}]   ;;  %s3527_s7 = inlined_call_operand.vmem [shape: bf16[2,32,64], index: 7, kind: input, shape index: {}]   ;;  %s3528_s8 = inlined_call_operand.vmem [shape: f32[2,10,64], index: 8, kind: input, shape index: {}]   ;;  %s3529_s9 = inlined_call_operand.vmem [shape: bf16[2,64,32], index: 9, kind: input, shape index: {}]   ;;  %s3530_s10 = inlined_call_operand.vmem [shape: f32[2,10,32], index: 10, kind: input, shape index: {}]   ;;  %s3531_s11 = inlined_call_operand.vmem [shape: f32[1,32], index: 11, kind: input, shape index: {}]   ;;  %s3532_s12 = inlined_call_operand.vmem [shape: f32[1,32], index: 12, kind: input, shape index: {}]   ;;  %s3533_s13 = inlined_call_operand.vmem [shape: f32[10,32], index: 13, kind: output, shape index: {}, may-alias: {0,13}]  }
   0x1   :  { %v45_v0 = vld [vmem:[%s3520_s0] sm:$0xff]  ;;  %v46_v2 = vld [vmem:[%s3520_s0 + $0x8] sm:$0x3]  ;;  %vm169_vm10 = vcmask 1041408   ;;  %s2671_s25 = smov 120   ;;  %s2672_s26 = smov 96  }
   0x2   :  { %v52_v1 = vld [vmem:[%s3521_s1] sm:$0xff]  ;;  %v53_v4 = vld [vmem:[%s3521_s1 + $0x8] sm:$0x3]  ;;  %vm214_vm11 = vcmask 64512   ;;  %vm256_vm12 = vcmask 326656   ;;  %s2673_s19 = smov 64  }
   0x3   :  { %v2756_v3 = vadd.f32 %v52_v1, %v45_v0  ;;  %v2765_v7 = vadd.f32 %v53_v4, %v46_v2  ;;  %v2776_v12 = vld [vmem:[%s3522_s3 + $0x8] sm:$0xff]  ;;  %v2782_v14 = vld [vmem:[%s3522_s3] sm:$0xff]  ;;  %s2674_s20 = smov 8   ;;  %s2675_s22 = smov 16   ;;  %vm391_vm13 = vcmask 130048   ;;  %vm3534_vm14 = vcmask 195584  }
   0x4   :  { %159 = vmatpush.bf16.msra.mxu1 %v2776_v12  ;;  %v2791_v47 = vld [vmem:[%s3523_s4] sm:$0xff]  ;;  %v2798_v51 = vld [vmem:[%s3523_s4 + $0x8] sm:$0x3]  ;;  %s2676_s23 = smov 24  }
   0x5   :  { %v88_v5 = vsel %vm87_vm0, %v2756_v3, 0.0  ;;  %v95_v6 = vmul.f32 %v2756_v3, %v2756_v3  ;;  %v96_v9 = vmul.f32 %v2765_v7, %v2765_v7  ;;  %v92_v10 = vsel %vm91_vm1, %v2765_v7, 0.0 }
   0x6   :  { %89 = vadd.xlane.f32.xlu0 %v88_v5 }
   0x7   :  { %v97_v8 = vsel %vm87_vm0, %v95_v6, 0.0  ;;  %v100_v11 = vsel %vm91_vm1, %v96_v9, 0.0 }
   0x8   :  { %98 = vadd.xlane.f32.xlu1 %v97_v8  ;;  %160 = vmatpush.bf16.msra.mxu1 %v2782_v14 }
   0xe   :  { %93 = vadd.xlane.f32.xlu0 %v92_v10 }
  0x10   :  { %101 = vadd.xlane.f32.xlu1 %v100_v11 }
  0x79   :  { %v90_v13 = vpop.xlane.xlu0 %89 }
  0x7a   :  { %v103_v15 = vmul.f32 0.03125, %v90_v13 }
  0x7b   :  { %v99_v16 = vpop.xlane.xlu1 %98 }
  0x7c   :  { %v107_v17 = vmul.f32 %v103_v15, %v103_v15  ;;  %v105_v18 = vmul.f32 0.03125, %v99_v16  ;;  %v111_v41 = vsub.f32 %v2756_v3, %v103_v15 }
  0x7e   :  { %v109_v19 = vsub.f32 %v105_v18, %v107_v17 }
  0x80   :  { %v113_v20 = vadd.f32 1e-06, %v109_v19 }
  0x81   :  { %v94_v21 = vpop.xlane.xlu0 %93 }
  0x82   :  { %2528 = vrsqrt.f32 %v113_v20  ;;  %v104_v22 = vmul.f32 0.03125, %v94_v21  ;;  %vm121_vm3 = vweird.f32 %v113_v20 }
  0x83   :  { %v102_v23 = vpop.xlane.xlu1 %101 }
  0x84   :  { %v108_v24 = vmul.f32 %v104_v22, %v104_v22  ;;  %v106_v25 = vmul.f32 0.03125, %v102_v23  ;;  %v112_v42 = vsub.f32 %v2765_v7, %v104_v22  ;;  %v2827_v22 = vld [vmem:[%s3524_s2] sm:$0xff] }
  0x86   :  { %v110_v26 = vsub.f32 %v106_v25, %v108_v24 }
  0x88   :  { %v2529_v27 = vpop.eup %2528  ;;  %v114_v28 = vadd.f32 1e-06, %v110_v26  ;;  %v2834_v26 = vld [vmem:[%s3524_s2 + $0x8] sm:$0xff] }
  0x89   :  { %v116_v29 = vmul.f32 %v2529_v27, %v113_v20  ;;  %vm122_vm2 = vweird.f32 %v2529_v27 }
  0x8a   :  { %2530 = vrsqrt.f32 %v114_v28  ;;  %vm123_vm5 = vmor %vm121_vm3, %vm122_vm2  ;;  %vm131_vm6 = vweird.f32 %v114_v28 }
  0x8b   :  { %v117_v30 = vmul.f32 %v2529_v27, %v116_v29 }
  0x8d   :  { %v118_v31 = vmul.f32 0.5, %v117_v30  ;;  %v2841_v30 = vld [vmem:[%s3524_s2 + $0x10] sm:$0xff] }
  0x8f   :  { %v119_v33 = vsub.f32 1.5, %v118_v31 }
  0x90   :  { %v2531_v32 = vpop.eup %2530 }
  0x91   :  { %v126_v34 = vmul.f32 %v2531_v32, %v114_v28  ;;  %v120_v37 = vmul.f32 %v2529_v27, %v119_v33  ;;  %vm132_vm4 = vweird.f32 %v2531_v32 }
  0x92   :  { %vm133_vm7 = vmor %vm131_vm6, %vm132_vm4 }
  0x93   :  { %v127_v35 = vmul.f32 %v2531_v32, %v126_v34  ;;  %v124_v39 = vsel %vm123_vm5, %v2529_v27, %v120_v37  ;;  %v2848_v34 = vld [vmem:[%s3524_s2 + $0x18] sm:$0xff] }
  0x94   :  { %v135_v44 = vmul.f32 %v124_v39, %v111_v41 }
  0x95   :  { %v128_v36 = vmul.f32 0.5, %v127_v35 }
  0x97   :  { %v129_v38 = vsub.f32 1.5, %v128_v36 }
  0x99   :  { %v130_v40 = vmul.f32 %v2531_v32, %v129_v38  ;;  %v2855_v38 = vld [vmem:[%s3524_s2 + $0x20] sm:$0xff] }
  0x9b   :  { %v134_v43 = vsel %vm133_vm7, %v2531_v32, %v130_v40 }
  0x9c   :  { %v136_v45 = vmul.f32 %v134_v43, %v112_v42 }
  0x9e   :  { %v137_v46 = vpack.c.bf16 %v136_v45, %v135_v44 }
  0xa0   :  { %2267 = vmatmul.msk.bf16.vlgmr.msra.gmra.mxu1 %vm87_vm0, %v137_v46 }
 0x11d   :  { %v162_v48 = vpop.f32.mrf.mxu1 }
 0x11e   :  { %v163_v49 = vadd.f32 %v162_v48, %v2791_v47 }
 0x120   :  { %v190_v50 = vrot.slane %v163_v49, 2  ;;  %v180_v56 = vrot.slane %v163_v49, 4  ;;  %v170_v61 = vrot.slane %v163_v49, 6 }
 0x122   :  { %193 = vrot.lane.b32.xlu1 %v190_v50, %s2669_s21 }
 0x125   :  { %v164_v52 = vpop.f32.mrf.mxu1 }
 0x126   :  { %v165_v53 = vadd.f32 %v164_v52, %v2798_v51 }
 0x128   :  { %v181_v54 = vrot.slane %v165_v53, 4  ;;  %v191_v55 = vrot.slane %v165_v53, 2  ;;  %v171_v60 = vrot.slane %v165_v53, 6 }
 0x12a   :  { %v192_v57 = vsel %vm189_vm8, %v190_v50, %v191_v55  ;;  %v182_v58 = vsel %vm179_vm9, %v180_v56, %v181_v54  ;;  %v172_v62 = vsel %vm169_vm10, %v170_v61, %v171_v60 }
 0x12b   :  { %195 = vrot.lane.b32.xlu2 %v192_v57, %s2669_s21  ;;  %v2446_v59 = vpack.i.bf16 %v182_v58, %v180_v56 }
 0x12d   :  { %2447 = vrot.lane.b32.xlu0 %v2446_v59, %s2670_s24 }
 0x133   :  { %175 = vrot.lane.b32.xlu2 %v172_v62, %s2671_s25 }
 0x13b   :  { %173 = vrot.lane.b32.xlu2 %v170_v61, %s2671_s25 }
 0x185   :  { %v196_v63 = vpop.permute.xlu2 %195 }
 0x186   :  { %v204_v0 = vpack.c.bf16 %v196_v63, %v196_v63 }
 0x188   :  { %212 = vrot.lane.b32.xlu2 %v204_v0, %s2672_s26 }
 0x18d   :  { %v176_v1 = vpop.permute.xlu2 %175 }
 0x194   :  { %v194_v10 = vpop.permute.xlu1 %193 }
 0x195   :  { %v174_v2 = vpop.permute.xlu2 %173 }
 0x196   :  { %v199_v4 = vsel %vm169_vm10, %v165_v53, %v174_v2 }
 0x197   :  { %v2810_v5 = vpack.c.bf16 %v199_v4, %v163_v49 }
 0x199   :  { %208 = vrot.lane.b32.xlu0 %v2810_v5, %s2672_s26 }
 0x19f   :  { %v2448_v6 = vpop.permute.xlu0 %2447 }
 0x1a0   :  { %v2450_v8 = vunpack.i.h.bf16 %v2448_v6  ;;  %v2449_v9 = vunpack.i.l.bf16 %v2448_v6 }
 0x1a2   :  { %v200_v11 = vsel %vm179_vm9, %v176_v1, %v2449_v9  ;;  %v201_v13 = vsel %vm189_vm8, %v2450_v8, %v194_v10 }
 0x1a3   :  { %v203_v15 = vpack.c.bf16 %v201_v13, %v200_v11 }
 0x1a5   :  { %210 = vrot.lane.b32.xlu2 %v203_v15, %s2672_s26 }
 0x1e2   :  { %v213_v16 = vpop.permute.xlu2 %212 }
 0x1e3   :  { %v231_v17 = vsel %vm214_vm11, %v213_v16, 0 }
 0x1e4   :  { %238 = vmatpush.bf16.xpose.msrb.mxu1 %v231_v17 }
 0x1ff   :  { %v211_v18 = vpop.permute.xlu2 %210 }
 0x200   :  { %v228_v19 = vsel %vm214_vm11, %v211_v18, 0 }
 0x201   :  { %239 = vmatpush.bf16.xpose.msrb.mxu1 %v228_v19 }
 0x20b   :  { %v209_v20 = vpop.permute.xlu0 %208 }
 0x20c   :  { %v225_v21 = vsel %vm214_vm11, %v209_v20, 0 }
 0x20d   :  { %240 = vmatpush.bf16.xpose.msrb.mxu1 %v225_v21 }
 0x214   :  { %2268 = vmatmul.msk.bf16.vlgmr.msrb.gmra.mxu1 %vm214_vm11, %v2810_v5 }
 0x224   :  { %2269 = vmatmul.msk.bf16.gmra.mxu1 %vm214_vm11, %v203_v15 }
 0x234   :  { %2270 = vmatmul.msk.bf16.gmra.mxu1 %vm214_vm11, %v204_v0 }
 0x291   :  { %v242_v23 = vpop.f32.mrf.mxu1 }
 0x292   :  { %v243_v24 = vadd.f32 %v242_v23, %v2827_v22 }
 0x294   :  { %v257_v25 = vsel %vm256_vm12, %v243_v24, -inf }
 0x295   :  { %258 = vmax.xlane.f32.xlu2 %v257_v25 }
 0x299   :  { %v244_v27 = vpop.f32.mrf.mxu1 }
 0x29a   :  { %v245_v28 = vadd.f32 %v244_v27, %v2834_v26 }
 0x29c   :  { %v260_v29 = vsel %vm256_vm12, %v245_v28, -inf }
 0x29d   :  { %261 = vmax.xlane.f32.xlu1 %v260_v29 }
 0x2a1   :  { %v247_v31 = vpop.f32.mrf.mxu1 }
 0x2a2   :  { %v248_v32 = vadd.f32 %v247_v31, %v2841_v30 }
 0x2a4   :  { %v263_v33 = vsel %vm256_vm12, %v248_v32, -inf }
 0x2a5   :  { %264 = vmax.xlane.f32.xlu0 %v263_v33 }
 0x2a9   :  { %v249_v35 = vpop.f32.mrf.mxu1 }
 0x2aa   :  { %v250_v36 = vadd.f32 %v249_v35, %v2848_v34 }
 0x2ac   :  { %v266_v37 = vsel %vm256_vm12, %v250_v36, -inf }
 0x2ad   :  { %267 = vmax.xlane.f32.xlu2 %v266_v37 }
 0x2b1   :  { %v252_v39 = vpop.f32.mrf.mxu1 }
 0x2b2   :  { %v253_v40 = vadd.f32 %v252_v39, %v2855_v38 }
 0x2b4   :  { %v269_v41 = vsel %vm256_vm12, %v253_v40, -inf }
 0x2b5   :  { %270 = vmax.xlane.f32.xlu1 %v269_v41 }
 0x2b9   :  { %v254_v42 = vpop.f32.mrf.mxu1 }
 0x2ce   :  { %319 = vrot.lane.b32.xlu1 %v204_v0, %s2673_s19 }
 0x308   :  { %v259_v43 = vpop.xlane.xlu2 %258 }
 0x309   :  { %v272_v44 = vsub.f32 %v243_v24, %v259_v43 }
 0x30b   :  { %v277_v45 = vmul.f32 1.442695, %v272_v44 }
 0x30d   :  { %2532 = vpow2.f32 %v277_v45 }
 0x310   :  { %v262_v46 = vpop.xlane.xlu1 %261 }
 0x311   :  { %v273_v48 = vsub.f32 %v245_v28, %v262_v46 }
 0x313   :  { %v2533_v49 = vpop.eup %2532  ;;  %v279_v50 = vmul.f32 1.442695, %v273_v48 }
 0x314   :  { %v287_v52 = vsel %vm256_vm12, %v2533_v49, 0.0 }
 0x315   :  { %2534 = vpow2.f32 %v279_v50  ;;  %288 = vadd.xlane.f32.xlu0 %v287_v52 }
 0x318   :  { %v265_v61 = vpop.xlane.xlu0 %264 }
 0x319   :  { %v274_v63 = vsub.f32 %v248_v32, %v265_v61 }
 0x31b   :  { %v2535_v53 = vpop.eup %2534  ;;  %v281_v1 = vmul.f32 1.442695, %v274_v63 }
 0x31c   :  { %v290_v54 = vsel %vm256_vm12, %v2535_v53, 0.0 }
 0x31d   :  { %291 = vadd.xlane.f32.xlu2 %v290_v54 }
 0x320   :  { %v268_v55 = vpop.xlane.xlu2 %267 }
 0x321   :  { %v275_v56 = vsub.f32 %v250_v36, %v268_v55 }
 0x323   :  { %v283_v57 = vmul.f32 1.442695, %v275_v56 }
 0x325   :  { %2536 = vpow2.f32 %v283_v57  ;;  %v2418_v57 = vld [vmem:[%s3525_s5 + $0x8] sm:$0xff] }
 0x326   :  { %2538 = vpow2.f32 %v281_v1  ;;  %419 = vmatpush.bf16.msra.mxu3 %v2418_v57 }
 0x328   :  { %v271_v60 = vpop.xlane.xlu1 %270 }
 0x329   :  { %317 = vrot.lane.b32.xlu0 %v203_v15, %s2673_s19  ;;  %v276_v2 = vsub.f32 %v253_v40, %v271_v60 }
 0x32b   :  { %v2537_v58 = vpop.eup %2536  ;;  %v285_v6 = vmul.f32 1.442695, %v276_v2 }
 0x32c   :  { %v296_v59 = vsel %vm256_vm12, %v2537_v58, 0.0  ;;  %v2539_v4 = vpop.eup %2538 }
 0x32d   :  { %297 = vadd.xlane.f32.xlu1 %v296_v59  ;;  %v293_v8 = vsel %vm256_vm12, %v2539_v4, 0.0  ;;  %2540 = vpow2.f32 %v285_v6 }
 0x333   :  { %v2541_v9 = vpop.eup %2540 }
 0x334   :  { %v299_v10 = vsel %vm256_vm12, %v2541_v9, 0.0 }
 0x335   :  { %315 = vrot.lane.b32.xlu2 %v2810_v5, %s2673_s19 }
 0x340   :  { %v320_v62 = vpop.permute.xlu1 %319 }
 0x341   :  { %v333_v0 = vsel %vm179_vm9, %v320_v62, 0 }
 0x342   :  { %340 = vmatpush.bf16.msra.mxu2 %v333_v0 }
 0x353   :  { %294 = vadd.xlane.f32.xlu0 %v293_v8 }
 0x35e   :  { %300 = vadd.xlane.f32.xlu2 %v299_v10 }
 0x388   :  { %v289_v11 = vpop.xlane.xlu0 %288 }
 0x390   :  { %v292_v5 = vpop.xlane.xlu2 %291 }
 0x391   :  { %2542 = vrcp.f32 %v292_v5 }
 0x392   :  { %2544 = vrcp.f32 %v289_v11 }
 0x397   :  { %v2543_v13 = vpop.eup %2542 }
 0x398   :  { %v2545_v16 = vpop.eup %2544  ;;  %v308_v17 = vmul.f32 %v2543_v13, %v2535_v53  ;;  %v316_v18 = vpop.permute.xlu2 %315 }
 0x399   :  { %v307_v19 = vmul.f32 %v2545_v16, %v2533_v49 }
 0x39b   :  { %v318_v15 = vpop.permute.xlu0 %317  ;;  %v312_v20 = vpack.c.bf16 %v308_v17, %v307_v19 }
 0x39c   :  { %341 = vmatpush.bf16.msra.mxu2 %v318_v15  ;;  %v2894_v15 = vld [vmem:[%s3526_s6] sm:$0xff] }
 0x3a0   :  { %342 = vmatpush.bf16.msra.mxu2 %v316_v18  ;;  %v298_v21 = vpop.xlane.xlu1 %297 }
 0x3a1   :  { %2546 = vrcp.f32 %v298_v21  ;;  %v2907_v21 = vld [vmem:[%s3526_s6 + $0x8] sm:$0x3] }
 0x3a3   :  { %2271 = vmatmul.msk.bf16.vlgmr.msra.gmra.mxu2 %vm256_vm12, %v312_v20 }
 0x3a4   :  { %941 = vmatpush.bf16.msrb.mxu2 %v2418_v57 }
 0x3a7   :  { %v2547_v24 = vpop.eup %2546 }
 0x3a8   :  { %v310_v28 = vmul.f32 %v2547_v24, %v2537_v58  ;;  %v2417_v58 = vld [vmem:[%s3525_s5] sm:$0xff] }
 0x3a9   :  { %420 = vmatpush.bf16.msra.mxu3 %v2417_v58  ;;  %942 = vmatpush.bf16.msrb.mxu2 %v2417_v58 }
 0x3c6   :  { %v295_v23 = vpop.xlane.xlu0 %294 }
 0x3c7   :  { %2548 = vrcp.f32 %v295_v23 }
 0x3cd   :  { %v2549_v25 = vpop.eup %2548 }
 0x3ce   :  { %v309_v27 = vmul.f32 %v2549_v25, %v2539_v4 }
 0x3d0   :  { %v313_v29 = vpack.c.bf16 %v310_v28, %v309_v27 }
 0x3d1   :  { %v301_v31 = vpop.xlane.xlu2 %300 }
 0x3d2   :  { %2272 = vmatmul.msk.bf16.gmra.mxu2 %vm256_vm12, %v313_v29  ;;  %2550 = vrcp.f32 %v301_v31  ;;  %v2420_v31 = vld [vmem:[%s3527_s7 + $0x8] sm:$0xff] }
 0x3d3   :  { %499 = vmatpush.bf16.msra.mxu0 %v2420_v31  ;;  %1009 = vmatpush.bf16.msra.mxu1 %v2420_v31 }
 0x3d8   :  { %v2551_v32 = vpop.eup %2550 }
 0x3d9   :  { %v311_v33 = vmul.f32 %v2551_v32, %v2541_v9 }
 0x3db   :  { %v314_v35 = vpack.c.bf16 %v311_v33, %v311_v33 }
 0x3e2   :  { %2273 = vmatmul.msk.bf16.gmra.mxu2 %vm256_vm12, %v314_v35 }
 0x426   :  { %v344_v36 = vpop.f32.mrf.mxu2 }
 0x42e   :  { %v346_v37 = vpop.f32.mrf.mxu2 }
 0x42f   :  { %v360_v40 = vrot.slane %v346_v37, 2 }
 0x455   :  { %v349_v39 = vpop.f32.mrf.mxu2 }
 0x456   :  { %v361_v41 = vrot.slane %v349_v39, 2  ;;  %v370_v45 = vrot.slane %v349_v39, 4 }
 0x458   :  { %v362_v42 = vsel %vm189_vm8, %v360_v40, %v361_v41 }
 0x459   :  { %v2451_v43 = vpack.i.bf16 %v361_v41, %v362_v42 }
 0x45b   :  { %2452 = vrot.lane.b32.xlu0 %v2451_v43, %s2674_s20 }
 0x45d   :  { %v351_v44 = vpop.f32.mrf.mxu2 }
 0x45e   :  { %v371_v46 = vrot.slane %v351_v44, 4  ;;  %v380_v52 = vrot.slane %v351_v44, 6 }
 0x460   :  { %v372_v48 = vsel %vm179_vm9, %v370_v45, %v371_v46 }
 0x461   :  { %v2456_v49 = vpack.i.bf16 %v371_v46, %v372_v48 }
 0x463   :  { %2457 = vrot.lane.b32.xlu1 %v2456_v49, %s2675_s22 }
 0x465   :  { %v354_v50 = vpop.f32.mrf.mxu2 }
 0x466   :  { %v381_v53 = vrot.slane %v354_v50, 6 }
 0x468   :  { %v382_v54 = vsel %vm169_vm10, %v380_v52, %v381_v53 }
 0x469   :  { %v2461_v55 = vpack.i.bf16 %v381_v53, %v382_v54 }
 0x46b   :  { %2462 = vrot.lane.b32.xlu2 %v2461_v55, %s2676_s23 }
 0x46d   :  { %v356_v56 = vpop.f32.mrf.mxu2 }
 0x4c5   :  { %v2463_v62 = vpop.permute.xlu2 %2462 }
 0x4c6   :  { %v2465_v2 = vunpack.i.h.bf16 %v2463_v62  ;;  %v2464_v4 = vunpack.i.l.bf16 %v2463_v62 }
 0x4cd   :  { %v2453_v59 = vpop.permute.xlu0 %2452 }
 0x4ce   :  { %v2455_v60 = vunpack.i.h.bf16 %v2453_v59  ;;  %v2454_v61 = vunpack.i.l.bf16 %v2453_v59 }
 0x4d0   :  { %v390_v6 = vsel %vm214_vm11, %v346_v37, %v2455_v60  ;;  %v389_v8 = vsel %vm214_vm11, %v344_v36, %v2454_v61 }
 0x4d5   :  { %v2458_v63 = vpop.permute.xlu1 %2457 }
 0x4d6   :  { %v2460_v0 = vunpack.i.h.bf16 %v2458_v63  ;;  %v2459_v1 = vunpack.i.l.bf16 %v2458_v63 }
 0x4d8   :  { %v393_v9 = vsel %vm391_vm13, %v390_v6, %v2460_v0  ;;  %v392_v10 = vsel %vm391_vm13, %v389_v8, %v2459_v1 }
 0x4d9   :  { %v395_v5 = vsel %vm3534_vm14, %v392_v10, %v2464_v4  ;;  %v396_v11 = vsel %vm3534_vm14, %v393_v9, %v2465_v2  ;;  %v2933_v4 = vld [vmem:[%s3528_s8] sm:$0xff] }
 0x4da   :  { %v397_v13 = vpack.c.bf16 %v396_v11, %v395_v5  ;;  %v2946_v5 = vld [vmem:[%s3528_s8 + $0x8] sm:$0x3] }
 0x4dc   :  { %2282 = vmatmul.msk.bf16.vlgmr.msra.gmra.mxu3 %vm87_vm0, %v397_v13 }
 0x55f   :  { %v422_v16 = vpop.f32.mrf.mxu3 }
 0x560   :  { %v423_v17 = vadd.f32 %v422_v16, %v2894_v15 }
 0x562   :  { %v2898_v18 = vadd.f32 %v423_v17, %v2756_v3 }
 0x564   :  { %v429_v19 = vsel %vm87_vm0, %v2898_v18, 0.0  ;;  %v435_v20 = vmul.f32 %v2898_v18, %v2898_v18 }
 0x565   :  { %430 = vadd.xlane.f32.xlu0 %v429_v19 }
 0x566   :  { %v437_v23 = vsel %vm87_vm0, %v435_v20, 0.0 }
 0x567   :  { %v424_v24 = vpop.f32.mrf.mxu3  ;;  %438 = vadd.xlane.f32.xlu2 %v437_v23 }
 0x568   :  { %v425_v25 = vadd.f32 %v424_v24, %v2907_v21 }
 0x56a   :  { %v2912_v3 = vadd.f32 %v425_v25, %v2765_v7  ;;  %v2419_v7 = vld [vmem:[%s3527_s7] sm:$0xff] }
 0x56b   :  { %500 = vmatpush.bf16.msra.mxu0 %v2419_v7  ;;  %1010 = vmatpush.bf16.msra.mxu1 %v2419_v7  ;;  %v2424_v7 = vld [vmem:[%s3529_s9 + $0x18] sm:$0xff] }
 0x56c   :  { %v432_v27 = vsel %vm91_vm1, %v2912_v3, 0.0  ;;  %v436_v28 = vmul.f32 %v2912_v3, %v2912_v3  ;;  %628 = vmatpush.bf16.msrb.mxu3 %v2424_v7  ;;  %1113 = vmatpush.bf16.msra.mxu2 %v2424_v7 }
 0x56d   :  { %433 = vadd.xlane.f32.xlu1 %v432_v27 }
 0x56e   :  { %v440_v29 = vsel %vm91_vm1, %v436_v28, 0.0 }
 0x56f   :  { %441 = vadd.xlane.f32.xlu0 %v440_v29  ;;  %700 = vmatpush.bf16.msrb.mxu0 %v2776_v12 }
 0x573   :  { %701 = vmatpush.bf16.msrb.mxu0 %v2782_v14 }
 0x5d8   :  { %v431_v32 = vpop.xlane.xlu0 %430 }
 0x5d9   :  { %v443_v33 = vmul.f32 0.03125, %v431_v32 }
 0x5da   :  { %v439_v35 = vpop.xlane.xlu2 %438 }
 0x5db   :  { %v447_v36 = vmul.f32 %v443_v33, %v443_v33  ;;  %v445_v37 = vmul.f32 0.03125, %v439_v35  ;;  %v451_v61 = vsub.f32 %v2898_v18, %v443_v33 }
 0x5dd   :  { %v449_v39 = vsub.f32 %v445_v37, %v447_v36 }
 0x5df   :  { %v453_v40 = vadd.f32 1e-06, %v449_v39 }
 0x5e0   :  { %v434_v41 = vpop.xlane.xlu1 %433 }
 0x5e1   :  { %2552 = vrsqrt.f32 %v453_v40  ;;  %v444_v42 = vmul.f32 0.03125, %v434_v41  ;;  %vm461_vm2 = vweird.f32 %v453_v40 }
 0x5e2   :  { %v442_v43 = vpop.xlane.xlu0 %441 }
 0x5e3   :  { %v448_v44 = vmul.f32 %v444_v42, %v444_v42  ;;  %v446_v45 = vmul.f32 0.03125, %v442_v43  ;;  %v452_v62 = vsub.f32 %v2912_v3, %v444_v42  ;;  %v2423_v42 = vld [vmem:[%s3529_s9 + $0x10] sm:$0xff] }
 0x5e4   :  { %629 = vmatpush.bf16.msrb.mxu3 %v2423_v42  ;;  %1114 = vmatpush.bf16.msra.mxu2 %v2423_v42 }
 0x5e5   :  { %v450_v46 = vsub.f32 %v446_v45, %v448_v44 }
 0x5e7   :  { %v2553_v48 = vpop.eup %2552  ;;  %v454_v49 = vadd.f32 1e-06, %v450_v46 }
 0x5e8   :  { %v456_v50 = vmul.f32 %v2553_v48, %v453_v40  ;;  %vm462_vm15 = vweird.f32 %v2553_v48 }
 0x5e9   :  { %2554 = vrsqrt.f32 %v454_v49  ;;  %vm463_vm4 = vmor %vm461_vm2, %vm462_vm15  ;;  %vm471_vm5 = vweird.f32 %v454_v49 }
 0x5ea   :  { %v457_v52 = vmul.f32 %v2553_v48, %v456_v50 }
 0x5ec   :  { %v458_v53 = vmul.f32 0.5, %v457_v52  ;;  %v2422_v52 = vld [vmem:[%s3529_s9 + $0x8] sm:$0xff] }
 0x5ed   :  { %630 = vmatpush.bf16.msrb.mxu3 %v2422_v52  ;;  %1115 = vmatpush.bf16.msra.mxu2 %v2422_v52 }
 0x5ee   :  { %v459_v55 = vsub.f32 1.5, %v458_v53 }
 0x5ef   :  { %v2555_v54 = vpop.eup %2554 }
 0x5f0   :  { %v466_v56 = vmul.f32 %v2555_v54, %v454_v49  ;;  %v460_v58 = vmul.f32 %v2553_v48, %v459_v55  ;;  %vm472_vm3 = vweird.f32 %v2555_v54 }
 0x5f1   :  { %vm473_vm6 = vmor %vm471_vm5, %vm472_vm3 }
 0x5f2   :  { %v467_v12 = vmul.f32 %v2555_v54, %v466_v56  ;;  %v464_v14 = vsel %vm463_vm4, %v2553_v48, %v460_v58 }
 0x5f3   :  { %v475_v0 = vmul.f32 %v464_v14, %v451_v61 }
 0x5f4   :  { %v468_v57 = vmul.f32 0.5, %v467_v12 }
 0x5f6   :  { %v469_v59 = vsub.f32 1.5, %v468_v57  ;;  %v2421_v57 = vld [vmem:[%s3529_s9] sm:$0xff] }
 0x5f7   :  { %631 = vmatpush.bf16.msrb.mxu3 %v2421_v57  ;;  %1116 = vmatpush.bf16.msra.mxu2 %v2421_v57 }
 0x5f8   :  { %v470_v60 = vmul.f32 %v2555_v54, %v469_v59 }
 0x5fa   :  { %v474_v63 = vsel %vm473_vm6, %v2555_v54, %v470_v60 }
 0x5fb   :  { %v476_v1 = vmul.f32 %v474_v63, %v452_v62 }
 0x5fd   :  { %v477_v2 = vpack.c.bf16 %v476_v1, %v475_v0 }
 0x5ff   :  { %2291 = vmatmul.msk.bf16.vlgmr.msra.gmra.mxu0 %vm87_vm0, %v477_v2 }
 0x67c   :  { %v502_v6 = vpop.f32.mrf.mxu0 }
 0x67d   :  { %v2936_v8 = vadd.f32 %v502_v6, %v2933_v4 }
 0x67f   :  { %v2939_v9 = vmul.f32 0.70710677, %v2936_v8 }
 0x681   :  { %v511_v10 = vmul.f32 %v2939_v9, %v2939_v9 }
 0x683   :  { %v512_v11 = vmin.f32 %v511_v10, 16.0 }
 0x684   :  { %v504_v13 = vpop.f32.mrf.mxu0 }
 0x685   :  { %v513_v16 = vmul.f32 2.1237322e-06, %v512_v11  ;;  %v524_v17 = vmul.f32 3.8918573e-05, %v512_v11  ;;  %v2949_v19 = vadd.f32 %v504_v13, %v2946_v5 }
 0x687   :  { %v514_v20 = vadd.f32 0.00028619796, %v513_v16  ;;  %v525_v23 = vadd.f32 0.001143296, %v524_v17  ;;  %v2952_v24 = vmul.f32 0.70710677, %v2949_v19 }
 0x688   :  { %v508_v52 = vmul.f32 0.5, %v2949_v19 }
 0x689   :  { %v526_v25 = vmul.f32 %v525_v23, %v512_v11  ;;  %v551_v27 = vmul.f32 %v2952_v24, %v2952_v24  ;;  %v515_v28 = vmul.f32 %v514_v20, %v512_v11 }
 0x68b   :  { %v527_v29 = vadd.f32 0.014752088, %v526_v25  ;;  %v552_v31 = vmin.f32 %v551_v27, 16.0  ;;  %v516_v36 = vadd.f32 0.0036580483, %v515_v28 }
 0x68d   :  { %v528_v32 = vmul.f32 %v527_v29, %v512_v11  ;;  %v553_v33 = vmul.f32 2.1237322e-06, %v552_v31  ;;  %v564_v35 = vmul.f32 3.8918573e-05, %v552_v31  ;;  %v517_v45 = vmul.f32 %v516_v36, %v512_v11 }
 0x68f   :  { %v529_v37 = vadd.f32 0.112945676, %v528_v32  ;;  %v554_v39 = vadd.f32 0.00028619796, %v553_v33  ;;  %v565_v40 = vadd.f32 0.001143296, %v564_v35 }
 0x690   :  { %v518_v54 = vadd.f32 0.05243302, %v517_v45 }
 0x691   :  { %v530_v41 = vmul.f32 %v529_v37, %v512_v11  ;;  %v555_v43 = vmul.f32 %v554_v39, %v552_v31  ;;  %v566_v44 = vmul.f32 %v565_v40, %v552_v31 }
 0x692   :  { %v519_v59 = vmul.f32 %v518_v54, %v512_v11 }
 0x693   :  { %v531_v46 = vadd.f32 0.4994258, %v530_v41  ;;  %v556_v48 = vadd.f32 0.0036580483, %v555_v43  ;;  %v567_v49 = vadd.f32 0.014752088, %v566_v44 }
 0x694   :  { %v520_v63 = vadd.f32 0.18741608, %v519_v59  ;;  %v2988_v59 = vld [vmem:[%s3530_s10 + $0x8] sm:$0x3] }
 0x695   :  { %v532_v50 = vmul.f32 %v531_v46, %v512_v11  ;;  %v568_v53 = vmul.f32 %v567_v49, %v552_v31  ;;  %v557_v56 = vmul.f32 %v556_v48, %v552_v31 }
 0x696   :  { %v521_v10 = vmul.f32 %v520_v63, %v512_v11 }
 0x697   :  { %v533_v55 = vadd.f32 1.0, %v532_v50  ;;  %v569_v12 = vadd.f32 0.112945676, %v568_v53  ;;  %v558_v14 = vadd.f32 0.05243302, %v557_v56  ;;  %v507_v50 = vmul.f32 0.5, %v2936_v8 }
 0x698   :  { %v522_v25 = vadd.f32 1.1283791, %v521_v10  ;;  %v2257_v8 = vld [vmem:[%s3521_s1 + $0x10] sm:$0xff] }
 0x699   :  { %2556 = vrcp.f32 %v533_v55  ;;  %v570_v58 = vmul.f32 %v569_v12, %v552_v31  ;;  %v559_v1 = vmul.f32 %v558_v14, %v552_v31  ;;  %v545_v16 = vand.u32 2147483648, %v533_v55 }
 0x69a   :  { %v543_v20 = vand.u32 2147483647, %v533_v55  ;;  %vm539_vm15 = vweird.f32 %v533_v55  ;;  %v523_v35 = vmul.f32 %v522_v25, %v2939_v9 }
 0x69b   :  { %v571_v60 = vadd.f32 0.4994258, %v570_v58  ;;  %v560_v17 = vadd.f32 0.18741608, %v559_v1  ;;  %v546_v29 = vor.u32 1.1754944e-38, %v545_v16 }
 0x69c   :  { %vm544_vm3 = vcmp.eq.f32.partialorder %v543_v20, 8.507059e+37 }
 0x69d   :  { %v572_v61 = vmul.f32 %v571_v60, %v552_v31  ;;  %v561_v32 = vmul.f32 %v560_v17, %v552_v31 }
 0x69f   :  { %v2557_v62 = vpop.eup %2556  ;;  %v573_v2 = vadd.f32 1.0, %v572_v61  ;;  %v562_v11 = vadd.f32 1.1283791, %v561_v32 }
 0x6a0   :  { %v535_v0 = vmul.f32 %v2557_v62, %v533_v55  ;;  %vm540_vm7 = vweird.f32 %v2557_v62 }
 0x6a1   :  { %2558 = vrcp.f32 %v573_v2  ;;  %vm541_vm2 = vmor %vm539_vm15, %vm540_vm7  ;;  %v585_v37 = vand.u32 2147483648, %v573_v2  ;;  %v583_v41 = vand.u32 2147483647, %v573_v2  ;;  %vm579_vm5 = vweird.f32 %v573_v2 }
 0x6a2   :  { %v536_v6 = vsub.f32 1.0, %v535_v0  ;;  %v563_v45 = vmul.f32 %v562_v11, %v2952_v24  ;;  %vm620_vm15 = vcmask 523264   ;;  %v2976_v24 = vld [vmem:[%s3530_s10] sm:$0xff] }
 0x6a3   :  { %v586_v43 = vor.u32 1.1754944e-38, %v585_v37  ;;  %vm584_vm7 = vcmp.eq.f32.partialorder %v583_v41, 8.507059e+37 }
 0x6a4   :  { %v537_v13 = vmul.f32 %v2557_v62, %v536_v6 }
 0x6a6   :  { %v538_v23 = vadd.f32 %v2557_v62, %v537_v13 }
 0x6a7   :  { %v2559_v27 = vpop.eup %2558 }
 0x6a8   :  { %v542_v28 = vsel %vm541_vm2, %v2557_v62, %v538_v23  ;;  %v575_v7 = vmul.f32 %v2559_v27, %v573_v2  ;;  %vm580_vm4 = vweird.f32 %v2559_v27 }
 0x6a9   :  { %v547_v33 = vsel %vm544_vm3, %v546_v29, %v542_v28  ;;  %vm581_vm6 = vmor %vm579_vm5, %vm580_vm4 }
 0x6aa   :  { %v576_v36 = vsub.f32 1.0, %v575_v7  ;;  %v548_v39 = vmul.f32 %v547_v33, %v523_v35 }
 0x6ac   :  { %v577_v40 = vmul.f32 %v2559_v27, %v576_v36  ;;  %v2292_v44 = vclamps-f32 %v548_v39, 1.0 }
 0x6ae   :  { %v578_v42 = vadd.f32 %v2559_v27, %v577_v40  ;;  %v591_v49 = vadd.f32 1.0, %v2292_v44 }
 0x6b0   :  { %v582_v31 = vsel %vm581_vm6, %v2559_v27, %v578_v42  ;;  %v593_v54 = vmul.f32 %v591_v49, %v507_v50 }
 0x6b1   :  { %v587_v46 = vsel %vm584_vm7, %v586_v43, %v582_v31 }
 0x6b2   :  { %v588_v48 = vmul.f32 %v587_v46, %v563_v45 }
 0x6b4   :  { %v2293_v9 = vclamps-f32 %v588_v48, 1.0 }
 0x6b6   :  { %v592_v53 = vadd.f32 1.0, %v2293_v9 }
 0x6b8   :  { %v594_v55 = vmul.f32 %v592_v53, %v508_v52 }
 0x6ba   :  { %v595_v56 = vpack.c.bf16 %v594_v55, %v593_v54 }
 0x6bc   :  { %2310 = vmatmul.msk.bf16.vlgmr.msrb.gmra.mxu3 %vm620_vm15, %v595_v56 }
 0x73f   :  { %v633_v12 = vpop.f32.mrf.mxu3 }
 0x740   :  { %v634_v57 = vadd.f32 %v633_v12, %v2976_v24 }
 0x742   :  { %v638_v19 = vadd.f32 %v634_v57, %v2898_v18  ;;  %v2258_v18 = vld [vmem:[%s3521_s1 + $0x18] sm:$0x3] }
 0x744   :  { %v2983_v58 = vadd.f32 %v2257_v8, %v638_v19 }
 0x746   :  { %v642_v14 = vsel %vm87_vm0, %v2983_v58, 0.0  ;;  %v648_v60 = vmul.f32 %v2983_v58, %v2983_v58 }
 0x747   :  { %v635_v61 = vpop.f32.mrf.mxu3  ;;  %643 = vadd.xlane.f32.xlu1 %v642_v14 }
 0x748   :  { %v636_v62 = vadd.f32 %v635_v61, %v2988_v59  ;;  %v650_v63 = vsel %vm87_vm0, %v648_v60, 0.0 }
 0x749   :  { %651 = vadd.xlane.f32.xlu2 %v650_v63 }
 0x74a   :  { %v639_v0 = vadd.f32 %v636_v62, %v2912_v3 }
 0x74c   :  { %v3000_v1 = vadd.f32 %v2258_v18, %v639_v0 }
 0x74e   :  { %v645_v2 = vsel %vm91_vm1, %v3000_v1, 0.0  ;;  %v649_v6 = vmul.f32 %v3000_v1, %v3000_v1 }
 0x74f   :  { %646 = vadd.xlane.f32.xlu0 %v645_v2 }
 0x750   :  { %v653_v10 = vsel %vm91_vm1, %v649_v6, 0.0 }
 0x751   :  { %654 = vadd.xlane.f32.xlu1 %v653_v10 }
 0x7ba   :  { %v644_v13 = vpop.xlane.xlu1 %643 }
 0x7bb   :  { %v656_v16 = vmul.f32 0.03125, %v644_v13 }
 0x7bc   :  { %v652_v17 = vpop.xlane.xlu2 %651 }
 0x7bd   :  { %v660_v20 = vmul.f32 %v656_v16, %v656_v16  ;;  %v658_v23 = vmul.f32 0.03125, %v652_v17  ;;  %v664_v49 = vsub.f32 %v2983_v58, %v656_v16 }
 0x7bf   :  { %v662_v25 = vsub.f32 %v658_v23, %v660_v20 }
 0x7c1   :  { %v666_v27 = vadd.f32 1e-06, %v662_v25 }
 0x7c2   :  { %v647_v3 = vpop.xlane.xlu0 %646 }
 0x7c3   :  { %2560 = vrsqrt.f32 %v666_v27  ;;  %v657_v28 = vmul.f32 0.03125, %v647_v3  ;;  %vm674_vm3 = vweird.f32 %v666_v27 }
 0x7c4   :  { %v655_v29 = vpop.xlane.xlu1 %654 }
 0x7c5   :  { %v661_v32 = vmul.f32 %v657_v28, %v657_v28  ;;  %v659_v7 = vmul.f32 0.03125, %v655_v29  ;;  %v665_v9 = vsub.f32 %v3000_v1, %v657_v28 }
 0x7c7   :  { %v663_v33 = vsub.f32 %v659_v7, %v661_v32 }
 0x7c9   :  { %v2561_v35 = vpop.eup %2560  ;;  %v667_v36 = vadd.f32 1e-06, %v663_v33 }
 0x7ca   :  { %v669_v11 = vmul.f32 %v2561_v35, %v666_v27  ;;  %vm675_vm2 = vweird.f32 %v2561_v35 }
 0x7cb   :  { %2562 = vrsqrt.f32 %v667_v36  ;;  %vm676_vm5 = vmor %vm674_vm3, %vm675_vm2  ;;  %vm684_vm6 = vweird.f32 %v667_v36 }
 0x7cc   :  { %v670_v37 = vmul.f32 %v2561_v35, %v669_v11 }
 0x7ce   :  { %v671_v39 = vmul.f32 0.5, %v670_v37 }
 0x7d0   :  { %v672_v41 = vsub.f32 1.5, %v671_v39 }
 0x7d1   :  { %v2563_v40 = vpop.eup %2562 }
 0x7d2   :  { %v679_v42 = vmul.f32 %v2563_v40, %v667_v36  ;;  %v673_v44 = vmul.f32 %v2561_v35, %v672_v41  ;;  %vm685_vm4 = vweird.f32 %v2563_v40 }
 0x7d3   :  { %vm686_vm7 = vmor %vm684_vm6, %vm685_vm4 }
 0x7d4   :  { %v680_v43 = vmul.f32 %v2563_v40, %v679_v42  ;;  %v677_v48 = vsel %vm676_vm5, %v2561_v35, %v673_v44 }
 0x7d5   :  { %v688_v52 = vmul.f32 %v677_v48, %v664_v49 }
 0x7d6   :  { %v681_v45 = vmul.f32 0.5, %v680_v43 }
 0x7d8   :  { %v682_v31 = vsub.f32 1.5, %v681_v45 }
 0x7da   :  { %v683_v46 = vmul.f32 %v2563_v40, %v682_v31 }
 0x7dc   :  { %v687_v50 = vsel %vm686_vm7, %v2563_v40, %v683_v46 }
 0x7dd   :  { %v689_v53 = vmul.f32 %v687_v50, %v665_v9 }
 0x7df   :  { %v690_v54 = vpack.c.bf16 %v689_v53, %v688_v52 }
 0x7e1   :  { %2311 = vmatmul.msk.bf16.vlgmr.msrb.gmra.mxu0 %vm87_vm0, %v690_v54 }
 0x85e   :  { %v703_v55 = vpop.f32.mrf.mxu0 }
 0x85f   :  { %v704_v56 = vadd.f32 %v703_v55, %v2791_v47 }
 0x861   :  { %v728_v8 = vrot.slane %v704_v56, 2  ;;  %v710_v19 = vrot.slane %v704_v56, 6  ;;  %v719_v62 = vrot.slane %v704_v56, 4 }
 0x866   :  { %v705_v12 = vpop.f32.mrf.mxu0 }
 0x867   :  { %v706_v57 = vadd.f32 %v705_v12, %v2798_v51 }
 0x869   :  { %v720_v14 = vrot.slane %v706_v57, 4  ;;  %v729_v60 = vrot.slane %v706_v57, 2  ;;  %v711_v61 = vrot.slane %v706_v57, 6 }
 0x86b   :  { %v730_v63 = vsel %vm189_vm8, %v728_v8, %v729_v60  ;;  %v712_v18 = vsel %vm169_vm10, %v710_v19, %v711_v61  ;;  %v721_v0 = vsel %vm179_vm9, %v719_v62, %v720_v14 }
 0x86c   :  { %733 = vrot.lane.b32.xlu0 %v730_v63, %s2669_s21  ;;  %715 = vrot.lane.b32.xlu2 %v712_v18, %s2671_s25  ;;  %v2466_v47 = vpack.i.bf16 %v721_v0, %v719_v62 }
 0x86e   :  { %2467 = vrot.lane.b32.xlu1 %v2466_v47, %s2670_s24 }
 0x874   :  { %731 = vrot.lane.b32.xlu0 %v728_v8, %s2669_s21  ;;  %713 = vrot.lane.b32.xlu2 %v710_v19, %s2671_s25 }
 0x8c6   :  { %v716_v51 = vpop.permute.xlu2 %715 }
 0x8ce   :  { %v714_v2 = vpop.permute.xlu2 %713 }
 0x8cf   :  { %v737_v6 = vsel %vm169_vm10, %v706_v57, %v714_v2 }
 0x8d0   :  { %v3021_v10 = vpack.c.bf16 %v737_v6, %v704_v56 }
 0x8d2   :  { %746 = vrot.lane.b32.xlu2 %v3021_v10, %s2672_s26 }
 0x8de   :  { %v734_v13 = vpop.permute.xlu0 %733 }
 0x8df   :  { %v742_v16 = vpack.c.bf16 %v734_v13, %v734_v13 }
 0x8e0   :  { %v2468_v17 = vpop.permute.xlu1 %2467 }
 0x8e1   :  { %750 = vrot.lane.b32.xlu0 %v742_v16, %s2672_s26  ;;  %v2469_v20 = vunpack.i.l.bf16 %v2468_v17  ;;  %v2470_v23 = vunpack.i.h.bf16 %v2468_v17 }
 0x8e3   :  { %v738_v27 = vsel %vm179_vm9, %v716_v51, %v2469_v20 }
 0x8e6   :  { %v732_v25 = vpop.permute.xlu0 %731 }
 0x8e7   :  { %v739_v3 = vsel %vm189_vm8, %v2470_v23, %v732_v25 }
 0x8e8   :  { %v741_v28 = vpack.c.bf16 %v739_v3, %v738_v27 }
 0x8ea   :  { %748 = vrot.lane.b32.xlu1 %v741_v28, %s2672_s26 }
 0x92c   :  { %v747_v35 = vpop.permute.xlu2 %746 }
 0x92d   :  { %v762_v36 = vsel %vm214_vm11, %v747_v35, 0 }
 0x953   :  { %v751_v29 = vpop.permute.xlu0 %750 }
 0x954   :  { %v768_v32 = vsel %vm214_vm11, %v751_v29, 0 }
 0x955   :  { %775 = vmatpush.bf16.xpose.msra.mxu3 %v768_v32 }
 0x95c   :  { %v749_v7 = vpop.permute.xlu1 %748 }
 0x95d   :  { %v765_v33 = vsel %vm214_vm11, %v749_v7, 0 }
 0x95e   :  { %776 = vmatpush.bf16.xpose.msra.mxu3 %v765_v33 }
 0x966   :  { %777 = vmatpush.bf16.xpose.msra.mxu3 %v762_v36 }
 0x96d   :  { %2312 = vmatmul.msk.bf16.vlgmr.msra.gmra.mxu3 %vm214_vm11, %v3021_v10 }
 0x97d   :  { %2313 = vmatmul.msk.bf16.gmra.mxu3 %vm214_vm11, %v741_v28 }
 0x98d   :  { %2314 = vmatmul.msk.bf16.gmra.mxu3 %vm214_vm11, %v742_v16 }
 0x9f0   :  { %v779_v11 = vpop.f32.mrf.mxu3 }
 0x9f1   :  { %v780_v37 = vadd.f32 %v779_v11, %v2827_v22 }
 0x9f3   :  { %v793_v39 = vsel %vm256_vm12, %v780_v37, -inf }
 0x9f4   :  { %794 = vmax.xlane.f32.xlu0 %v793_v39 }
 0x9f8   :  { %v781_v40 = vpop.f32.mrf.mxu3 }
 0x9f9   :  { %v782_v41 = vadd.f32 %v781_v40, %v2834_v26 }
 0x9fb   :  { %v796_v42 = vsel %vm256_vm12, %v782_v41, -inf }
 0x9fc   :  { %797 = vmax.xlane.f32.xlu1 %v796_v42 }
 0xa00   :  { %v784_v43 = vpop.f32.mrf.mxu3 }
 0xa01   :  { %v785_v44 = vadd.f32 %v784_v43, %v2841_v30 }
 0xa03   :  { %v799_v45 = vsel %vm256_vm12, %v785_v44, -inf }
 0xa04   :  { %800 = vmax.xlane.f32.xlu2 %v799_v45 }
 0xa08   :  { %v786_v31 = vpop.f32.mrf.mxu3 }
 0xa09   :  { %v787_v46 = vadd.f32 %v786_v31, %v2848_v34 }
 0xa0b   :  { %v802_v22 = vsel %vm256_vm12, %v787_v46, -inf }
 0xa0c   :  { %803 = vmax.xlane.f32.xlu0 %v802_v22 }
 0xa10   :  { %v789_v48 = vpop.f32.mrf.mxu3 }
 0xa11   :  { %v790_v49 = vadd.f32 %v789_v48, %v2855_v38 }
 0xa13   :  { %v805_v26 = vsel %vm256_vm12, %v790_v49, -inf }
 0xa14   :  { %806 = vmax.xlane.f32.xlu1 %v805_v26 }
 0xa18   :  { %v791_v9 = vpop.f32.mrf.mxu3 }
 0xa2d   :  { %855 = vrot.lane.b32.xlu1 %v742_v16, %s2673_s19 }
 0xa67   :  { %v795_v50 = vpop.xlane.xlu0 %794 }
 0xa68   :  { %v808_v30 = vsub.f32 %v780_v37, %v795_v50 }
 0xa6a   :  { %v813_v52 = vmul.f32 1.442695, %v808_v30 }
 0xa6c   :  { %2564 = vpow2.f32 %v813_v52 }
 0xa6f   :  { %v798_v53 = vpop.xlane.xlu1 %797 }
 0xa70   :  { %v809_v54 = vsub.f32 %v782_v41, %v798_v53 }
 0xa72   :  { %v2565_v55 = vpop.eup %2564  ;;  %v815_v34 = vmul.f32 1.442695, %v809_v54 }
 0xa73   :  { %v823_v56 = vsel %vm256_vm12, %v2565_v55, 0.0 }
 0xa74   :  { %2566 = vpow2.f32 %v815_v34  ;;  %824 = vadd.xlane.f32.xlu2 %v823_v56 }
 0xa77   :  { %v801_v0 = vpop.xlane.xlu2 %800 }
 0xa78   :  { %v810_v51 = vsub.f32 %v785_v44, %v801_v0 }
 0xa7a   :  { %v2567_v12 = vpop.eup %2566  ;;  %v817_v2 = vmul.f32 1.442695, %v810_v51 }
 0xa7b   :  { %v826_v38 = vsel %vm256_vm12, %v2567_v12, 0.0 }
 0xa7c   :  { %827 = vadd.xlane.f32.xlu0 %v826_v38 }
 0xa7f   :  { %v804_v62 = vpop.xlane.xlu0 %803 }
 0xa80   :  { %v811_v18 = vsub.f32 %v787_v46, %v804_v62 }
 0xa82   :  { %v819_v47 = vmul.f32 1.442695, %v811_v18 }
 0xa87   :  { %v807_v57 = vpop.xlane.xlu1 %806 }
 0xa88   :  { %v812_v8 = vsub.f32 %v790_v49, %v807_v57 }
 0xa8a   :  { %v821_v19 = vmul.f32 1.442695, %v812_v8 }
 0xa8c   :  { %2568 = vpow2.f32 %v821_v19  ;;  %853 = vrot.lane.b32.xlu2 %v741_v28, %s2673_s19 }
 0xa8d   :  { %2570 = vpow2.f32 %v819_v47 }
 0xa8e   :  { %2572 = vpow2.f32 %v817_v2 }
 0xa90   :  { %851 = vrot.lane.b32.xlu0 %v3021_v10, %s2673_s19 }
 0xa92   :  { %v2569_v14 = vpop.eup %2568 }
 0xa93   :  { %v835_v60 = vsel %vm256_vm12, %v2569_v14, 0.0  ;;  %v2571_v6 = vpop.eup %2570 }
 0xa94   :  { %836 = vadd.xlane.f32.xlu1 %v835_v60  ;;  %v832_v13 = vsel %vm256_vm12, %v2571_v6, 0.0  ;;  %v2573_v10 = vpop.eup %2572 }
 0xa95   :  { %v829_v16 = vsel %vm256_vm12, %v2573_v10, 0.0 }
 0xa9f   :  { %v856_v61 = vpop.permute.xlu1 %855 }
 0xaa0   :  { %v869_v63 = vsel %vm179_vm9, %v856_v61, 0 }
 0xaa1   :  { %876 = vmatpush.bf16.msra.mxu0 %v869_v63 }
 0xab5   :  { %833 = vadd.xlane.f32.xlu2 %v832_v13 }
 0xaba   :  { %830 = vadd.xlane.f32.xlu0 %v829_v16 }
 0xae7   :  { %v825_v17 = vpop.xlane.xlu2 %824 }
 0xaef   :  { %v854_v20 = vpop.permute.xlu2 %853  ;;  %v828_v23 = vpop.xlane.xlu0 %827 }
 0xaf0   :  { %877 = vmatpush.bf16.msra.mxu0 %v854_v20  ;;  %2574 = vrcp.f32 %v828_v23 }
 0xaf1   :  { %2576 = vrcp.f32 %v825_v17 }
 0xaf6   :  { %v2575_v25 = vpop.eup %2574 }
 0xaf7   :  { %v2577_v27 = vpop.eup %2576  ;;  %v844_v3 = vmul.f32 %v2575_v25, %v2567_v12 }
 0xaf8   :  { %v843_v28 = vmul.f32 %v2577_v27, %v2565_v55 }
 0xafa   :  { %v848_v32 = vpack.c.bf16 %v844_v3, %v843_v28 }
 0xb02   :  { %v852_v29 = vpop.permute.xlu0 %851 }
 0xb03   :  { %878 = vmatpush.bf16.msra.mxu0 %v852_v29 }
 0xb06   :  { %2315 = vmatmul.msk.bf16.vlgmr.msra.gmra.mxu0 %vm256_vm12, %v848_v32 }
 0xb07   :  { %v837_v39 = vpop.xlane.xlu1 %836 }
 0xb28   :  { %v834_v7 = vpop.xlane.xlu2 %833 }
 0xb29   :  { %2578 = vrcp.f32 %v834_v7 }
 0xb2d   :  { %v831_v33 = vpop.xlane.xlu0 %830 }
 0xb2e   :  { %2580 = vrcp.f32 %v831_v33 }
 0xb2f   :  { %v2579_v35 = vpop.eup %2578  ;;  %2582 = vrcp.f32 %v837_v39 }
 0xb30   :  { %v846_v37 = vmul.f32 %v2579_v35, %v2571_v6 }
 0xb34   :  { %v2581_v36 = vpop.eup %2580 }
 0xb35   :  { %v845_v11 = vmul.f32 %v2581_v36, %v2573_v10  ;;  %v2583_v41 = vpop.eup %2582 }
 0xb36   :  { %v847_v42 = vmul.f32 %v2583_v41, %v2569_v14 }
 0xb37   :  { %v849_v40 = vpack.c.bf16 %v846_v37, %v845_v11 }
 0xb38   :  { %v850_v43 = vpack.c.bf16 %v847_v42, %v847_v42 }
 0xb39   :  { %2316 = vmatmul.msk.bf16.gmra.mxu0 %vm256_vm12, %v849_v40 }
 0xb49   :  { %2317 = vmatmul.msk.bf16.gmra.mxu0 %vm256_vm12, %v850_v43 }
 0xb83   :  { %v880_v44 = vpop.f32.mrf.mxu0 }
 0xb8b   :  { %v882_v45 = vpop.f32.mrf.mxu0 }
 0xb8c   :  { %v896_v46 = vrot.slane %v882_v45, 2 }
 0xbb6   :  { %v885_v31 = vpop.f32.mrf.mxu0 }
 0xbb7   :  { %v897_v22 = vrot.slane %v885_v31, 2  ;;  %v906_v9 = vrot.slane %v885_v31, 4 }
 0xbb9   :  { %v898_v48 = vsel %vm189_vm8, %v896_v46, %v897_v22 }
 0xbba   :  { %v2471_v49 = vpack.i.bf16 %v897_v22, %v898_v48 }
 0xbbc   :  { %2472 = vrot.lane.b32.xlu2 %v2471_v49, %s2674_s20 }
 0xbbe   :  { %v887_v26 = vpop.f32.mrf.mxu0 }
 0xbbf   :  { %v907_v50 = vrot.slane %v887_v26, 4  ;;  %v916_v54 = vrot.slane %v887_v26, 6 }
 0xbc1   :  { %v908_v30 = vsel %vm179_vm9, %v906_v9, %v907_v50 }
 0xbc2   :  { %v2476_v52 = vpack.i.bf16 %v907_v50, %v908_v30 }
 0xbc4   :  { %2477 = vrot.lane.b32.xlu0 %v2476_v52, %s2675_s22 }
 0xbc6   :  { %v890_v53 = vpop.f32.mrf.mxu0 }
 0xbc7   :  { %v917_v55 = vrot.slane %v890_v53, 6 }
 0xbc9   :  { %v918_v34 = vsel %vm169_vm10, %v916_v54, %v917_v55 }
 0xbca   :  { %v2481_v56 = vpack.i.bf16 %v917_v55, %v918_v34 }
 0xbcc   :  { %2482 = vrot.lane.b32.xlu1 %v2481_v56, %s2676_s23 }
 0xbce   :  { %v892_v12 = vpop.f32.mrf.mxu0 }
 0xc16   :  { %v2473_v38 = vpop.permute.xlu2 %2472 }
 0xc17   :  { %v2475_v8 = vunpack.i.h.bf16 %v2473_v38  ;;  %v2474_v19 = vunpack.i.l.bf16 %v2473_v38 }
 0xc19   :  { %v926_v62 = vsel %vm214_vm11, %v882_v45, %v2475_v8  ;;  %v925_v63 = vsel %vm214_vm11, %v880_v44, %v2474_v19 }
 0xc36   :  { %v2478_v57 = vpop.permute.xlu0 %2477 }
 0xc37   :  { %v2480_v14 = vunpack.i.h.bf16 %v2478_v57  ;;  %v2479_v60 = vunpack.i.l.bf16 %v2478_v57 }
 0xc39   :  { %v928_v47 = vsel %vm391_vm13, %v926_v62, %v2480_v14  ;;  %v927_v51 = vsel %vm391_vm13, %v925_v63, %v2479_v60 }
 0xc3e   :  { %v2483_v61 = vpop.permute.xlu1 %2482 }
 0xc3f   :  { %v2485_v18 = vunpack.i.h.bf16 %v2483_v61  ;;  %v2484_v0 = vunpack.i.l.bf16 %v2483_v61 }
 0xc41   :  { %v930_v2 = vsel %vm3534_vm14, %v928_v47, %v2485_v18  ;;  %v929_v6 = vsel %vm3534_vm14, %v927_v51, %v2484_v0 }
 0xc42   :  { %v931_v13 = vpack.c.bf16 %v930_v2, %v929_v6 }
 0xc44   :  { %2318 = vmatmul.msk.bf16.vlgmr.msrb.gmra.mxu2 %vm87_vm0, %v931_v13 }
 0xcc7   :  { %v944_v10 = vpop.f32.mrf.mxu2 }
 0xcc8   :  { %v945_v16 = vadd.f32 %v944_v10, %v2894_v15 }
 0xcca   :  { %v3074_v17 = vadd.f32 %v945_v16, %v2983_v58 }
 0xccc   :  { %v951_v20 = vsel %vm87_vm0, %v3074_v17, 0.0  ;;  %v957_v23 = vmul.f32 %v3074_v17, %v3074_v17 }
 0xccd   :  { %952 = vadd.xlane.f32.xlu0 %v951_v20 }
 0xcce   :  { %v959_v25 = vsel %vm87_vm0, %v957_v23, 0.0 }
 0xccf   :  { %v946_v27 = vpop.f32.mrf.mxu2  ;;  %960 = vadd.xlane.f32.xlu1 %v959_v25 }
 0xcd0   :  { %v947_v3 = vadd.f32 %v946_v27, %v2907_v21 }
 0xcd2   :  { %v3083_v28 = vadd.f32 %v947_v3, %v3000_v1 }
 0xcd4   :  { %v954_v15 = vsel %vm91_vm1, %v3083_v28, 0.0  ;;  %v958_v58 = vmul.f32 %v3083_v28, %v3083_v28 }
 0xcd5   :  { %955 = vadd.xlane.f32.xlu2 %v954_v15 }
 0xcd6   :  { %v962_v29 = vsel %vm91_vm1, %v958_v58, 0.0 }
 0xcd7   :  { %963 = vadd.xlane.f32.xlu0 %v962_v29 }
 0xd40   :  { %v953_v32 = vpop.xlane.xlu0 %952 }
 0xd41   :  { %v965_v7 = vmul.f32 0.03125, %v953_v32 }
 0xd42   :  { %v961_v33 = vpop.xlane.xlu1 %960 }
 0xd43   :  { %v969_v35 = vmul.f32 %v965_v7, %v965_v7  ;;  %v967_v36 = vmul.f32 0.03125, %v961_v33  ;;  %v973_v54 = vsub.f32 %v3074_v17, %v965_v7 }
 0xd45   :  { %v971_v11 = vsub.f32 %v967_v36, %v969_v35 }
 0xd47   :  { %v975_v21 = vadd.f32 1e-06, %v971_v11 }
 0xd48   :  { %v956_v37 = vpop.xlane.xlu2 %955 }
 0xd49   :  { %2584 = vrsqrt.f32 %v975_v21  ;;  %v966_v1 = vmul.f32 0.03125, %v956_v37  ;;  %vm983_vm3 = vweird.f32 %v975_v21 }
 0xd4a   :  { %v964_v39 = vpop.xlane.xlu0 %963 }
 0xd4b   :  { %v970_v40 = vmul.f32 %v966_v1, %v966_v1  ;;  %v968_v41 = vmul.f32 0.03125, %v964_v39  ;;  %v974_v55 = vsub.f32 %v3083_v28, %v966_v1 }
 0xd4d   :  { %v972_v42 = vsub.f32 %v968_v41, %v970_v40 }
 0xd4f   :  { %v2585_v43 = vpop.eup %2584  ;;  %v976_v44 = vadd.f32 1e-06, %v972_v42 }
 0xd50   :  { %v978_v45 = vmul.f32 %v2585_v43, %v975_v21  ;;  %vm984_vm2 = vweird.f32 %v2585_v43 }
 0xd51   :  { %2586 = vrsqrt.f32 %v976_v44  ;;  %vm985_vm5 = vmor %vm983_vm3, %vm984_vm2  ;;  %vm993_vm6 = vweird.f32 %v976_v44 }
 0xd52   :  { %v979_v31 = vmul.f32 %v2585_v43, %v978_v45 }
 0xd54   :  { %v980_v46 = vmul.f32 0.5, %v979_v31 }
 0xd56   :  { %v981_v48 = vsub.f32 1.5, %v980_v46 }
 0xd57   :  { %v2587_v22 = vpop.eup %2586 }
 0xd58   :  { %v988_v49 = vmul.f32 %v2587_v22, %v976_v44  ;;  %v982_v9 = vmul.f32 %v2585_v43, %v981_v48  ;;  %vm994_vm4 = vweird.f32 %v2587_v22 }
 0xd59   :  { %vm995_vm7 = vmor %vm993_vm6, %vm994_vm4 }
 0xd5a   :  { %v989_v26 = vmul.f32 %v2587_v22, %v988_v49  ;;  %v986_v52 = vsel %vm985_vm5, %v2585_v43, %v982_v9 }
 0xd5b   :  { %v997_v56 = vmul.f32 %v986_v52, %v973_v54 }
 0xd5c   :  { %v990_v50 = vmul.f32 0.5, %v989_v26 }
 0xd5e   :  { %v991_v30 = vsub.f32 1.5, %v990_v50 }
 0xd60   :  { %v992_v53 = vmul.f32 %v2587_v22, %v991_v30 }
 0xd62   :  { %v996_v34 = vsel %vm995_vm7, %v2587_v22, %v992_v53 }
 0xd63   :  { %v998_v12 = vmul.f32 %v996_v34, %v974_v55 }
 0xd65   :  { %v999_v38 = vpack.c.bf16 %v998_v12, %v997_v56 }
 0xd67   :  { %2319 = vmatmul.msk.bf16.vlgmr.msra.gmra.mxu1 %vm87_vm0, %v999_v38 }
 0xde4   :  { %v1012_v57 = vpop.f32.mrf.mxu1 }
 0xde5   :  { %v3094_v8 = vadd.f32 %v1012_v57, %v2933_v4 }
 0xde7   :  { %v3097_v19 = vmul.f32 0.70710677, %v3094_v8 }
 0xde9   :  { %v1021_v14 = vmul.f32 %v3097_v19, %v3097_v19 }
 0xdeb   :  { %v1022_v60 = vmin.f32 %v1021_v14, 16.0 }
 0xdec   :  { %v1014_v61 = vpop.f32.mrf.mxu1 }
 0xded   :  { %v1023_v62 = vmul.f32 2.1237322e-06, %v1022_v60  ;;  %v1034_v63 = vmul.f32 3.8918573e-05, %v1022_v60  ;;  %v3102_v18 = vadd.f32 %v1014_v61, %v2946_v5 }
 0xdef   :  { %v1024_v0 = vadd.f32 0.00028619796, %v1023_v62  ;;  %v1035_v47 = vadd.f32 0.001143296, %v1034_v63  ;;  %v3105_v51 = vmul.f32 0.70710677, %v3102_v18 }
 0xdf1   :  { %v1036_v4 = vmul.f32 %v1035_v47, %v1022_v60  ;;  %v1061_v2 = vmul.f32 %v3105_v51, %v3105_v51  ;;  %v1025_v6 = vmul.f32 %v1024_v0, %v1022_v60 }
 0xdf3   :  { %v1037_v13 = vadd.f32 0.014752088, %v1036_v4  ;;  %v1062_v10 = vmin.f32 %v1061_v2, 16.0  ;;  %v1026_v25 = vadd.f32 0.0036580483, %v1025_v6 }
 0xdf5   :  { %v1038_v16 = vmul.f32 %v1037_v13, %v1022_v60  ;;  %v1063_v20 = vmul.f32 2.1237322e-06, %v1062_v10  ;;  %v1074_v23 = vmul.f32 3.8918573e-05, %v1062_v10  ;;  %v1027_v32 = vmul.f32 %v1026_v25, %v1022_v60 }
 0xdf6   :  { %v1017_v25 = vmul.f32 0.5, %v3094_v8 }
 0xdf7   :  { %v1039_v27 = vadd.f32 0.112945676, %v1038_v16  ;;  %v1064_v3 = vadd.f32 0.00028619796, %v1063_v20  ;;  %v1075_v5 = vadd.f32 0.001143296, %v1074_v23 }
 0xdf8   :  { %v1028_v21 = vadd.f32 0.05243302, %v1027_v32 }
 0xdf9   :  { %v1040_v15 = vmul.f32 %v1039_v27, %v1022_v60  ;;  %v1065_v58 = vmul.f32 %v1064_v3, %v1062_v10  ;;  %v1076_v29 = vmul.f32 %v1075_v5, %v1062_v10  ;;  %v1018_v27 = vmul.f32 0.5, %v3102_v18 }
 0xdfa   :  { %v1029_v41 = vmul.f32 %v1028_v21, %v1022_v60 }
 0xdfb   :  { %v1041_v7 = vadd.f32 0.4994258, %v1040_v15  ;;  %v1066_v33 = vadd.f32 0.0036580483, %v1065_v58  ;;  %v1077_v35 = vadd.f32 0.014752088, %v1076_v29 }
 0xdfc   :  { %v1030_v31 = vadd.f32 0.18741608, %v1029_v41 }
 0xdfd   :  { %v1042_v36 = vmul.f32 %v1041_v7, %v1022_v60  ;;  %v1078_v11 = vmul.f32 %v1077_v35, %v1062_v10  ;;  %v1067_v1 = vmul.f32 %v1066_v33, %v1062_v10  ;;  %v2660_v7 = vld [vmem:[%s3521_s1] sm:$0xff] }
 0xdfe   :  { %v1031_v26 = vmul.f32 %v1030_v31, %v1022_v60 }
 0xdff   :  { %v1043_v37 = vadd.f32 1.0, %v1042_v36  ;;  %v1079_v39 = vadd.f32 0.112945676, %v1078_v11  ;;  %v1068_v42 = vadd.f32 0.05243302, %v1067_v1 }
 0xe00   :  { %v1032_v54 = vadd.f32 1.1283791, %v1031_v26  ;;  %v2661_v11 = vld [vmem:[%s3521_s1 + $0x8] sm:$0x3] }
 0xe01   :  { %2588 = vrcp.f32 %v1043_v37  ;;  %v1080_v40 = vmul.f32 %v1079_v39, %v1062_v10  ;;  %v1069_v22 = vmul.f32 %v1068_v42, %v1062_v10  ;;  %v1055_v50 = vand.u32 2147483648, %v1043_v37 }
 0xe02   :  { %v1053_v52 = vand.u32 2147483647, %v1043_v37  ;;  %vm1049_vm3 = vweird.f32 %v1043_v37  ;;  %v1033_v14 = vmul.f32 %v1032_v54, %v3097_v19 }
 0xe03   :  { %v1081_v43 = vadd.f32 0.4994258, %v1080_v40  ;;  %v1070_v30 = vadd.f32 0.18741608, %v1069_v22  ;;  %v1056_v56 = vor.u32 1.1754944e-38, %v1055_v50 }
 0xe04   :  { %vm1054_vm5 = vcmp.eq.f32.partialorder %v1053_v52, 8.507059e+37 }
 0xe05   :  { %v1082_v44 = vmul.f32 %v1081_v43, %v1062_v10  ;;  %v1071_v12 = vmul.f32 %v1070_v30, %v1062_v10 }
 0xe07   :  { %v2589_v45 = vpop.eup %2588  ;;  %v1083_v48 = vadd.f32 1.0, %v1082_v44  ;;  %v1072_v60 = vadd.f32 1.1283791, %v1071_v12  ;;  %v3147_v44 = vld [vmem:[%s3522_s3 + $0x10] sm:$0xff] }
 0xe08   :  { %v1045_v46 = vmul.f32 %v2589_v45, %v1043_v37  ;;  %vm1050_vm2 = vweird.f32 %v2589_v45 }
 0xe09   :  { %2590 = vrcp.f32 %v1083_v48  ;;  %vm1051_vm4 = vmor %vm1049_vm3, %vm1050_vm2  ;;  %v1095_v62 = vand.u32 2147483648, %v1083_v48  ;;  %v1093_v47 = vand.u32 2147483647, %v1083_v48  ;;  %vm1089_vm7 = vweird.f32 %v1083_v48 }
 0xe0a   :  { %v1046_v49 = vsub.f32 1.0, %v1045_v46  ;;  %v1073_v13 = vmul.f32 %v1072_v60, %v3105_v51 }
 0xe0b   :  { %v1096_v2 = vor.u32 1.1754944e-38, %v1095_v62  ;;  %vm1094_vm2 = vcmp.eq.f32.partialorder %v1093_v47, 8.507059e+37 }
 0xe0c   :  { %v1047_v9 = vmul.f32 %v2589_v45, %v1046_v49 }
 0xe0e   :  { %v1048_v53 = vadd.f32 %v2589_v45, %v1047_v9 }
 0xe0f   :  { %v2591_v55 = vpop.eup %2590 }
 0xe10   :  { %v1052_v34 = vsel %vm1051_vm4, %v2589_v45, %v1048_v53  ;;  %v1085_v38 = vmul.f32 %v2591_v55, %v1083_v48  ;;  %vm1090_vm6 = vweird.f32 %v2591_v55 }
 0xe11   :  { %v1057_v57 = vsel %vm1054_vm5, %v1056_v56, %v1052_v34  ;;  %vm1091_vm14 = vmor %vm1089_vm7, %vm1090_vm6 }
 0xe12   :  { %v1086_v61 = vsub.f32 1.0, %v1085_v38  ;;  %v1058_v63 = vmul.f32 %v1057_v57, %v1033_v14 }
 0xe14   :  { %v1087_v0 = vmul.f32 %v2591_v55, %v1086_v61  ;;  %v2320_v6 = vclamps-f32 %v1058_v63, 1.0 }
 0xe16   :  { %v1088_v4 = vadd.f32 %v2591_v55, %v1087_v0  ;;  %v1101_v23 = vadd.f32 1.0, %v2320_v6 }
 0xe18   :  { %v1092_v10 = vsel %vm1091_vm14, %v2591_v55, %v1088_v4  ;;  %v1103_v5 = vmul.f32 %v1101_v23, %v1017_v25 }
 0xe19   :  { %v1097_v16 = vsel %vm1094_vm2, %v1096_v2, %v1092_v10  ;;  %vm3535_vm2 = vcmask 195584  }
 0xe1a   :  { %v1098_v20 = vmul.f32 %v1097_v16, %v1073_v13  ;;  %v3156_v13 = vld [vmem:[%s3523_s4 + $0x10] sm:$0xff]  ;;  %v3162_v16 = vld [vmem:[%s3523_s4 + $0x18] sm:$0x3] }
 0xe1c   :  { %v2321_v19 = vclamps-f32 %v1098_v20, 1.0 }
 0xe1e   :  { %v1102_v3 = vadd.f32 1.0, %v2321_v19 }
 0xe20   :  { %v1104_v15 = vmul.f32 %v1102_v3, %v1018_v27 }
 0xe22   :  { %v1105_v58 = vpack.c.bf16 %v1104_v15, %v1103_v5 }
 0xe24   :  { %2322 = vmatmul.msk.bf16.vlgmr.msra.gmra.mxu2 %vm620_vm15, %v1105_v58 }
 0xea7   :  { %v1118_v29 = vpop.f32.mrf.mxu2 }
 0xea8   :  { %v1119_v32 = vadd.f32 %v1118_v29, %v2976_v24 }
 0xeaa   :  { %v1123_v51 = vadd.f32 %v1119_v32, %v3074_v17 }
 0xeac   :  { %v3119_v33 = vadd.f32 %v2660_v7, %v1123_v51 }
 0xeae   :  { %v1163_v8 = vsel %vm87_vm0, %v3119_v33, 0.0  ;;  %v1169_v18 = vmul.f32 %v3119_v33, %v3119_v33 }
 0xeaf   :  { %v1120_v35 = vpop.f32.mrf.mxu2  ;;  %1164 = vadd.xlane.f32.xlu2 %v1163_v8 }
 0xeb0   :  { %v1121_v36 = vadd.f32 %v1120_v35, %v2988_v59  ;;  %v1171_v24 = vsel %vm87_vm0, %v1169_v18, 0.0 }
 0xeb1   :  { %1172 = vadd.xlane.f32.xlu0 %v1171_v24 }
 0xeb2   :  { %v1124_v17 = vadd.f32 %v1121_v36, %v3083_v28  ;;  %v3141_v28 = vld [vmem:[%s3522_s3 + $0x18] sm:$0xff] }
 0xeb3   :  { %1233 = vmatpush.bf16.msrb.mxu1 %v3141_v28 }
 0xeb4   :  { %v3131_v21 = vadd.f32 %v2661_v11, %v1124_v17 }
 0xeb6   :  { %v1166_v37 = vsel %vm91_vm1, %v3131_v21, 0.0  ;;  %v1170_v1 = vmul.f32 %v3131_v21, %v3131_v21 }
 0xeb7   :  { %1167 = vadd.xlane.f32.xlu1 %v1166_v37  ;;  %1234 = vmatpush.bf16.msrb.mxu1 %v3147_v44 }
 0xeb8   :  { %v1174_v59 = vsel %vm91_vm1, %v1170_v1, 0.0 }
 0xeb9   :  { %1175 = vadd.xlane.f32.xlu2 %v1174_v59 }
 0xf22   :  { %v1165_v39 = vpop.xlane.xlu2 %1164 }
 0xf23   :  { %v1177_v40 = vmul.f32 0.03125, %v1165_v39 }
 0xf24   :  { %v1173_v41 = vpop.xlane.xlu0 %1172 }
 0xf25   :  { %v1181_v42 = vmul.f32 %v1177_v40, %v1177_v40  ;;  %v1179_v43 = vmul.f32 0.03125, %v1173_v41  ;;  %v1185_v62 = vsub.f32 %v3119_v33, %v1177_v40 }
 0xf27   :  { %v1183_v45 = vsub.f32 %v1179_v43, %v1181_v42 }
 0xf29   :  { %v1187_v31 = vadd.f32 1e-06, %v1183_v45 }
 0xf2a   :  { %v1168_v46 = vpop.xlane.xlu1 %1167 }
 0xf2b   :  { %2592 = vrsqrt.f32 %v1187_v31  ;;  %v1178_v22 = vmul.f32 0.03125, %v1168_v46  ;;  %vm1195_vm3 = vweird.f32 %v1187_v31 }
 0xf2c   :  { %v1176_v48 = vpop.xlane.xlu2 %1175 }
 0xf2d   :  { %v1182_v49 = vmul.f32 %v1178_v22, %v1178_v22  ;;  %v1180_v26 = vmul.f32 0.03125, %v1176_v48  ;;  %v1186_v63 = vsub.f32 %v3131_v21, %v1178_v22  ;;  %v3192_v48 = vld [vmem:[%s3524_s2] sm:$0xff] }
 0xf2f   :  { %v1184_v9 = vsub.f32 %v1180_v26, %v1182_v49 }
 0xf31   :  { %v2593_v50 = vpop.eup %2592  ;;  %v1188_v30 = vadd.f32 1e-06, %v1184_v9 }
 0xf32   :  { %v1190_v52 = vmul.f32 %v2593_v50, %v1187_v31  ;;  %vm1196_vm14 = vweird.f32 %v2593_v50 }
 0xf33   :  { %2594 = vrsqrt.f32 %v1188_v30  ;;  %vm1197_vm5 = vmor %vm1195_vm3, %vm1196_vm14  ;;  %vm1205_vm6 = vweird.f32 %v1188_v30 }
 0xf34   :  { %v1191_v53 = vmul.f32 %v2593_v50, %v1190_v52  ;;  %vm3536_vm14 = vmmov %vm3535_vm2 }
 0xf36   :  { %v1192_v54 = vmul.f32 0.5, %v1191_v53 }
 0xf38   :  { %v1193_v34 = vsub.f32 1.5, %v1192_v54  ;;  %v3206_v54 = vld [vmem:[%s3524_s2 + $0x10] sm:$0xff] }
 0xf39   :  { %v2595_v55 = vpop.eup %2594 }
 0xf3a   :  { %v1200_v56 = vmul.f32 %v2595_v55, %v1188_v30  ;;  %v1194_v38 = vmul.f32 %v2593_v50, %v1193_v34  ;;  %vm1206_vm4 = vweird.f32 %v2595_v55 }
 0xf3b   :  { %vm1207_vm7 = vmor %vm1205_vm6, %vm1206_vm4 }
 0xf3c   :  { %v1201_v12 = vmul.f32 %v2595_v55, %v1200_v56  ;;  %v1198_v61 = vsel %vm1197_vm5, %v2593_v50, %v1194_v38  ;;  %v3199_v50 = vld [vmem:[%s3524_s2 + $0x8] sm:$0xff] }
 0xf3d   :  { %v1209_v47 = vmul.f32 %v1198_v61, %v1185_v62  ;;  %v3220_v61 = vld [vmem:[%s3524_s2 + $0x20] sm:$0xff] }
 0xf3e   :  { %v1202_v57 = vmul.f32 0.5, %v1201_v12  ;;  %v3213_v12 = vld [vmem:[%s3524_s2 + $0x18] sm:$0xff] }
 0xf40   :  { %v1203_v14 = vsub.f32 1.5, %v1202_v57 }
 0xf42   :  { %v1204_v60 = vmul.f32 %v2595_v55, %v1203_v14 }
 0xf44   :  { %v1208_v0 = vsel %vm1207_vm7, %v2595_v55, %v1204_v60 }
 0xf45   :  { %v1210_v4 = vmul.f32 %v1208_v0, %v1186_v63 }
 0xf47   :  { %v1211_v2 = vpack.c.bf16 %v1210_v4, %v1209_v47 }
 0xf49   :  { %2359 = vmatmul.msk.bf16.vlgmr.msrb.gmra.mxu1 %vm87_vm0, %v1211_v2 }
 0xfc6   :  { %v1236_v6 = vpop.f32.mrf.mxu1 }
 0xfc7   :  { %v1237_v10 = vadd.f32 %v3156_v13, %v1236_v6 }
 0xfc9   :  { %v1261_v19 = vrot.slane %v1237_v10, 2  ;;  %v1243_v25 = vrot.slane %v1237_v10, 6  ;;  %v1252_v15 = vrot.slane %v1237_v10, 4 }
 0xfce   :  { %v1238_v20 = vpop.f32.mrf.mxu1 }
 0xfcf   :  { %v1239_v23 = vadd.f32 %v3162_v16, %v1238_v20 }
 0xfd1   :  { %v1253_v27 = vrot.slane %v1239_v23, 4  ;;  %v1262_v3 = vrot.slane %v1239_v23, 2  ;;  %v1244_v5 = vrot.slane %v1239_v23, 6 }
 0xfd3   :  { %v1263_v58 = vsel %vm189_vm8, %v1261_v19, %v1262_v3  ;;  %v1245_v29 = vsel %vm169_vm10, %v1243_v25, %v1244_v5  ;;  %v1254_v32 = vsel %vm179_vm9, %v1252_v15, %v1253_v27 }
 0xfd4   :  { %1266 = vrot.lane.b32.xlu1 %v1263_v58, %s2669_s21  ;;  %1248 = vrot.lane.b32.xlu0 %v1245_v29, %s2671_s25  ;;  %v2486_v51 = vpack.i.bf16 %v1254_v32, %v1252_v15 }
 0xfd6   :  { %2487 = vrot.lane.b32.xlu2 %v2486_v51, %s2670_s24 }
 0xfdc   :  { %1246 = vrot.lane.b32.xlu1 %v1243_v25, %s2671_s25  ;;  %1264 = vrot.lane.b32.xlu0 %v1261_v19, %s2669_s21 }
0x1030   :  { %v2488_v35 = vpop.permute.xlu2 %2487 }
0x1031   :  { %v2490_v36 = vunpack.i.h.bf16 %v2488_v35  ;;  %v2489_v24 = vunpack.i.l.bf16 %v2488_v35 }
0x1046   :  { %v1267_v7 = vpop.permute.xlu1 %1266  ;;  %v1249_v8 = vpop.permute.xlu0 %1248 }
0x1047   :  { %v1275_v18 = vpack.c.bf16 %v1267_v7, %v1267_v7  ;;  %v1271_v37 = vsel %vm179_vm9, %v1249_v8, %v2489_v24 }
0x1049   :  { %1283 = vrot.lane.b32.xlu2 %v1275_v18, %s2672_s26 }
0x104e   :  { %v1247_v17 = vpop.permute.xlu1 %1246  ;;  %v1265_v11 = vpop.permute.xlu0 %1264 }
0x104f   :  { %v1270_v1 = vsel %vm169_vm10, %v1239_v23, %v1247_v17  ;;  %v1272_v59 = vsel %vm189_vm8, %v2490_v36, %v1265_v11 }
0x1050   :  { %v3177_v39 = vpack.c.bf16 %v1270_v1, %v1237_v10  ;;  %v1274_v40 = vpack.c.bf16 %v1272_v59, %v1271_v37 }
0x1052   :  { %1279 = vrot.lane.b32.xlu1 %v3177_v39, %s2672_s26  ;;  %1281 = vrot.lane.b32.xlu0 %v1274_v40, %s2672_s26 }
0x10a3   :  { %v1284_v41 = vpop.permute.xlu2 %1283 }
0x10a4   :  { %v1301_v42 = vsel %vm214_vm11, %v1284_v41, 0 }
0x10a5   :  { %1308 = vmatpush.bf16.xpose.msrb.mxu3 %v1301_v42 }
0x10c4   :  { %v1282_v43 = vpop.permute.xlu0 %1281  ;;  %v1280_v31 = vpop.permute.xlu1 %1279 }
0x10c5   :  { %v1298_v45 = vsel %vm214_vm11, %v1282_v43, 0  ;;  %v1295_v46 = vsel %vm214_vm11, %v1280_v31, 0 }
0x10c6   :  { %1309 = vmatpush.bf16.xpose.msrb.mxu3 %v1298_v45 }
0x10ce   :  { %1310 = vmatpush.bf16.xpose.msrb.mxu3 %v1295_v46 }
0x10d5   :  { %2360 = vmatmul.msk.bf16.vlgmr.msrb.gmra.mxu3 %vm214_vm11, %v3177_v39 }
0x10e5   :  { %2361 = vmatmul.msk.bf16.gmra.mxu3 %vm214_vm11, %v1274_v40 }
0x10f5   :  { %2362 = vmatmul.msk.bf16.gmra.mxu3 %vm214_vm11, %v1275_v18 }
0x1158   :  { %v1312_v22 = vpop.f32.mrf.mxu3 }
0x1159   :  { %v1313_v49 = vadd.f32 %v3192_v48, %v1312_v22 }
0x115b   :  { %v1326_v26 = vsel %vm256_vm12, %v1313_v49, -inf }
0x115c   :  { %1327 = vmax.xlane.f32.xlu2 %v1326_v26 }
0x1160   :  { %v1314_v9 = vpop.f32.mrf.mxu3 }
0x1161   :  { %v1315_v30 = vadd.f32 %v3199_v50, %v1314_v9 }
0x1163   :  { %v1329_v52 = vsel %vm256_vm12, %v1315_v30, -inf }
0x1164   :  { %1330 = vmax.xlane.f32.xlu0 %v1329_v52 }
0x1168   :  { %v1317_v53 = vpop.f32.mrf.mxu3 }
0x1169   :  { %v1318_v55 = vadd.f32 %v3206_v54, %v1317_v53 }
0x116b   :  { %v1332_v34 = vsel %vm256_vm12, %v1318_v55, -inf }
0x116c   :  { %1333 = vmax.xlane.f32.xlu1 %v1332_v34 }
0x1170   :  { %v1319_v56 = vpop.f32.mrf.mxu3 }
0x1171   :  { %v1320_v38 = vadd.f32 %v3213_v12, %v1319_v56 }
0x1173   :  { %v1335_v57 = vsel %vm256_vm12, %v1320_v38, -inf }
0x1174   :  { %1336 = vmax.xlane.f32.xlu2 %v1335_v57  ;;  %v3240_v57 = vld [vmem:[%s3525_s5 + $0x18] sm:$0xff] }
0x1175   :  { %1486 = vmatpush.bf16.msrb.mxu0 %v3240_v57 }
0x1178   :  { %v1322_v14 = vpop.f32.mrf.mxu3 }
0x1179   :  { %v1323_v60 = vadd.f32 %v3220_v61, %v1322_v14 }
0x117b   :  { %v1338_v62 = vsel %vm256_vm12, %v1323_v60, -inf }
0x117c   :  { %1339 = vmax.xlane.f32.xlu0 %v1338_v62 }
0x1180   :  { %v1324_v63 = vpop.f32.mrf.mxu3 }
0x1190   :  { %1388 = vrot.lane.b32.xlu0 %v1275_v18, %s2673_s19 }
0x11cf   :  { %v1328_v0 = vpop.xlane.xlu2 %1327 }
0x11d0   :  { %v1341_v47 = vsub.f32 %v1313_v49, %v1328_v0 }
0x11d2   :  { %v1346_v4 = vmul.f32 1.442695, %v1341_v47 }
0x11d4   :  { %2596 = vpow2.f32 %v1346_v4 }
0x11d7   :  { %v1331_v2 = vpop.xlane.xlu0 %1330 }
0x11d8   :  { %v1342_v6 = vsub.f32 %v1315_v30, %v1331_v2 }
0x11da   :  { %v2597_v10 = vpop.eup %2596  ;;  %v1348_v20 = vmul.f32 1.442695, %v1342_v6 }
0x11db   :  { %v1356_v23 = vsel %vm256_vm12, %v2597_v10, 0.0 }
0x11dc   :  { %2598 = vpow2.f32 %v1348_v20  ;;  %1357 = vadd.xlane.f32.xlu1 %v1356_v23 }
0x11df   :  { %v1334_v19 = vpop.xlane.xlu1 %1333 }
0x11e0   :  { %v1343_v25 = vsub.f32 %v1318_v55, %v1334_v19 }
0x11e2   :  { %v2599_v27 = vpop.eup %2598  ;;  %v1350_v3 = vmul.f32 1.442695, %v1343_v25 }
0x11e3   :  { %v1359_v5 = vsel %vm256_vm12, %v2599_v27, 0.0 }
0x11e4   :  { %2600 = vpow2.f32 %v1350_v3  ;;  %1360 = vadd.xlane.f32.xlu2 %v1359_v5 }
0x11e7   :  { %v1337_v7 = vpop.xlane.xlu2 %1336 }
0x11e8   :  { %v1344_v8 = vsub.f32 %v1320_v38, %v1337_v7 }
0x11ea   :  { %v2601_v15 = vpop.eup %2600  ;;  %v1352_v18 = vmul.f32 1.442695, %v1344_v8 }
0x11eb   :  { %v1362_v58 = vsel %vm256_vm12, %v2601_v15, 0.0 }
0x11ec   :  { %1363 = vadd.xlane.f32.xlu0 %v1362_v58  ;;  %2602 = vpow2.f32 %v1352_v18 }
0x11ef   :  { %v1340_v29 = vpop.xlane.xlu0 %1339 }
0x11f0   :  { %v1345_v35 = vsub.f32 %v1323_v60, %v1340_v29 }
0x11f2   :  { %v1354_v36 = vmul.f32 1.442695, %v1345_v35  ;;  %v2603_v24 = vpop.eup %2602 }
0x11f3   :  { %v1365_v17 = vsel %vm256_vm12, %v2603_v24, 0.0 }
0x11f4   :  { %2604 = vpow2.f32 %v1354_v36 }
0x11f5   :  { %1386 = vrot.lane.b32.xlu1 %v1274_v40, %s2673_s19 }
0x11fa   :  { %v2605_v11 = vpop.eup %2604 }
0x11fb   :  { %v1368_v37 = vsel %vm256_vm12, %v2605_v11, 0.0 }
0x11fc   :  { %1384 = vrot.lane.b32.xlu2 %v3177_v39, %s2673_s19 }
0x1202   :  { %v1389_v32 = vpop.permute.xlu0 %1388 }
0x1203   :  { %v1402_v51 = vsel %vm179_vm9, %v1389_v32, 0 }
0x1204   :  { %1409 = vmatpush.bf16.msrb.mxu2 %v1402_v51  ;;  %2435 = vmatpush.bf16.msra.mxu3 %v1402_v51 }
0x121f   :  { %1366 = vadd.xlane.f32.xlu1 %v1365_v17 }
0x1225   :  { %1369 = vadd.xlane.f32.xlu2 %v1368_v37 }
0x124f   :  { %v1358_v59 = vpop.xlane.xlu1 %1357 }
0x1257   :  { %v1361_v1 = vpop.xlane.xlu2 %1360 }
0x1258   :  { %2606 = vrcp.f32 %v1361_v1 }
0x1259   :  { %2608 = vrcp.f32 %v1358_v59 }
0x125e   :  { %v2607_v39 = vpop.eup %2606 }
0x125f   :  { %v2609_v41 = vpop.eup %2608  ;;  %v1377_v42 = vmul.f32 %v2607_v39, %v2599_v27  ;;  %v1385_v45 = vpop.permute.xlu2 %1384 }
0x1260   :  { %v1376_v43 = vmul.f32 %v2609_v41, %v2597_v10  ;;  %v1364_v46 = vpop.xlane.xlu0 %1363 }
0x1261   :  { %2610 = vrcp.f32 %v1364_v46  ;;  %v3278_v46 = vld [vmem:[%s3526_s6 + $0x18] sm:$0x3] }
0x1262   :  { %v1381_v31 = vpack.c.bf16 %v1377_v42, %v1376_v43 }
0x1267   :  { %v1387_v40 = vpop.permute.xlu1 %1386  ;;  %v2611_v49 = vpop.eup %2610 }
0x1268   :  { %1410 = vmatpush.bf16.msrb.mxu2 %v1387_v40  ;;  %2436 = vmatpush.bf16.msra.mxu3 %v1387_v40  ;;  %v1378_v30 = vmul.f32 %v2611_v49, %v2601_v15  ;;  %v3252_v15 = vld [vmem:[%s3525_s5 + $0x10] sm:$0xff] }
0x1269   :  { %1487 = vmatpush.bf16.msrb.mxu0 %v3252_v15  ;;  %v3265_v40 = vld [vmem:[%s3526_s6 + $0x10] sm:$0xff] }
0x126c   :  { %1411 = vmatpush.bf16.msrb.mxu2 %v1385_v45  ;;  %2437 = vmatpush.bf16.msra.mxu3 %v1385_v45 }
0x126f   :  { %2363 = vmatmul.msk.bf16.vlgmr.msrb.gmra.mxu2 %vm256_vm12, %v1381_v31 }
0x1292   :  { %v1367_v22 = vpop.xlane.xlu1 %1366 }
0x1293   :  { %2612 = vrcp.f32 %v1367_v22 }
0x1298   :  { %v1370_v26 = vpop.xlane.xlu2 %1369 }
0x1299   :  { %v2613_v9 = vpop.eup %2612  ;;  %2614 = vrcp.f32 %v1370_v26 }
0x129a   :  { %v1379_v52 = vmul.f32 %v2613_v9, %v2603_v24 }
0x129c   :  { %v1382_v53 = vpack.c.bf16 %v1379_v52, %v1378_v30 }
0x129e   :  { %2364 = vmatmul.msk.bf16.gmra.mxu2 %vm256_vm12, %v1382_v53  ;;  %v2430_v53 = vld [vmem:[%s3527_s7 + $0x18] sm:$0xff] }
0x129f   :  { %v2615_v55 = vpop.eup %2614  ;;  %1566 = vmatpush.bf16.msra.mxu1 %v2430_v53  ;;  %2075 = vmatpush.bf16.msrb.mxu3 %v2430_v53 }
0x12a0   :  { %v1380_v34 = vmul.f32 %v2615_v55, %v2605_v11 }
0x12a2   :  { %v1383_v56 = vpack.c.bf16 %v1380_v34, %v1380_v34 }
0x12a4   :  { %2365 = vmatmul.msk.bf16.vlgmr.msra.gmra.mxu3 %vm256_vm12, %v1383_v56 }
0x12f2   :  { %v1413_v38 = vpop.f32.mrf.mxu2 }
0x12fa   :  { %v1415_v14 = vpop.f32.mrf.mxu2 }
0x12fb   :  { %v1429_v62 = vrot.slane %v1415_v14, 2 }
0x1321   :  { %v1418_v60 = vpop.f32.mrf.mxu2 }
0x1322   :  { %v1430_v63 = vrot.slane %v1418_v60, 2  ;;  %v1439_v6 = vrot.slane %v1418_v60, 4 }
0x1324   :  { %v1431_v0 = vsel %vm189_vm8, %v1429_v62, %v1430_v63 }
0x1325   :  { %v2491_v47 = vpack.i.bf16 %v1430_v63, %v1431_v0 }
0x1327   :  { %2492 = vrot.lane.b32.xlu0 %v2491_v47, %s2674_s20  ;;  %v1423_v4 = vpop.f32.mrf.mxu3 }
0x1328   :  { %v1450_v10 = vrot.slane %v1423_v4, 6 }
0x1329   :  { %v1420_v2 = vpop.f32.mrf.mxu2 }
0x132a   :  { %v1440_v20 = vrot.slane %v1420_v2, 4  ;;  %v1449_v23 = vrot.slane %v1420_v2, 6 }
0x132c   :  { %v1441_v19 = vsel %vm179_vm9, %v1439_v6, %v1440_v20  ;;  %v1451_v25 = vsel %vm169_vm10, %v1449_v23, %v1450_v10 }
0x132d   :  { %v2496_v27 = vpack.i.bf16 %v1440_v20, %v1441_v19  ;;  %v2501_v3 = vpack.i.bf16 %v1450_v10, %v1451_v25 }
0x132f   :  { %2497 = vrot.lane.b32.xlu1 %v2496_v27, %s2675_s22  ;;  %2502 = vrot.lane.b32.xlu2 %v2501_v3, %s2676_s23  ;;  %v1425_v5 = vpop.f32.mrf.mxu3 }
0x1389   :  { %v2503_v51 = vpop.permute.xlu2 %2502 }
0x138a   :  { %v2505_v35 = vunpack.i.h.bf16 %v2503_v51  ;;  %v2504_v36 = vunpack.i.l.bf16 %v2503_v51 }
0x1399   :  { %v2493_v58 = vpop.permute.xlu0 %2492 }
0x139a   :  { %v2495_v29 = vunpack.i.h.bf16 %v2493_v58  ;;  %v2494_v32 = vunpack.i.l.bf16 %v2493_v58 }
0x139c   :  { %v1459_v24 = vsel %vm214_vm11, %v1415_v14, %v2495_v29  ;;  %v1458_v17 = vsel %vm214_vm11, %v1413_v38, %v2494_v32  ;;  %v2429_v14 = vld [vmem:[%s3527_s7 + $0x10] sm:$0xff] }
0x139d   :  { %1567 = vmatpush.bf16.msra.mxu1 %v2429_v14  ;;  %2076 = vmatpush.bf16.msrb.mxu3 %v2429_v14 }
0x13a1   :  { %v2498_v7 = vpop.permute.xlu1 %2497  ;;  %1766 = vmatpush.bf16.msrb.mxu1 %v3141_v28 }
0x13a2   :  { %v2500_v8 = vunpack.i.h.bf16 %v2498_v7  ;;  %v2499_v18 = vunpack.i.l.bf16 %v2498_v7 }
0x13a4   :  { %v1461_v11 = vsel %vm391_vm13, %v1459_v24, %v2500_v8  ;;  %v1460_v37 = vsel %vm391_vm13, %v1458_v17, %v2499_v18  ;;  %v3306_v17 = vld [vmem:[%s3528_s8 + $0x10] sm:$0xff] }
0x13a5   :  { %v1462_v1 = vsel %vm3535_vm2, %v1460_v37, %v2504_v36  ;;  %v1463_v59 = vsel %vm3536_vm14, %v1461_v11, %v2505_v35  ;;  %1767 = vmatpush.bf16.msrb.mxu1 %v3147_v44 }
0x13a6   :  { %v1464_v39 = vpack.c.bf16 %v1463_v59, %v1462_v1 }
0x13a8   :  { %2374 = vmatmul.msk.bf16.vlgmr.msrb.gmra.mxu0 %vm87_vm0, %v1464_v39 }
0x1425   :  { %v1489_v41 = vpop.f32.mrf.mxu0 }
0x1426   :  { %v1490_v42 = vadd.f32 %v3265_v40, %v1489_v41 }
0x1428   :  { %v3269_v43 = vadd.f32 %v1490_v42, %v3119_v33 }
0x142a   :  { %v1496_v45 = vsel %vm87_vm0, %v3269_v43, 0.0  ;;  %v1502_v31 = vmul.f32 %v3269_v43, %v3269_v43 }
0x142b   :  { %1497 = vadd.xlane.f32.xlu0 %v1496_v45 }
0x142c   :  { %v1504_v22 = vsel %vm87_vm0, %v1502_v31, 0.0 }
0x142d   :  { %v1491_v49 = vpop.f32.mrf.mxu0  ;;  %1505 = vadd.xlane.f32.xlu1 %v1504_v22 }
0x142e   :  { %v1492_v26 = vadd.f32 %v3278_v46, %v1491_v49 }
0x1430   :  { %v3283_v33 = vadd.f32 %v1492_v26, %v3131_v21 }
0x1432   :  { %v1499_v9 = vsel %vm91_vm1, %v3283_v33, 0.0  ;;  %v1503_v30 = vmul.f32 %v3283_v33, %v3283_v33 }
0x1433   :  { %1500 = vadd.xlane.f32.xlu2 %v1499_v9 }
0x1434   :  { %v1507_v52 = vsel %vm91_vm1, %v1503_v30, 0.0 }
0x1435   :  { %1508 = vadd.xlane.f32.xlu0 %v1507_v52 }
0x149e   :  { %v1498_v55 = vpop.xlane.xlu0 %1497 }
0x149f   :  { %v1510_v34 = vmul.f32 0.03125, %v1498_v55 }
0x14a0   :  { %v1506_v21 = vpop.xlane.xlu1 %1505 }
0x14a1   :  { %v1514_v56 = vmul.f32 %v1510_v34, %v1510_v34  ;;  %v1512_v38 = vmul.f32 0.03125, %v1506_v21  ;;  %v1518_v7 = vsub.f32 %v3269_v43, %v1510_v34  ;;  %v3332_v34 = vld [vmem:[%s3529_s9 + $0x38] sm:$0xff] }
0x14a2   :  { %1694 = vmatpush.bf16.msra.mxu0 %v3332_v34 }
0x14a3   :  { %v1516_v60 = vsub.f32 %v1512_v38, %v1514_v56 }
0x14a5   :  { %v1520_v62 = vadd.f32 1e-06, %v1516_v60 }
0x14a6   :  { %v1501_v63 = vpop.xlane.xlu2 %1500 }
0x14a7   :  { %2616 = vrsqrt.f32 %v1520_v62  ;;  %v1511_v0 = vmul.f32 0.03125, %v1501_v63  ;;  %vm1528_vm4 = vweird.f32 %v1520_v62 }
0x14a8   :  { %v1509_v47 = vpop.xlane.xlu0 %1508 }
0x14a9   :  { %v1515_v4 = vmul.f32 %v1511_v0, %v1511_v0  ;;  %v1513_v2 = vmul.f32 0.03125, %v1509_v47  ;;  %v1519_v8 = vsub.f32 %v3283_v33, %v1511_v0  ;;  %v3338_v0 = vld [vmem:[%s3529_s9 + $0x30] sm:$0xff] }
0x14aa   :  { %1695 = vmatpush.bf16.msra.mxu0 %v3338_v0 }
0x14ab   :  { %v1517_v6 = vsub.f32 %v1513_v2, %v1515_v4 }
0x14ad   :  { %v2617_v10 = vpop.eup %2616  ;;  %v1521_v20 = vadd.f32 1e-06, %v1517_v6 }
0x14ae   :  { %v1523_v23 = vmul.f32 %v2617_v10, %v1520_v62  ;;  %vm1529_vm3 = vweird.f32 %v2617_v10 }
0x14af   :  { %2618 = vrsqrt.f32 %v1521_v20  ;;  %vm1530_vm6 = vmor %vm1528_vm4, %vm1529_vm3  ;;  %vm1538_vm7 = vweird.f32 %v1521_v20 }
0x14b0   :  { %v1524_v19 = vmul.f32 %v2617_v10, %v1523_v23 }
0x14b2   :  { %v1525_v25 = vmul.f32 0.5, %v1524_v19  ;;  %v3344_v19 = vld [vmem:[%s3529_s9 + $0x28] sm:$0xff] }
0x14b3   :  { %1696 = vmatpush.bf16.msra.mxu0 %v3344_v19 }
0x14b4   :  { %v1526_v3 = vsub.f32 1.5, %v1525_v25 }
0x14b5   :  { %v2619_v27 = vpop.eup %2618 }
0x14b6   :  { %v1533_v5 = vmul.f32 %v2619_v27, %v1521_v20  ;;  %v1527_v58 = vmul.f32 %v2617_v10, %v1526_v3  ;;  %vm1539_vm5 = vweird.f32 %v2619_v27 }
0x14b7   :  { %vm1540_vm2 = vmor %vm1538_vm7, %vm1539_vm5 }
0x14b8   :  { %v1534_v28 = vmul.f32 %v2619_v27, %v1533_v5  ;;  %v1531_v44 = vsel %vm1530_vm6, %v2617_v10, %v1527_v58  ;;  %v3350_v58 = vld [vmem:[%s3529_s9 + $0x20] sm:$0xff] }
0x14b9   :  { %v1542_v35 = vmul.f32 %v1531_v44, %v1518_v7  ;;  %1697 = vmatpush.bf16.msra.mxu0 %v3350_v58 }
0x14ba   :  { %v1535_v29 = vmul.f32 0.5, %v1534_v28 }
0x14bc   :  { %v1536_v32 = vsub.f32 1.5, %v1535_v29 }
0x14be   :  { %v1537_v51 = vmul.f32 %v2619_v27, %v1536_v32 }
0x14c0   :  { %v1541_v18 = vsel %vm1540_vm2, %v2619_v27, %v1537_v51 }
0x14c1   :  { %v1543_v36 = vmul.f32 %v1541_v18, %v1519_v8 }
0x14c3   :  { %v1544_v24 = vpack.c.bf16 %v1543_v36, %v1542_v35 }
0x14c5   :  { %2383 = vmatmul.msk.bf16.vlgmr.msra.gmra.mxu1 %vm87_vm0, %v1544_v24 }
0x14c6   :  { %2007 = vmatpush.bf16.msra.mxu1 %v3240_v57  ;;  %v3319_v57 = vld [vmem:[%s3528_s8 + $0x18] sm:$0x3] }
0x14ca   :  { %2008 = vmatpush.bf16.msra.mxu1 %v3252_v15 }
0x1542   :  { %v1569_v11 = vpop.f32.mrf.mxu1 }
0x1543   :  { %v3309_v37 = vadd.f32 %v3306_v17, %v1569_v11 }
0x1545   :  { %v3312_v1 = vmul.f32 0.70710677, %v3309_v37 }
0x1547   :  { %v1578_v59 = vmul.f32 %v3312_v1, %v3312_v1 }
0x1549   :  { %v1579_v15 = vmin.f32 %v1578_v59, 16.0 }
0x154a   :  { %v1571_v39 = vpop.f32.mrf.mxu1 }
0x154b   :  { %v1580_v41 = vmul.f32 2.1237322e-06, %v1579_v15  ;;  %v1591_v42 = vmul.f32 3.8918573e-05, %v1579_v15  ;;  %v3322_v45 = vadd.f32 %v3319_v57, %v1571_v39 }
0x154d   :  { %v1581_v31 = vadd.f32 0.00028619796, %v1580_v41  ;;  %v1592_v22 = vadd.f32 0.001143296, %v1591_v42  ;;  %v3325_v49 = vmul.f32 0.70710677, %v3322_v45 }
0x154f   :  { %v1593_v26 = vmul.f32 %v1592_v22, %v1579_v15  ;;  %v1618_v9 = vmul.f32 %v3325_v49, %v3325_v49  ;;  %v1582_v30 = vmul.f32 %v1581_v31, %v1579_v15 }
0x1551   :  { %v1594_v52 = vadd.f32 0.014752088, %v1593_v26  ;;  %v1619_v53 = vmin.f32 %v1618_v9, 16.0  ;;  %v1583_v38 = vadd.f32 0.0036580483, %v1582_v30 }
0x1553   :  { %v1595_v55 = vmul.f32 %v1594_v52, %v1579_v15  ;;  %v1620_v21 = vmul.f32 2.1237322e-06, %v1619_v53  ;;  %v1631_v56 = vmul.f32 3.8918573e-05, %v1619_v53  ;;  %v1584_v2 = vmul.f32 %v1583_v38, %v1579_v15 }
0x1555   :  { %v1596_v14 = vadd.f32 0.112945676, %v1595_v55  ;;  %v1621_v60 = vadd.f32 0.00028619796, %v1620_v21  ;;  %v1632_v62 = vadd.f32 0.001143296, %v1631_v56 }
0x1556   :  { %v1585_v27 = vadd.f32 0.05243302, %v1584_v2 }
0x1557   :  { %v1597_v63 = vmul.f32 %v1596_v14, %v1579_v15  ;;  %v1622_v47 = vmul.f32 %v1621_v60, %v1619_v53  ;;  %v1633_v4 = vmul.f32 %v1632_v62, %v1619_v53 }
0x1558   :  { %v1586_v32 = vmul.f32 %v1585_v27, %v1579_v15  ;;  %v1574_v27 = vmul.f32 0.5, %v3309_v37  ;;  %v2667_v37 = vld [vmem:[%s3521_s1 + $0x10] sm:$0xff] }
0x1559   :  { %v1598_v6 = vadd.f32 0.4994258, %v1597_v63  ;;  %v1623_v10 = vadd.f32 0.0036580483, %v1622_v47  ;;  %v1634_v20 = vadd.f32 0.014752088, %v1633_v4 }
0x155a   :  { %v1587_v18 = vadd.f32 0.18741608, %v1586_v32 }
0x155b   :  { %v1599_v23 = vmul.f32 %v1598_v6, %v1579_v15  ;;  %v1635_v25 = vmul.f32 %v1634_v20, %v1619_v53  ;;  %v1624_v5 = vmul.f32 %v1623_v10, %v1619_v53 }
0x155c   :  { %v1588_v59 = vmul.f32 %v1587_v18, %v1579_v15 }
0x155d   :  { %v1600_v3 = vadd.f32 1.0, %v1599_v23  ;;  %v1636_v28 = vadd.f32 0.112945676, %v1635_v25  ;;  %v1625_v44 = vadd.f32 0.05243302, %v1624_v5 }
0x155e   :  { %v1589_v26 = vadd.f32 1.1283791, %v1588_v59  ;;  %v2668_v59 = vld [vmem:[%s3521_s1 + $0x18] sm:$0x3] }
0x155f   :  { %2620 = vrcp.f32 %v1600_v3  ;;  %v1637_v29 = vmul.f32 %v1636_v28, %v1619_v53  ;;  %v1626_v36 = vmul.f32 %v1625_v44, %v1619_v53  ;;  %v1612_v41 = vand.u32 2147483648, %v1600_v3 }
0x1560   :  { %v1610_v31 = vand.u32 2147483647, %v1600_v3  ;;  %vm1606_vm3 = vweird.f32 %v1600_v3  ;;  %v1590_v38 = vmul.f32 %v1589_v26, %v3312_v1 }
0x1561   :  { %v1638_v51 = vadd.f32 0.4994258, %v1637_v29  ;;  %v1627_v42 = vadd.f32 0.18741608, %v1626_v36  ;;  %v1613_v52 = vor.u32 1.1754944e-38, %v1612_v41 }
0x1562   :  { %vm1611_vm5 = vcmp.eq.f32.partialorder %v1610_v31, 8.507059e+37 }
0x1563   :  { %v1639_v7 = vmul.f32 %v1638_v51, %v1619_v53  ;;  %v1628_v55 = vmul.f32 %v1627_v42, %v1619_v53 }
0x1565   :  { %v2621_v8 = vpop.eup %2620  ;;  %v1640_v24 = vadd.f32 1.0, %v1639_v7  ;;  %v1629_v15 = vadd.f32 1.1283791, %v1628_v55 }
0x1566   :  { %v1602_v35 = vmul.f32 %v2621_v8, %v1600_v3  ;;  %vm1607_vm14 = vweird.f32 %v2621_v8  ;;  %v1575_v3 = vmul.f32 0.5, %v3322_v45 }
0x1567   :  { %2622 = vrcp.f32 %v1640_v24  ;;  %vm1608_vm4 = vmor %vm1606_vm3, %vm1607_vm14  ;;  %v1652_v60 = vand.u32 2147483648, %v1640_v24  ;;  %v1650_v47 = vand.u32 2147483647, %v1640_v24  ;;  %vm1646_vm7 = vweird.f32 %v1640_v24 }
0x1568   :  { %v1603_v11 = vsub.f32 1.0, %v1602_v35  ;;  %v1630_v10 = vmul.f32 %v1629_v15, %v3325_v49  ;;  %v3361_v49 = vld [vmem:[%s3530_s10 + $0x10] sm:$0xff] }
0x1569   :  { %v1653_v2 = vor.u32 1.1754944e-38, %v1652_v60  ;;  %vm1651_vm14 = vcmp.eq.f32.partialorder %v1650_v47, 8.507059e+37 }
0x156a   :  { %v1604_v39 = vmul.f32 %v2621_v8, %v1603_v11 }
0x156c   :  { %v1605_v22 = vadd.f32 %v2621_v8, %v1604_v39 }
0x156d   :  { %v2623_v9 = vpop.eup %2622 }
0x156e   :  { %v1609_v30 = vsel %vm1608_vm4, %v2621_v8, %v1605_v22  ;;  %v1642_v21 = vmul.f32 %v2623_v9, %v1640_v24  ;;  %vm1647_vm6 = vweird.f32 %v2623_v9  ;;  %v3373_v8 = vld [vmem:[%s3530_s10 + $0x18] sm:$0x3] }
0x156f   :  { %v1614_v56 = vsel %vm1611_vm5, %v1613_v52, %v1609_v30  ;;  %vm1648_vm2 = vmor %vm1646_vm7, %vm1647_vm6 }
0x1570   :  { %v1643_v14 = vsub.f32 1.0, %v1642_v21  ;;  %v1615_v62 = vmul.f32 %v1614_v56, %v1590_v38 }
0x1572   :  { %v1644_v63 = vmul.f32 %v2623_v9, %v1643_v14  ;;  %v2384_v6 = vclamps-f32 %v1615_v62, 1.0 }
0x1574   :  { %v1645_v4 = vadd.f32 %v2623_v9, %v1644_v63  ;;  %v1658_v25 = vadd.f32 1.0, %v2384_v6 }
0x1576   :  { %v1649_v53 = vsel %vm1648_vm2, %v2623_v9, %v1645_v4  ;;  %v1660_v28 = vmul.f32 %v1658_v25, %v1574_v27 }
0x1577   :  { %v1654_v20 = vsel %vm1651_vm14, %v1653_v2, %v1649_v53 }
0x1578   :  { %v1655_v23 = vmul.f32 %v1654_v20, %v1630_v10 }
0x157a   :  { %v2385_v1 = vclamps-f32 %v1655_v23, 1.0 }
0x157c   :  { %v1659_v5 = vadd.f32 1.0, %v2385_v1 }
0x157e   :  { %v1661_v29 = vmul.f32 %v1659_v5, %v1575_v3 }
0x1580   :  { %v1662_v32 = vpack.c.bf16 %v1661_v29, %v1660_v28 }
0x1582   :  { %2402 = vmatmul.msk.bf16.vlgmr.msra.gmra.mxu0 %vm620_vm15, %v1662_v32 }
0x15ff   :  { %v1699_v44 = vpop.f32.mrf.mxu0 }
0x1600   :  { %v1700_v51 = vadd.f32 %v3361_v49, %v1699_v44 }
0x1602   :  { %v1704_v7 = vadd.f32 %v1700_v51, %v3269_v43 }
0x1604   :  { %v3368_v45 = vadd.f32 %v2667_v37, %v1704_v7 }
0x1606   :  { %v1708_v18 = vsel %vm87_vm0, %v3368_v45, 0.0  ;;  %v1714_v35 = vmul.f32 %v3368_v45, %v3368_v45 }
0x1607   :  { %v1701_v36 = vpop.f32.mrf.mxu0  ;;  %1709 = vadd.xlane.f32.xlu0 %v1708_v18 }
0x1608   :  { %v1702_v43 = vadd.f32 %v3373_v8, %v1701_v36  ;;  %v1716_v24 = vsel %vm87_vm0, %v1714_v35, 0.0 }
0x1609   :  { %1717 = vadd.xlane.f32.xlu1 %v1716_v24 }
0x160a   :  { %v1705_v11 = vadd.f32 %v1702_v43, %v3283_v33 }
0x160c   :  { %v3385_v39 = vadd.f32 %v2668_v59, %v1705_v11 }
0x160e   :  { %v1711_v41 = vsel %vm91_vm1, %v3385_v39, 0.0  ;;  %v1715_v42 = vmul.f32 %v3385_v39, %v3385_v39 }
0x160f   :  { %1712 = vadd.xlane.f32.xlu2 %v1711_v41 }
0x1610   :  { %v1719_v31 = vsel %vm91_vm1, %v1715_v42, 0.0 }
0x1611   :  { %1720 = vadd.xlane.f32.xlu0 %v1719_v31 }
0x167a   :  { %v1710_v22 = vpop.xlane.xlu0 %1709 }
0x167b   :  { %v1722_v26 = vmul.f32 0.03125, %v1710_v22 }
0x167c   :  { %v1718_v9 = vpop.xlane.xlu1 %1717 }
0x167d   :  { %v1726_v33 = vmul.f32 %v1722_v26, %v1722_v26  ;;  %v1724_v30 = vmul.f32 0.03125, %v1718_v9  ;;  %v1730_v5 = vsub.f32 %v3368_v45, %v1722_v26 }
0x167f   :  { %v1728_v52 = vsub.f32 %v1724_v30, %v1726_v33 }
0x1681   :  { %v1732_v55 = vadd.f32 1e-06, %v1728_v52 }
0x1682   :  { %v1713_v21 = vpop.xlane.xlu2 %1712 }
0x1683   :  { %2624 = vrsqrt.f32 %v1732_v55  ;;  %v1723_v56 = vmul.f32 0.03125, %v1713_v21  ;;  %vm1740_vm4 = vweird.f32 %v1732_v55 }
0x1684   :  { %v1721_v38 = vpop.xlane.xlu0 %1720 }
0x1685   :  { %v1727_v14 = vmul.f32 %v1723_v56, %v1723_v56  ;;  %v1725_v15 = vmul.f32 0.03125, %v1721_v38  ;;  %v1731_v28 = vsub.f32 %v3385_v39, %v1723_v56 }
0x1687   :  { %v1729_v60 = vsub.f32 %v1725_v15, %v1727_v14 }
0x1689   :  { %v2625_v62 = vpop.eup %2624  ;;  %v1733_v63 = vadd.f32 1e-06, %v1729_v60 }
0x168a   :  { %v1735_v47 = vmul.f32 %v2625_v62, %v1732_v55  ;;  %vm1741_vm3 = vweird.f32 %v2625_v62 }
0x168b   :  { %2626 = vrsqrt.f32 %v1733_v63  ;;  %vm1742_vm6 = vmor %vm1740_vm4, %vm1741_vm3  ;;  %vm1750_vm7 = vweird.f32 %v1733_v63 }
0x168c   :  { %v1736_v4 = vmul.f32 %v2625_v62, %v1735_v47 }
0x168e   :  { %v1737_v2 = vmul.f32 0.5, %v1736_v4 }
0x1690   :  { %v1738_v10 = vsub.f32 1.5, %v1737_v2 }
0x1691   :  { %v2627_v6 = vpop.eup %2626 }
0x1692   :  { %v1745_v53 = vmul.f32 %v2627_v6, %v1733_v63  ;;  %v1739_v23 = vmul.f32 %v2625_v62, %v1738_v10  ;;  %vm1751_vm5 = vweird.f32 %v2627_v6 }
0x1693   :  { %vm1752_vm2 = vmor %vm1750_vm7, %vm1751_vm5 }
0x1694   :  { %v1746_v20 = vmul.f32 %v2627_v6, %v1745_v53  ;;  %v1743_v27 = vsel %vm1742_vm6, %v2625_v62, %v1739_v23 }
0x1695   :  { %v1754_v32 = vmul.f32 %v1743_v27, %v1730_v5 }
0x1696   :  { %v1747_v25 = vmul.f32 0.5, %v1746_v20 }
0x1698   :  { %v1748_v1 = vsub.f32 1.5, %v1747_v25 }
0x169a   :  { %v1749_v3 = vmul.f32 %v2627_v6, %v1748_v1 }
0x169c   :  { %v1753_v29 = vsel %vm1752_vm2, %v2627_v6, %v1749_v3 }
0x169d   :  { %v1755_v44 = vmul.f32 %v1753_v29, %v1731_v28 }
0x169f   :  { %v1756_v51 = vpack.c.bf16 %v1755_v44, %v1754_v32 }
0x16a1   :  { %2403 = vmatmul.msk.bf16.vlgmr.msrb.gmra.mxu1 %vm87_vm0, %v1756_v51 }
0x16a2   :  { %2179 = vmatpush.bf16.msrb.mxu1 %v3332_v34 }
0x16a6   :  { %2180 = vmatpush.bf16.msrb.mxu1 %v3338_v0 }
0x16aa   :  { %2181 = vmatpush.bf16.msrb.mxu1 %v3344_v19 }
0x16ae   :  { %2182 = vmatpush.bf16.msrb.mxu1 %v3350_v58 }
0x171e   :  { %v1769_v7 = vpop.f32.mrf.mxu1 }
0x171f   :  { %v1770_v37 = vadd.f32 %v3156_v13, %v1769_v7 }
0x1721   :  { %v1794_v36 = vrot.slane %v1770_v37, 2  ;;  %v1776_v43 = vrot.slane %v1770_v37, 6  ;;  %v1785_v41 = vrot.slane %v1770_v37, 4 }
0x1726   :  { %v1771_v18 = vpop.f32.mrf.mxu1 }
0x1727   :  { %v1772_v35 = vadd.f32 %v3162_v16, %v1771_v18 }
0x1729   :  { %v1786_v24 = vrot.slane %v1772_v35, 4  ;;  %v1795_v11 = vrot.slane %v1772_v35, 2  ;;  %v1777_v59 = vrot.slane %v1772_v35, 6 }
0x172b   :  { %v1796_v34 = vsel %vm189_vm8, %v1794_v36, %v1795_v11  ;;  %v1778_v0 = vsel %vm169_vm10, %v1776_v43, %v1777_v59  ;;  %v1787_v19 = vsel %vm179_vm9, %v1785_v41, %v1786_v24 }
0x172c   :  { %1799 = vrot.lane.b32.xlu2 %v1796_v34, %s2669_s21  ;;  %1781 = vrot.lane.b32.xlu1 %v1778_v0, %s2671_s25  ;;  %v2506_v13 = vpack.i.bf16 %v1787_v19, %v1785_v41 }
0x172e   :  { %2507 = vrot.lane.b32.xlu0 %v2506_v13, %s2670_s24 }
0x1734   :  { %1797 = vrot.lane.b32.xlu2 %v1794_v36, %s2669_s21 }
0x1736   :  { %1779 = vrot.lane.b32.xlu0 %v1776_v43, %s2671_s25 }
0x1786   :  { %v1800_v16 = vpop.permute.xlu2 %1799 }
0x1787   :  { %v1808_v58 = vpack.c.bf16 %v1800_v16, %v1800_v16 }
0x1789   :  { %1816 = vrot.lane.b32.xlu1 %v1808_v58, %s2672_s26 }
0x178e   :  { %v1798_v26 = vpop.permute.xlu2 %1797 }
0x179e   :  { %v1782_v9 = vpop.permute.xlu1 %1781 }
0x17a0   :  { %v2508_v42 = vpop.permute.xlu0 %2507 }
0x17a1   :  { %v2510_v31 = vunpack.i.h.bf16 %v2508_v42  ;;  %v2509_v22 = vunpack.i.l.bf16 %v2508_v42 }
0x17a3   :  { %v1804_v33 = vsel %vm179_vm9, %v1782_v9, %v2509_v22  ;;  %v1805_v30 = vsel %vm189_vm8, %v2510_v31, %v1798_v26 }
0x17a4   :  { %v1807_v52 = vpack.c.bf16 %v1805_v30, %v1804_v33 }
0x17a6   :  { %1814 = vrot.lane.b32.xlu2 %v1807_v52, %s2672_s26 }
0x17a8   :  { %v1780_v55 = vpop.permute.xlu0 %1779 }
0x17a9   :  { %v1803_v21 = vsel %vm169_vm10, %v1772_v35, %v1780_v55 }
0x17aa   :  { %v1806_v56 = vpack.c.bf16 %v1803_v21, %v1770_v37 }
0x17ac   :  { %1812 = vrot.lane.b32.xlu0 %v1806_v56, %s2672_s26 }
0x17fb   :  { %v1817_v38 = vpop.permute.xlu1 %1816 }
0x17fc   :  { %v1834_v14 = vsel %vm214_vm11, %v1817_v38, 0 }
0x17fd   :  { %1841 = vmatpush.bf16.xpose.msra.mxu2 %v1834_v14 }
0x1800   :  { %v1815_v15 = vpop.permute.xlu2 %1814 }
0x1801   :  { %v1831_v60 = vsel %vm214_vm11, %v1815_v15, 0 }
0x1805   :  { %1842 = vmatpush.bf16.xpose.msra.mxu2 %v1831_v60 }
0x181e   :  { %v1813_v62 = vpop.permute.xlu0 %1812 }
0x181f   :  { %v1828_v63 = vsel %vm214_vm11, %v1813_v62, 0 }
0x1820   :  { %1843 = vmatpush.bf16.xpose.msra.mxu2 %v1828_v63 }
0x1827   :  { %2404 = vmatmul.msk.bf16.vlgmr.msra.gmra.mxu2 %vm214_vm11, %v1806_v56 }
0x1837   :  { %2405 = vmatmul.msk.bf16.gmra.mxu2 %vm214_vm11, %v1807_v52 }
0x1847   :  { %2406 = vmatmul.msk.bf16.gmra.mxu2 %vm214_vm11, %v1808_v58 }
0x18aa   :  { %v1845_v47 = vpop.f32.mrf.mxu2 }
0x18ab   :  { %v1846_v4 = vadd.f32 %v3192_v48, %v1845_v47 }
0x18ad   :  { %v1859_v2 = vsel %vm256_vm12, %v1846_v4, -inf }
0x18ae   :  { %1860 = vmax.xlane.f32.xlu1 %v1859_v2 }
0x18b2   :  { %v1847_v6 = vpop.f32.mrf.mxu2 }
0x18b3   :  { %v1848_v10 = vadd.f32 %v3199_v50, %v1847_v6 }
0x18b5   :  { %v1862_v53 = vsel %vm256_vm12, %v1848_v10, -inf }
0x18b6   :  { %1863 = vmax.xlane.f32.xlu2 %v1862_v53 }
0x18ba   :  { %v1850_v20 = vpop.f32.mrf.mxu2 }
0x18bb   :  { %v1851_v23 = vadd.f32 %v3206_v54, %v1850_v20 }
0x18bd   :  { %v1865_v25 = vsel %vm256_vm12, %v1851_v23, -inf }
0x18be   :  { %1866 = vmax.xlane.f32.xlu0 %v1865_v25 }
0x18c2   :  { %v1852_v1 = vpop.f32.mrf.mxu2 }
0x18c3   :  { %v1853_v27 = vadd.f32 %v3213_v12, %v1852_v1 }
0x18c5   :  { %v1868_v48 = vsel %vm256_vm12, %v1853_v27, -inf }
0x18c6   :  { %1869 = vmax.xlane.f32.xlu1 %v1868_v48 }
0x18ca   :  { %v1855_v3 = vpop.f32.mrf.mxu2 }
0x18cb   :  { %v1856_v5 = vadd.f32 %v3220_v61, %v1855_v3 }
0x18cd   :  { %v1871_v50 = vsel %vm256_vm12, %v1856_v5, -inf }
0x18ce   :  { %1872 = vmax.xlane.f32.xlu2 %v1871_v50 }
0x18d2   :  { %v1857_v28 = vpop.f32.mrf.mxu2 }
0x18e6   :  { %1921 = vrot.lane.b32.xlu2 %v1808_v58, %s2673_s19 }
0x1921   :  { %v1861_v29 = vpop.xlane.xlu1 %1860 }
0x1922   :  { %v1874_v54 = vsub.f32 %v1846_v4, %v1861_v29 }
0x1924   :  { %v1879_v32 = vmul.f32 1.442695, %v1874_v54 }
0x1926   :  { %2628 = vpow2.f32 %v1879_v32 }
0x1929   :  { %v1864_v44 = vpop.xlane.xlu2 %1863 }
0x192a   :  { %v1875_v51 = vsub.f32 %v1848_v10, %v1864_v44 }
0x192c   :  { %v2629_v7 = vpop.eup %2628  ;;  %v1881_v12 = vmul.f32 1.442695, %v1875_v51 }
0x192d   :  { %v1889_v37 = vsel %vm256_vm12, %v2629_v7, 0.0 }
0x192e   :  { %2630 = vpow2.f32 %v1881_v12  ;;  %1890 = vadd.xlane.f32.xlu0 %v1889_v37 }
0x1931   :  { %v1867_v0 = vpop.xlane.xlu0 %1866 }
0x1932   :  { %v1876_v19 = vsub.f32 %v1851_v23, %v1867_v0 }
0x1934   :  { %v2631_v18 = vpop.eup %2630  ;;  %v1883_v13 = vmul.f32 1.442695, %v1876_v19 }
0x1935   :  { %v1892_v61 = vsel %vm256_vm12, %v2631_v18, 0.0 }
0x1936   :  { %1893 = vadd.xlane.f32.xlu1 %v1892_v61 }
0x1939   :  { %v1870_v35 = vpop.xlane.xlu1 %1869 }
0x193a   :  { %v1877_v36 = vsub.f32 %v1853_v27, %v1870_v35 }
0x193c   :  { %v1885_v43 = vmul.f32 1.442695, %v1877_v36 }
0x193e   :  { %2632 = vpow2.f32 %v1885_v43 }
0x193f   :  { %2634 = vpow2.f32 %v1883_v13 }
0x1941   :  { %v1873_v24 = vpop.xlane.xlu2 %1872 }
0x1942   :  { %1919 = vrot.lane.b32.xlu0 %v1807_v52, %s2673_s19  ;;  %v1878_v16 = vsub.f32 %v1856_v5, %v1873_v24 }
0x1944   :  { %v2633_v11 = vpop.eup %2632  ;;  %v1887_v42 = vmul.f32 1.442695, %v1878_v16 }
0x1945   :  { %v1898_v59 = vsel %vm256_vm12, %v2633_v11, 0.0  ;;  %v2635_v58 = vpop.eup %2634 }
0x1946   :  { %1899 = vadd.xlane.f32.xlu2 %v1898_v59  ;;  %v1895_v31 = vsel %vm256_vm12, %v2635_v58, 0.0  ;;  %2636 = vpow2.f32 %v1887_v42 }
0x1949   :  { %v1922_v41 = vpop.permute.xlu2 %1921 }
0x194a   :  { %v1935_v34 = vsel %vm179_vm9, %v1922_v41, 0 }
0x194b   :  { %1942 = vmatpush.bf16.msrb.mxu0 %v1935_v34 }
0x194c   :  { %v2637_v22 = vpop.eup %2636 }
0x194d   :  { %v1901_v26 = vsel %vm256_vm12, %v2637_v22, 0.0 }
0x194f   :  { %1917 = vrot.lane.b32.xlu1 %v1806_v56, %s2673_s19 }
0x196c   :  { %1896 = vadd.xlane.f32.xlu0 %v1895_v31 }
0x1979   :  { %1902 = vadd.xlane.f32.xlu1 %v1901_v26 }
0x19a1   :  { %v1891_v9 = vpop.xlane.xlu0 %1890 }
0x19a9   :  { %v1894_v33 = vpop.xlane.xlu1 %1893 }
0x19aa   :  { %2638 = vrcp.f32 %v1894_v33 }
0x19ab   :  { %2640 = vrcp.f32 %v1891_v9 }
0x19b0   :  { %v2639_v52 = vpop.eup %2638 }
0x19b1   :  { %v2641_v55 = vpop.eup %2640  ;;  %v1910_v21 = vmul.f32 %v2639_v52, %v2631_v18 }
0x19b2   :  { %v1909_v56 = vmul.f32 %v2641_v55, %v2629_v7 }
0x19b4   :  { %v1920_v30 = vpop.permute.xlu0 %1919  ;;  %v1914_v14 = vpack.c.bf16 %v1910_v21, %v1909_v56 }
0x19b5   :  { %1943 = vmatpush.bf16.msrb.mxu0 %v1920_v30 }
0x19b9   :  { %v1900_v15 = vpop.xlane.xlu2 %1899 }
0x19ba   :  { %2642 = vrcp.f32 %v1900_v15 }
0x19c0   :  { %v2643_v62 = vpop.eup %2642 }
0x19c1   :  { %v1918_v38 = vpop.permute.xlu1 %1917  ;;  %v1912_v4 = vmul.f32 %v2643_v62, %v2633_v11 }
0x19c2   :  { %1944 = vmatpush.bf16.msrb.mxu0 %v1918_v38 }
0x19c5   :  { %2407 = vmatmul.msk.bf16.vlgmr.msrb.gmra.mxu0 %vm256_vm12, %v1914_v14 }
0x19df   :  { %v1897_v60 = vpop.xlane.xlu0 %1896 }
0x19e0   :  { %2644 = vrcp.f32 %v1897_v60 }
0x19e6   :  { %v2645_v63 = vpop.eup %2644 }
0x19e7   :  { %v1911_v47 = vmul.f32 %v2645_v63, %v2635_v58 }
0x19e9   :  { %v1915_v2 = vpack.c.bf16 %v1912_v4, %v1911_v47 }
0x19eb   :  { %2408 = vmatmul.msk.bf16.gmra.mxu0 %vm256_vm12, %v1915_v2 }
0x19ec   :  { %v1903_v6 = vpop.xlane.xlu1 %1902 }
0x19ed   :  { %2646 = vrcp.f32 %v1903_v6 }
0x19f3   :  { %v2647_v10 = vpop.eup %2646 }
0x19f4   :  { %v1913_v53 = vmul.f32 %v2647_v10, %v2637_v22 }
0x19f6   :  { %v1916_v20 = vpack.c.bf16 %v1913_v53, %v1913_v53 }
0x19fb   :  { %2409 = vmatmul.msk.bf16.gmra.mxu0 %vm256_vm12, %v1916_v20 }
0x1a42   :  { %v1946_v23 = vpop.f32.mrf.mxu0 }
0x1a4a   :  { %v1948_v25 = vpop.f32.mrf.mxu0 }
0x1a4b   :  { %v1962_v27 = vrot.slane %v1948_v25, 2 }
0x1a68   :  { %v1951_v1 = vpop.f32.mrf.mxu0 }
0x1a69   :  { %v1963_v48 = vrot.slane %v1951_v1, 2  ;;  %v1972_v28 = vrot.slane %v1951_v1, 4 }
0x1a6b   :  { %v1964_v3 = vsel %vm189_vm8, %v1962_v27, %v1963_v48  ;;  %vm3537_vm8 = vcmask 195584  }
0x1a6c   :  { %v2511_v5 = vpack.i.bf16 %v1963_v48, %v1964_v3 }
0x1a6e   :  { %2512 = vrot.lane.b32.xlu0 %v2511_v5, %s2674_s20 }
0x1a70   :  { %v1953_v50 = vpop.f32.mrf.mxu0 }
0x1a71   :  { %v1973_v29 = vrot.slane %v1953_v50, 4  ;;  %v1982_v51 = vrot.slane %v1953_v50, 6 }
0x1a73   :  { %v1974_v54 = vsel %vm179_vm9, %v1972_v28, %v1973_v29  ;;  %vm3538_vm9 = vmmov %vm3537_vm8 }
0x1a74   :  { %v2516_v32 = vpack.i.bf16 %v1973_v29, %v1974_v54 }
0x1a76   :  { %2517 = vrot.lane.b32.xlu2 %v2516_v32, %s2675_s22 }
0x1a78   :  { %v1956_v44 = vpop.f32.mrf.mxu0 }
0x1a79   :  { %v1983_v7 = vrot.slane %v1956_v44, 6 }
0x1a7b   :  { %v1984_v12 = vsel %vm169_vm10, %v1982_v51, %v1983_v7 }
0x1a7c   :  { %v2521_v37 = vpack.i.bf16 %v1983_v7, %v1984_v12 }
0x1a7e   :  { %2522 = vrot.lane.b32.xlu1 %v2521_v37, %s2676_s23 }
0x1a80   :  { %v1958_v18 = vpop.f32.mrf.mxu0 }
0x1ad0   :  { %v2518_v43 = vpop.permute.xlu2 %2517 }
0x1ad1   :  { %v2520_v59 = vunpack.i.h.bf16 %v2518_v43  ;;  %v2519_v41 = vunpack.i.l.bf16 %v2518_v43 }
0x1ae0   :  { %v2513_v61 = vpop.permute.xlu0 %2512 }
0x1ae1   :  { %v2515_v35 = vunpack.i.h.bf16 %v2513_v61  ;;  %v2514_v36 = vunpack.i.l.bf16 %v2513_v61 }
0x1ae3   :  { %v1992_v24 = vsel %vm214_vm11, %v1948_v25, %v2515_v35  ;;  %v1991_v11 = vsel %vm214_vm11, %v1946_v23, %v2514_v36 }
0x1ae4   :  { %v1993_v13 = vsel %vm391_vm13, %v1991_v11, %v2519_v41  ;;  %v1994_v16 = vsel %vm391_vm13, %v1992_v24, %v2520_v59 }
0x1af0   :  { %v2523_v34 = vpop.permute.xlu1 %2522 }
0x1af1   :  { %v2525_v0 = vunpack.i.h.bf16 %v2523_v34  ;;  %v2524_v19 = vunpack.i.l.bf16 %v2523_v34 }
0x1af3   :  { %v1996_v58 = vsel %vm3537_vm8, %v1994_v16, %v2525_v0  ;;  %v1995_v42 = vsel %vm3538_vm9, %v1993_v13, %v2524_v19 }
0x1af4   :  { %v1997_v31 = vpack.c.bf16 %v1996_v58, %v1995_v42 }
0x1af6   :  { %2410 = vmatmul.msk.bf16.vlgmr.msra.gmra.mxu1 %vm87_vm0, %v1997_v31 }
0x1b73   :  { %v2010_v22 = vpop.f32.mrf.mxu1 }
0x1b74   :  { %v2011_v26 = vadd.f32 %v3265_v40, %v2010_v22 }
0x1b76   :  { %v3458_v9 = vadd.f32 %v2011_v26, %v3368_v45 }
0x1b78   :  { %v2017_v33 = vsel %vm87_vm0, %v3458_v9, 0.0  ;;  %v2023_v30 = vmul.f32 %v3458_v9, %v3458_v9 }
0x1b79   :  { %2018 = vadd.xlane.f32.xlu0 %v2017_v33 }
0x1b7a   :  { %v2025_v52 = vsel %vm87_vm0, %v2023_v30, 0.0 }
0x1b7b   :  { %v2012_v55 = vpop.f32.mrf.mxu1  ;;  %2026 = vadd.xlane.f32.xlu1 %v2025_v52 }
0x1b7c   :  { %v2013_v21 = vadd.f32 %v3278_v46, %v2012_v55 }
0x1b7e   :  { %v3467_v56 = vadd.f32 %v2013_v21, %v3385_v39 }
0x1b80   :  { %v2020_v40 = vsel %vm91_vm1, %v3467_v56, 0.0  ;;  %v2024_v45 = vmul.f32 %v3467_v56, %v3467_v56 }
0x1b81   :  { %2021 = vadd.xlane.f32.xlu2 %v2020_v40 }
0x1b82   :  { %v2028_v38 = vsel %vm91_vm1, %v2024_v45, 0.0 }
0x1b83   :  { %2029 = vadd.xlane.f32.xlu0 %v2028_v38 }
0x1bec   :  { %v2019_v14 = vpop.xlane.xlu0 %2018 }
0x1bed   :  { %v2031_v15 = vmul.f32 0.03125, %v2019_v14 }
0x1bee   :  { %v2027_v60 = vpop.xlane.xlu1 %2026 }
0x1bef   :  { %v2035_v62 = vmul.f32 %v2031_v15, %v2031_v15  ;;  %v2033_v63 = vmul.f32 0.03125, %v2027_v60  ;;  %v2039_v51 = vsub.f32 %v3458_v9, %v2031_v15 }
0x1bf1   :  { %v2037_v47 = vsub.f32 %v2033_v63, %v2035_v62 }
0x1bf3   :  { %v2041_v46 = vadd.f32 1e-06, %v2037_v47 }
0x1bf4   :  { %v2022_v4 = vpop.xlane.xlu2 %2021 }
0x1bf5   :  { %2648 = vrsqrt.f32 %v2041_v46  ;;  %v2032_v39 = vmul.f32 0.03125, %v2022_v4  ;;  %vm2049_vm11 = vweird.f32 %v2041_v46 }
0x1bf6   :  { %v2030_v2 = vpop.xlane.xlu0 %2029 }
0x1bf7   :  { %v2036_v6 = vmul.f32 %v2032_v39, %v2032_v39  ;;  %v2034_v10 = vmul.f32 0.03125, %v2030_v2  ;;  %v2040_v7 = vsub.f32 %v3467_v56, %v2032_v39 }
0x1bf9   :  { %v2038_v53 = vsub.f32 %v2034_v10, %v2036_v6 }
0x1bfb   :  { %v2649_v20 = vpop.eup %2648  ;;  %v2042_v23 = vadd.f32 1e-06, %v2038_v53 }
0x1bfc   :  { %v2044_v25 = vmul.f32 %v2649_v20, %v2041_v46  ;;  %vm2050_vm10 = vweird.f32 %v2649_v20 }
0x1bfd   :  { %2650 = vrsqrt.f32 %v2042_v23  ;;  %vm2051_vm13 = vmor %vm2049_vm11, %vm2050_vm10  ;;  %vm2059_vm14 = vweird.f32 %v2042_v23 }
0x1bfe   :  { %v2045_v1 = vmul.f32 %v2649_v20, %v2044_v25 }
0x1c00   :  { %v2046_v27 = vmul.f32 0.5, %v2045_v1 }
0x1c02   :  { %v2047_v3 = vsub.f32 1.5, %v2046_v27 }
0x1c03   :  { %v2651_v48 = vpop.eup %2650 }
0x1c04   :  { %v2054_v5 = vmul.f32 %v2651_v48, %v2042_v23  ;;  %v2048_v28 = vmul.f32 %v2649_v20, %v2047_v3  ;;  %vm2060_vm12 = vweird.f32 %v2651_v48 }
0x1c05   :  { %vm2061_vm3 = vmor %vm2059_vm14, %vm2060_vm12 }
0x1c06   :  { %v2055_v50 = vmul.f32 %v2651_v48, %v2054_v5  ;;  %v2052_v32 = vsel %vm2051_vm13, %v2649_v20, %v2048_v28 }
0x1c07   :  { %v2063_v37 = vmul.f32 %v2052_v32, %v2039_v51 }
0x1c08   :  { %v2056_v29 = vmul.f32 0.5, %v2055_v50 }
0x1c0a   :  { %v2057_v54 = vsub.f32 1.5, %v2056_v29 }
0x1c0c   :  { %v2058_v44 = vmul.f32 %v2651_v48, %v2057_v54 }
0x1c0e   :  { %v2062_v12 = vsel %vm2061_vm3, %v2651_v48, %v2058_v44 }
0x1c0f   :  { %v2064_v18 = vmul.f32 %v2062_v12, %v2040_v7 }
0x1c11   :  { %v2065_v61 = vpack.c.bf16 %v2064_v18, %v2063_v37 }
0x1c13   :  { %2411 = vmatmul.msk.bf16.vlgmr.msrb.gmra.mxu3 %vm87_vm0, %v2065_v61 }
0x1c96   :  { %v2078_v35 = vpop.f32.mrf.mxu3 }
0x1c97   :  { %v3478_v36 = vadd.f32 %v3306_v17, %v2078_v35 }
0x1c99   :  { %v3481_v43 = vmul.f32 0.70710677, %v3478_v36 }
0x1c9b   :  { %v2087_v24 = vmul.f32 %v3481_v43, %v3481_v43 }
0x1c9d   :  { %v2088_v11 = vmin.f32 %v2087_v24, 16.0 }
0x1c9e   :  { %v2080_v59 = vpop.f32.mrf.mxu3 }
0x1c9f   :  { %v2089_v41 = vmul.f32 2.1237322e-06, %v2088_v11  ;;  %v2100_v34 = vmul.f32 3.8918573e-05, %v2088_v11  ;;  %v3486_v0 = vadd.f32 %v3319_v57, %v2080_v59 }
0x1ca1   :  { %v2090_v19 = vadd.f32 0.00028619796, %v2089_v41  ;;  %v2101_v13 = vadd.f32 0.001143296, %v2100_v34  ;;  %v3489_v16 = vmul.f32 0.70710677, %v3486_v0 }
0x1ca3   :  { %v2102_v17 = vmul.f32 %v2101_v13, %v2088_v11  ;;  %v2127_v58 = vmul.f32 %v3489_v16, %v3489_v16  ;;  %v2091_v42 = vmul.f32 %v2090_v19, %v2088_v11 }
0x1ca5   :  { %v2103_v31 = vadd.f32 0.014752088, %v2102_v17  ;;  %v2128_v22 = vmin.f32 %v2127_v58, 16.0  ;;  %v2092_v52 = vadd.f32 0.0036580483, %v2091_v42 }
0x1ca7   :  { %v2104_v26 = vmul.f32 %v2103_v31, %v2088_v11  ;;  %v2129_v33 = vmul.f32 2.1237322e-06, %v2128_v22  ;;  %v2140_v30 = vmul.f32 3.8918573e-05, %v2128_v22  ;;  %v2093_v14 = vmul.f32 %v2092_v52, %v2088_v11 }
0x1ca8   :  { %v2083_v52 = vmul.f32 0.5, %v3478_v36 }
0x1ca9   :  { %v2105_v55 = vadd.f32 0.112945676, %v2104_v26  ;;  %v2130_v21 = vadd.f32 0.00028619796, %v2129_v33  ;;  %v2141_v57 = vadd.f32 0.001143296, %v2140_v30 }
0x1caa   :  { %v2094_v46 = vadd.f32 0.05243302, %v2093_v14 }
0x1cab   :  { %v2106_v40 = vmul.f32 %v2105_v55, %v2088_v11  ;;  %v2131_v45 = vmul.f32 %v2130_v21, %v2128_v22  ;;  %v2142_v38 = vmul.f32 %v2141_v57, %v2128_v22  ;;  %v2084_v55 = vmul.f32 0.5, %v3486_v0 }
0x1cac   :  { %v2095_v10 = vmul.f32 %v2094_v46, %v2088_v11 }
0x1cad   :  { %v2107_v15 = vadd.f32 0.4994258, %v2106_v40  ;;  %v2132_v60 = vadd.f32 0.0036580483, %v2131_v45  ;;  %v2143_v62 = vadd.f32 0.014752088, %v2142_v38 }
0x1cae   :  { %v2096_v1 = vadd.f32 0.18741608, %v2095_v10 }
0x1caf   :  { %v2108_v63 = vmul.f32 %v2107_v15, %v2088_v11  ;;  %v2144_v47 = vmul.f32 %v2143_v62, %v2128_v22  ;;  %v2133_v39 = vmul.f32 %v2132_v60, %v2128_v22 }
0x1cb0   :  { %v2097_v50 = vmul.f32 %v2096_v1, %v2088_v11 }
0x1cb1   :  { %v2109_v4 = vadd.f32 1.0, %v2108_v63  ;;  %v2145_v2 = vadd.f32 0.112945676, %v2144_v47  ;;  %v2134_v53 = vadd.f32 0.05243302, %v2133_v39 }
0x1cb2   :  { %v2098_v51 = vadd.f32 1.1283791, %v2097_v50 }
0x1cb3   :  { %2652 = vrcp.f32 %v2109_v4  ;;  %v2146_v6 = vmul.f32 %v2145_v2, %v2128_v22  ;;  %v2135_v48 = vmul.f32 %v2134_v53, %v2128_v22  ;;  %v2121_v29 = vand.u32 2147483648, %v2109_v4 }
0x1cb4   :  { %v2119_v32 = vand.u32 2147483647, %v2109_v4  ;;  %vm2115_vm5 = vweird.f32 %v2109_v4  ;;  %v2099_v24 = vmul.f32 %v2098_v51, %v3481_v43  ;;  %v2526_v51 = vld [vmem:[%s3531_s11] ss:$0 sm:$0xff] }
0x1cb5   :  { %v2147_v20 = vadd.f32 0.4994258, %v2146_v6  ;;  %v2136_v54 = vadd.f32 0.18741608, %v2135_v48  ;;  %v2122_v37 = vor.u32 1.1754944e-38, %v2121_v29 }
0x1cb6   :  { %vm2120_vm7 = vcmp.eq.f32.partialorder %v2119_v32, 8.507059e+37 }
0x1cb7   :  { %v2148_v23 = vmul.f32 %v2147_v20, %v2128_v22  ;;  %v2137_v18 = vmul.f32 %v2136_v54, %v2128_v22 }
0x1cb9   :  { %v2653_v25 = vpop.eup %2652  ;;  %v2149_v3 = vadd.f32 1.0, %v2148_v23  ;;  %v2138_v11 = vadd.f32 1.1283791, %v2137_v18 }
0x1cba   :  { %v2111_v27 = vmul.f32 %v2653_v25, %v2109_v4  ;;  %vm2116_vm4 = vweird.f32 %v2653_v25 }
0x1cbb   :  { %2654 = vrcp.f32 %v2149_v3  ;;  %vm2117_vm6 = vmor %vm2115_vm5, %vm2116_vm4  ;;  %v2161_v41 = vand.u32 2147483648, %v2149_v3  ;;  %v2159_v13 = vand.u32 2147483647, %v2149_v3  ;;  %vm2155_vm8 = vweird.f32 %v2149_v3 }
0x1cbc   :  { %v2112_v5 = vsub.f32 1.0, %v2111_v27  ;;  %v2139_v31 = vmul.f32 %v2138_v11, %v3489_v16 }
0x1cbd   :  { %v2162_v58 = vor.u32 1.1754944e-38, %v2161_v41  ;;  %vm2160_vm10 = vcmp.eq.f32.partialorder %v2159_v13, 8.507059e+37 }
0x1cbe   :  { %v2113_v28 = vmul.f32 %v2653_v25, %v2112_v5 }
0x1cc0   :  { %v2114_v44 = vadd.f32 %v2653_v25, %v2113_v28 }
0x1cc1   :  { %v2655_v7 = vpop.eup %2654 }
0x1cc2   :  { %v2118_v12 = vsel %vm2117_vm6, %v2653_v25, %v2114_v44  ;;  %v2151_v61 = vmul.f32 %v2655_v7, %v2149_v3  ;;  %vm2156_vm2 = vweird.f32 %v2655_v7 }
0x1cc3   :  { %v2123_v35 = vsel %vm2120_vm7, %v2122_v37, %v2118_v12  ;;  %vm2157_vm9 = vmor %vm2155_vm8, %vm2156_vm2  ;;  %v2527_v37 = vld [vmem:[%s3532_s12] ss:$0 sm:$0xff] }
0x1cc4   :  { %v2152_v59 = vsub.f32 1.0, %v2151_v61  ;;  %v2124_v34 = vmul.f32 %v2123_v35, %v2099_v24 }
0x1cc6   :  { %v2153_v19 = vmul.f32 %v2655_v7, %v2152_v59  ;;  %v2412_v42 = vclamps-f32 %v2124_v34, 1.0 }
0x1cc8   :  { %v2154_v17 = vadd.f32 %v2655_v7, %v2153_v19  ;;  %v2167_v30 = vadd.f32 1.0, %v2412_v42 }
0x1cca   :  { %v2158_v22 = vsel %vm2157_vm9, %v2655_v7, %v2154_v17  ;;  %v2169_v57 = vmul.f32 %v2167_v30, %v2083_v52 }
0x1ccb   :  { %v2163_v26 = vsel %vm2160_vm10, %v2162_v58, %v2158_v22 }
0x1ccc   :  { %v2164_v33 = vmul.f32 %v2163_v26, %v2139_v31 }
0x1cce   :  { %v2413_v43 = vclamps-f32 %v2164_v33, 1.0 }
0x1cd0   :  { %v2168_v21 = vadd.f32 1.0, %v2413_v43 }
0x1cd2   :  { %v2170_v40 = vmul.f32 %v2168_v21, %v2084_v55 }
0x1cd4   :  { %v2171_v45 = vpack.c.bf16 %v2170_v40, %v2169_v57 }
0x1cd6   :  { %2414 = vmatmul.msk.bf16.vlgmr.msrb.gmra.mxu1 %vm620_vm15, %v2171_v45 }
0x1d53   :  { %v2184_v38 = vpop.f32.mrf.mxu1 }
0x1d54   :  { %v2185_v14 = vadd.f32 %v3361_v49, %v2184_v38 }
0x1d56   :  { %v2189_v16 = vadd.f32 %v2185_v14, %v3458_v9 }
0x1d58   :  { %v2191_v15 = vsel %vm87_vm0, %v2189_v16, 0.0  ;;  %v2197_v60 = vmul.f32 %v2189_v16, %v2189_v16 }
0x1d59   :  { %2192 = vadd.xlane.f32.xlu2 %v2191_v15 }
0x1d5a   :  { %v2199_v62 = vsel %vm87_vm0, %v2197_v60, 0.0 }
0x1d5b   :  { %v2186_v36 = vpop.f32.mrf.mxu1  ;;  %2200 = vadd.xlane.f32.xlu1 %v2199_v62 }
0x1d5c   :  { %v2187_v0 = vadd.f32 %v3373_v8, %v2186_v36 }
0x1d5e   :  { %v2190_v63 = vadd.f32 %v2187_v0, %v3467_v56 }
0x1d60   :  { %v2194_v47 = vsel %vm91_vm1, %v2190_v63, 0.0  ;;  %v2198_v46 = vmul.f32 %v2190_v63, %v2190_v63 }
0x1d61   :  { %2195 = vadd.xlane.f32.xlu0 %v2194_v47 }
0x1d62   :  { %v2202_v49 = vsel %vm91_vm1, %v2198_v46, 0.0 }
0x1d63   :  { %2203 = vadd.xlane.f32.xlu2 %v2202_v49 }
0x1dcc   :  { %v2193_v9 = vpop.xlane.xlu2 %2192 }
0x1dcd   :  { %v2205_v4 = vmul.f32 0.03125, %v2193_v9 }
0x1dce   :  { %v2201_v39 = vpop.xlane.xlu1 %2200 }
0x1dcf   :  { %v2209_v2 = vmul.f32 %v2205_v4, %v2205_v4  ;;  %v2207_v6 = vmul.f32 0.03125, %v2201_v39  ;;  %v2213_v44 = vsub.f32 %v2189_v16, %v2205_v4 }
0x1dd1   :  { %v2211_v10 = vsub.f32 %v2207_v6, %v2209_v2 }
0x1dd3   :  { %v2215_v53 = vadd.f32 1e-06, %v2211_v10 }
0x1dd4   :  { %v2196_v20 = vpop.xlane.xlu0 %2195 }
0x1dd5   :  { %2656 = vrsqrt.f32 %v2215_v53  ;;  %v2206_v23 = vmul.f32 0.03125, %v2196_v20  ;;  %vm2223_vm11 = vweird.f32 %v2215_v53 }
0x1dd6   :  { %v2204_v8 = vpop.xlane.xlu2 %2203 }
0x1dd7   :  { %v2210_v25 = vmul.f32 %v2206_v23, %v2206_v23  ;;  %v2208_v56 = vmul.f32 0.03125, %v2204_v8  ;;  %v2214_v41 = vsub.f32 %v2190_v63, %v2206_v23 }
0x1dd9   :  { %v2212_v1 = vsub.f32 %v2208_v56, %v2210_v25 }
0x1ddb   :  { %v2657_v27 = vpop.eup %2656  ;;  %v2216_v48 = vadd.f32 1e-06, %v2212_v1 }
0x1ddc   :  { %v2218_v3 = vmul.f32 %v2657_v27, %v2215_v53  ;;  %vm2224_vm15 = vweird.f32 %v2657_v27 }
0x1ddd   :  { %2658 = vrsqrt.f32 %v2216_v48  ;;  %vm2225_vm12 = vmor %vm2223_vm11, %vm2224_vm15  ;;  %vm2233_vm14 = vweird.f32 %v2216_v48 }
0x1dde   :  { %v2219_v5 = vmul.f32 %v2657_v27, %v2218_v3 }
0x1de0   :  { %v2220_v50 = vmul.f32 0.5, %v2219_v5 }
0x1de2   :  { %v2221_v28 = vsub.f32 1.5, %v2220_v50 }
0x1de3   :  { %v2659_v29 = vpop.eup %2658 }
0x1de4   :  { %v2222_v54 = vmul.f32 %v2657_v27, %v2221_v28  ;;  %v2228_v32 = vmul.f32 %v2659_v29, %v2216_v48  ;;  %vm2234_vm13 = vweird.f32 %v2659_v29 }
0x1de5   :  { %vm2235_vm3 = vmor %vm2233_vm14, %vm2234_vm13 }
0x1de6   :  { %v2226_v7 = vsel %vm2225_vm12, %v2657_v27, %v2222_v54  ;;  %v2229_v12 = vmul.f32 %v2659_v29, %v2228_v32 }
0x1de7   :  { %v2237_v18 = vmul.f32 %v2226_v7, %v2213_v44 }
0x1de8   :  { %v2230_v61 = vmul.f32 0.5, %v2229_v12 }
0x1de9   :  { %v2243_v35 = vmul.f32 %v2526_v51, %v2237_v18 }
0x1dea   :  { %v2231_v24 = vsub.f32 1.5, %v2230_v61 }
0x1deb   :  { %v2249_v59 = vadd.f32 %v2527_v37, %v2243_v35 }
0x1dec   :  { %v2232_v11 = vmul.f32 %v2659_v29, %v2231_v24 }
0x1ded   :  { %2251 = vst.msk [vmem:[%s3533_s13] sm:$0xff] %vm87_vm0, %v2249_v59 }
0x1dee   :  { %v2236_v34 = vsel %vm2235_vm3, %v2659_v29, %v2232_v11 }
0x1def   :  { %v2238_v19 = vmul.f32 %v2236_v34, %v2214_v41 }
0x1df1   :  { %v2244_v13 = vmul.f32 %v2526_v51, %v2238_v19 }
0x1df3   :  { %v2250_v17 = vadd.f32 %v2527_v37, %v2244_v13 }
0x1df5   :  { %2252 = vst.msk [vmem:[%s3533_s13 + $0x8] sm:$0x3] %vm91_vm1, %v2250_v17 }

</bundles_post_ra>
